<compile_context>
chip_gen: v5e
topology: v5e:2x2
jax: 0.10.0
libtpu: 0.0.40
codegen_flags: <defaults>
</compile_context>

<pallas_src>
import functools
import math

import jax
import jax.numpy as jnp
from jax.experimental import pallas as pl
from jax.experimental.pallas import tpu as pltpu

# TODO(synk): p_logit is learnable in the torch module; p=sigmoid(logit(0.1)) is
# baked in as a compile-time constant (valid for the default init_min==init_max=0.1).
P_DROP = 0.1
DROPOUT_REGULARIZER = 1e-5
EPS = 1e-7
TEMP = 0.1
TB = 8                       # batch elements per grid step (f32 sublane multiple)


def _concrete_keep(u, logit_p, inv_retain):
    """Soft concrete-dropout multiplier (1 - drop_prob) / retain_prob."""
    z = (logit_p + jnp.log(u + EPS) - jnp.log(1.0 - u + EPS)) / TEMP
    drop_prob = 1.0 / (1.0 + jnp.exp(-z))
    return (1.0 - drop_prob) * inv_retain


# ---------------------------------------------------------------------------
# Fused Pallas kernel: whole forward pass, TB batch elements per grid step
# ---------------------------------------------------------------------------
def _wavenet_kernel(x_ref, u_ref,
                    w_in_ref, b_in_ref,
                    w_c0_ref, w_c1_ref, b_c_ref,
                    w_skip_ref, b_skip_ref,
                    w_res_ref, b_res_ref,
                    w_post_ref, b_post_ref,
                    w_mean_ref, b_mean_ref,
                    w_std_ref, b_std_ref,
                    loc_ref, scale_ref,
                    *, dilations, logit_p, inv_retain):
    tb, L, Cin = x_ref.shape
    n_layers = len(dilations)
    H = w_in_ref.shape[1]
    S = w_post_ref.shape[0]
    M = tb * L                                   # matmul M dimension (rows)

    def mm(a, w_bf16):
        # elementwise math stays f32; cast only at the MXU input, f32 accumulation
        return jnp.dot(a.astype(jnp.bfloat16), w_bf16,
                       preferred_element_type=jnp.float32)

    # ---- all concrete-dropout keep factors in ONE vectorized pass ----
    keep = _concrete_keep(u_ref[...], logit_p, inv_retain)      # (TB, n_parts, W)

    # ---- encoder input: channel-wise dropout + 1x1 conv ----
    xk = x_ref[...] * keep[:, 0:1, :Cin]                        # (TB, L, Cin)
    h = mm(xk.reshape(M, Cin), w_in_ref[...]) + b_in_ref[...]   # (M, H) f32

    # ---- residual stack: activations stay VMEM/vreg resident at fixed length L,
    #      right-aligned validity; the first sum(dilations) rows of each batch
    #      element hold (finite) garbage that never reaches the last time step ----
    skip_acc = jnp.zeros((M, S), jnp.float32)
    for i, d in enumerate(dilations):
        kd = keep[:, 1 + i:2 + i, :H]                           # (TB, 1, H)
        hd = (h.reshape(tb, L, H) * kd).reshape(M, H)           # dropped layer input
        # dilated k=2 conv: tap at t-d = sublane shift (zero-fill rows are invalid)
        hd_prev = jnp.concatenate(
            [jnp.zeros((d, H), jnp.float32), hd[:M - d, :]], axis=0)
        z = jnp.maximum(mm(hd_prev, w_c0_ref[i]) + mm(hd, w_c1_ref[i])
                        + b_c_ref[i], 0.0)                      # (M, H)
        zb = z.astype(jnp.bfloat16)
        skip_acc = (skip_acc
                    + jnp.dot(zb, w_skip_ref[i], preferred_element_type=jnp.float32)
                    + b_skip_ref[i])
        # residual adds the UN-dropped layer input
        h = jnp.dot(zb, w_res_ref[i], preferred_element_type=jnp.float32) \
            + b_res_ref[i] + h

    # ---- post: channel-wise dropout -> relu -> 1x1 conv -> relu ----
    kp = keep[:, 1 + n_layers:2 + n_layers, :S]                 # (TB, 1, S)
    sk = (skip_acc.reshape(tb, L, S) * kp).reshape(M, S)
    enc = jnp.maximum(mm(jnp.maximum(sk, 0.0), w_post_ref[...]) + b_post_ref[...], 0.0)

    # ---- decoder heads (per-time-step linear, computed over all rows; only the
    #      last time step per batch element is selected below) ----
    km = keep[:, 2 + n_layers:3 + n_layers, :S]                 # mean-head dropout
    ks = keep[:, 3 + n_layers:4 + n_layers, :S]                 # std-head dropout
    enc3 = enc.reshape(tb, L, S)
    loc_full = mm((enc3 * km).reshape(M, S), w_mean_ref[...]) + b_mean_ref[...]
    std_full = mm((enc3 * ks).reshape(M, S), w_std_ref[...]) + b_std_ref[...]

    # select row (L-1) of every batch element with an exact 0/1 f32 matmul
    # (avoids strided row gathers / middle-dim squeezes; 0.0 * finite == 0.0 exactly)
    rows = jax.lax.broadcasted_iota(jnp.int32, (tb, M), 0)
    cols = jax.lax.broadcasted_iota(jnp.int32, (tb, M), 1)
    sel = (cols == rows * L + (L - 1)).astype(jnp.float32)      # (TB, M) one-hot
    loc_ref[...] = jnp.dot(sel, loc_full, preferred_element_type=jnp.float32)
    scale_ref[...] = jnp.exp(jnp.dot(sel, std_full, preferred_element_type=jnp.float32))


# ---------------------------------------------------------------------------
# Parameters (deterministic synthetic init, torch-like uniform bounds).
# Matmul weights stored in bf16 ONCE (no per-call converts); biases stay f32.
# ---------------------------------------------------------------------------
def init_params(key, cfg):
    cin, h, s = cfg["input_channels"], cfg["hidden_channels"], cfg["skip_channels"]
    hor, oc = cfg["horizon"], cfg["output_channels"]
    n_layers = len(cfg["dilations"])
    D = hor * oc
    keys = jax.random.split(key, 15)

    b_in = 1.0 / math.sqrt(cin)          # 1x1 input conv fan-in
    b_conv = 1.0 / math.sqrt(2 * h)      # k=2 dilated conv fan-in
    b_11 = 1.0 / math.sqrt(h)            # 1x1 skip / resi convs
    b_post = 1.0 / math.sqrt(s)
    b_lin = 1.0 / math.sqrt(s)

    u = lambda k, shp, b: jax.random.uniform(k, shp, jnp.float32, -b, b)
    bf = lambda a: a.astype(jnp.bfloat16)

    return {
        "w_in":    bf(u(keys[0], (cin, h), b_in)),
        "b_in":       u(keys[1], (1, h), b_in),
        "w_conv0": bf(u(keys[2], (n_layers, h, h), b_conv)),   # conv tap 0: x[t-d]
        "w_conv1": bf(u(keys[3], (n_layers, h, h), b_conv)),   # conv tap 1: x[t]
        "b_conv":     u(keys[4], (n_layers, 1, h), b_conv),
        "w_skip":  bf(u(keys[5], (n_layers, h, s), b_11)),
        "b_skip":     u(keys[6], (n_layers, 1, s), b_11),
        "w_res":   bf(u(keys[7], (n_layers, h, h), b_11)),
        "b_res":      u(keys[8], (n_layers, 1, h), b_11),
        "w_post":  bf(u(keys[9], (s, s), b_post)),
        "b_post":     u(keys[10], (1, s), b_post),
        "w_mean":  bf(u(keys[11], (s, D), b_lin)),
        "b_mean":     u(keys[12], (1, D), b_lin),
        "w_std":   bf(u(keys[13], (s, D), b_lin)),
        "b_std":      u(keys[14], (1, D), b_lin),
    }


def _dropout_reg(p, dim):
    dr = p * math.log(p) + (1.0 - p) * math.log(1.0 - p)
    return dr * DROPOUT_REGULARIZER * dim


# ---------------------------------------------------------------------------
# Forward wrapper: one pallas_call for the whole network, grid over batch blocks
# ---------------------------------------------------------------------------
def wavenet_forward(params, x_ncl, noise_key, *, cfg):
    B, Cin, L = x_ncl.shape
    H, S = cfg["hidden_channels"], cfg["skip_channels"]
    O, Hor = cfg["output_channels"], cfg["horizon"]
    dilations = tuple(cfg["dilations"])
    n_layers = len(dilations)
    D = Hor * O
    assert L - sum(dilations) >= 1, "input too short for the receptive field"

    # TB batch elements per grid step; pad batch up to a TB multiple.
    # NOTE: pick B >= 2*TB on v7x so both TensorCores get a grid block.
    B_pad = ((B + TB - 1) // TB) * TB
    n_blocks = B_pad // TB

    x = jnp.transpose(x_ncl, (0, 2, 1)).astype(jnp.float32)        # (B, L, Cin)
    if B_pad != B:
        x = jnp.concatenate([x, jnp.zeros((B_pad - B, L, Cin), jnp.float32)], axis=0)

    # One packed noise tensor -> a single per-step DMA.
    #   part 0            : input dropout     (lanes [:Cin])
    #   parts 1..n_layers : per-layer dropout (lanes [:H])
    #   part n_layers+1   : post-conv dropout (lanes [:S])
    #   part n_layers+2/3 : mean / std head dropouts (lanes [:S])
    W = max(Cin, H, S)
    n_parts = n_layers + 4
    u = jax.random.uniform(noise_key, (B_pad, n_parts, W), jnp.float32)

    logit_p = math.log(P_DROP + EPS) - math.log(1.0 - P_DROP + EPS)  # python const
    inv_retain = 1.0 / (1.0 - P_DROP)

    def batched(arr):                       # one (TB, ...) block per grid step
        nd = arr.ndim
        return pl.BlockSpec((TB,) + arr.shape[1:],
                            lambda b, _n=nd: (b,) + (0,) * (_n - 1))

    def resident(arr):                      # constant index map -> fetched once
        # TODO(synk): at production widths on v7x, single-buffer these resident
        # weights (pl.Buffered(1) / one-shot VMEM copy) to halve weight VMEM.
        nd = arr.ndim
        return pl.BlockSpec(arr.shape, lambda b, _n=nd: (0,) * _n)

    w_order = ["w_in", "b_in", "w_conv0", "w_conv1", "b_conv",
               "w_skip", "b_skip", "w_res", "b_res",
               "w_post", "b_post", "w_mean", "b_mean", "w_std", "b_std"]
    weights = [params[k] for k in w_order]

    kern = functools.partial(_wavenet_kernel, dilations=dilations,
                             logit_p=logit_p, inv_retain=inv_retain)

    loc, scale = pl.pallas_call(
        kern,
        out_shape=(jax.ShapeDtypeStruct((B_pad, D), jnp.float32),
                   jax.ShapeDtypeStruct((B_pad, D), jnp.float32)),
        grid=(n_blocks,),
        in_specs=[batched(x), batched(u)] + [resident(w) for w in weights],
        out_specs=(pl.BlockSpec((TB, D), lambda b: (b, 0)),
                   pl.BlockSpec((TB, D), lambda b: (b, 0))),
        compiler_params=pltpu.CompilerParams(
            dimension_semantics=("parallel",)),
    )(x, u, *weights)

    loc = loc[:B].reshape(B, O, Hor)
    scale = scale[:B].reshape(B, O, Hor)

    # ConcreteDropout entropy regularizer: with fixed p it is a data-independent
    # constant, computed host-side.
    # TODO(synk): deep4cast's ConcreteDropout also adds a weight-norm term scaled
    # by 1/(1-p); omitted here (constant-p inference-path entropy term only).
    reg = (_dropout_reg(P_DROP, Cin)
           + n_layers * _dropout_reg(P_DROP, H)
           + 3 * _dropout_reg(P_DROP, S))
    return {"loc": loc, "scale": scale,
            "regularizer": jnp.asarray(reg, dtype=jnp.float32)}


# ---------------------------------------------------------------------------
if __name__ == "__main__":
    cfg = dict(input_channels=4, output_channels=2, horizon=8,
               hidden_channels=32, skip_channels=32,
               n_layers=3, n_blocks=1, dilation=2)
    cfg["dilations"] = [cfg["dilation"] ** i for i in range(cfg["n_layers"])] * cfg["n_blocks"]

    root = jax.random.PRNGKey(0)
    pkey, xkey, nkey = jax.random.split(root, 3)
    params = init_params(pkey, cfg)

    B, L = 16, 16      # B = 2*TB -> 2 grid blocks (both TCs on v7x); 16 - (1+2+4) = 9 > 0
    x = jax.random.normal(xkey, (B, cfg["input_channels"], L), jnp.float32)  # NCL like torch

    fwd = jax.jit(functools.partial(wavenet_forward, cfg=cfg))
    out = jax.block_until_ready(fwd(params, x, nkey))

    assert out["loc"].shape == (B, cfg["output_channels"], cfg["horizon"])
    assert out["scale"].shape == (B, cfg["output_channels"], cfg["horizon"])
    assert bool(jnp.all(out["scale"] > 0.0))        # std comes out of exp
    assert out["regularizer"].shape == ()
    assert bool(jnp.all(jnp.isfinite(out["loc"])))
    assert bool(jnp.all(jnp.isfinite(out["scale"])))
    print("KERNEL_OK")
</pallas_src>

<mosaic_0001>
module attributes {stable_mosaic.version = 11 : i64} {
  func.func @_wavenet_kernel(%arg0: i32, %arg1: memref<8x16x4xf32, #tpu.memory_space<vmem>>, %arg2: memref<8x7x32xf32, #tpu.memory_space<vmem>>, %arg3: memref<4x32xbf16, #tpu.memory_space<vmem>>, %arg4: memref<1x32xf32, #tpu.memory_space<vmem>>, %arg5: memref<3x32x32xbf16, #tpu.memory_space<vmem>>, %arg6: memref<3x32x32xbf16, #tpu.memory_space<vmem>>, %arg7: memref<3x1x32xf32, #tpu.memory_space<vmem>>, %arg8: memref<3x32x32xbf16, #tpu.memory_space<vmem>>, %arg9: memref<3x1x32xf32, #tpu.memory_space<vmem>>, %arg10: memref<3x32x32xbf16, #tpu.memory_space<vmem>>, %arg11: memref<3x1x32xf32, #tpu.memory_space<vmem>>, %arg12: memref<32x32xbf16, #tpu.memory_space<vmem>>, %arg13: memref<1x32xf32, #tpu.memory_space<vmem>>, %arg14: memref<32x16xbf16, #tpu.memory_space<vmem>>, %arg15: memref<1x16xf32, #tpu.memory_space<vmem>>, %arg16: memref<32x16xbf16, #tpu.memory_space<vmem>>, %arg17: memref<1x16xf32, #tpu.memory_space<vmem>>, %arg18: memref<8x16xf32, #tpu.memory_space<vmem>>, %arg19: memref<8x16xf32, #tpu.memory_space<vmem>>) attributes {dimension_semantics = [#tpu.dimension_semantics<parallel>], iteration_bounds = array<i64: 2>, scalar_prefetch = 0 : i64, scratch_operands = 0 : i64, tpu.core_type = #tpu.core_type<tc>, window_params = [{transform_indices = @transform_0, window_bounds = array<i64: 8, 16, 4>}, {transform_indices = @transform_1, window_bounds = array<i64: 8, 7, 32>}, {pipeline_mode = #tpu.pipeline_mode<synchronous>, transform_indices = @transform_2, window_bounds = array<i64: 4, 32>}, {pipeline_mode = #tpu.pipeline_mode<synchronous>, transform_indices = @transform_3, window_bounds = array<i64: 1, 32>}, {pipeline_mode = #tpu.pipeline_mode<synchronous>, transform_indices = @transform_4, window_bounds = array<i64: 3, 32, 32>}, {pipeline_mode = #tpu.pipeline_mode<synchronous>, transform_indices = @transform_5, window_bounds = array<i64: 3, 32, 32>}, {pipeline_mode = #tpu.pipeline_mode<synchronous>, transform_indices = @transform_6, window_bounds = array<i64: 3, 1, 32>}, {pipeline_mode = #tpu.pipeline_mode<synchronous>, transform_indices = @transform_7, window_bounds = array<i64: 3, 32, 32>}, {pipeline_mode = #tpu.pipeline_mode<synchronous>, transform_indices = @transform_8, window_bounds = array<i64: 3, 1, 32>}, {pipeline_mode = #tpu.pipeline_mode<synchronous>, transform_indices = @transform_9, window_bounds = array<i64: 3, 32, 32>}, {pipeline_mode = #tpu.pipeline_mode<synchronous>, transform_indices = @transform_10, window_bounds = array<i64: 3, 1, 32>}, {pipeline_mode = #tpu.pipeline_mode<synchronous>, transform_indices = @transform_11, window_bounds = array<i64: 32, 32>}, {pipeline_mode = #tpu.pipeline_mode<synchronous>, transform_indices = @transform_12, window_bounds = array<i64: 1, 32>}, {pipeline_mode = #tpu.pipeline_mode<synchronous>, transform_indices = @transform_13, window_bounds = array<i64: 32, 16>}, {pipeline_mode = #tpu.pipeline_mode<synchronous>, transform_indices = @transform_14, window_bounds = array<i64: 1, 16>}, {pipeline_mode = #tpu.pipeline_mode<synchronous>, transform_indices = @transform_15, window_bounds = array<i64: 32, 16>}, {pipeline_mode = #tpu.pipeline_mode<synchronous>, transform_indices = @transform_16, window_bounds = array<i64: 1, 16>}, {transform_indices = @transform_17, window_bounds = array<i64: 8, 16>}, {transform_indices = @transform_18, window_bounds = array<i64: 8, 16>}]} {
    %c0 = arith.constant 0 : index
    %c0_0 = arith.constant 0 : index
    %c0_1 = arith.constant 0 : index
    %0 = vector.load %arg2[%c0, %c0_0, %c0_1] : memref<8x7x32xf32, #tpu.memory_space<vmem>>, vector<8x7x32xf32>
    %cst = arith.constant 1.000000e-07 : f32
    %1 = vector.broadcast %cst : f32 to vector<8x7x32xf32>
    %2 = arith.addf %0, %1 : vector<8x7x32xf32>
    %3 = math.log %2 : vector<8x7x32xf32>
    %cst_2 = arith.constant -2.19722366 : f32
    %4 = vector.broadcast %cst_2 : f32 to vector<8x7x32xf32>
    %5 = arith.addf %4, %3 : vector<8x7x32xf32>
    %cst_3 = arith.constant 1.000000e+00 : f32
    %6 = vector.broadcast %cst_3 : f32 to vector<8x7x32xf32>
    %7 = arith.subf %6, %0 : vector<8x7x32xf32>
    %cst_4 = arith.constant 1.000000e-07 : f32
    %8 = vector.broadcast %cst_4 : f32 to vector<8x7x32xf32>
    %9 = arith.addf %7, %8 : vector<8x7x32xf32>
    %10 = math.log %9 : vector<8x7x32xf32>
    %11 = arith.subf %5, %10 : vector<8x7x32xf32>
    %cst_5 = arith.constant 1.000000e-01 : f32
    %12 = vector.broadcast %cst_5 : f32 to vector<8x7x32xf32>
    %13 = arith.divf %11, %12 : vector<8x7x32xf32>
    %cst_6 = arith.constant 0.000000e+00 : f32
    %14 = vector.broadcast %cst_6 : f32 to vector<8x7x32xf32>
    %15 = arith.subf %14, %13 : vector<8x7x32xf32>
    %16 = math.exp %15 : vector<8x7x32xf32>
    %cst_7 = arith.constant 1.000000e+00 : f32
    %17 = vector.broadcast %cst_7 : f32 to vector<8x7x32xf32>
    %18 = arith.addf %17, %16 : vector<8x7x32xf32>
    %cst_8 = arith.constant 1.000000e+00 : f32
    %19 = vector.broadcast %cst_8 : f32 to vector<8x7x32xf32>
    %20 = arith.divf %19, %18 : vector<8x7x32xf32>
    %cst_9 = arith.constant 1.000000e+00 : f32
    %21 = vector.broadcast %cst_9 : f32 to vector<8x7x32xf32>
    %22 = arith.subf %21, %20 : vector<8x7x32xf32>
    %cst_10 = arith.constant 1.11111116 : f32
    %23 = vector.broadcast %cst_10 : f32 to vector<8x7x32xf32>
    %24 = arith.mulf %22, %23 : vector<8x7x32xf32>
    %c0_11 = arith.constant 0 : index
    %c0_12 = arith.constant 0 : index
    %c0_13 = arith.constant 0 : index
    %25 = vector.load %arg1[%c0_11, %c0_12, %c0_13] : memref<8x16x4xf32, #tpu.memory_space<vmem>>, vector<8x16x4xf32>
    %26 = vector.extract_strided_slice %24 {offsets = [0, 0, 0], sizes = [8, 1, 4], strides = [1, 1, 1]} : vector<8x7x32xf32> to vector<8x1x4xf32>
    %27 = vector.broadcast %26 : vector<8x1x4xf32> to vector<8x16x4xf32>
    %28 = arith.mulf %25, %27 : vector<8x16x4xf32>
    %29 = vector.shape_cast %28 : vector<8x16x4xf32> to vector<128x4xf32>
    %c0_14 = arith.constant 0 : index
    %c0_15 = arith.constant 0 : index
    %30 = vector.load %arg3[%c0_14, %c0_15] : memref<4x32xbf16, #tpu.memory_space<vmem>>, vector<4x32xbf16>
    %31 = arith.truncf %29 : vector<128x4xf32> to vector<128x4xbf16>
    %cst_16 = arith.constant dense<0.000000e+00> : vector<128x32xf32>
    %32 = tpu.matmul %31, %30, %cst_16 {dimension_numbers = #tpu.dot_dimension_numbers<[1], [0], [0], [1], [0, 0, 1, 1], [], []>} : vector<128x4xbf16>, vector<4x32xbf16>, vector<128x32xf32> -> vector<128x32xf32>
    %c0_17 = arith.constant 0 : index
    %c0_18 = arith.constant 0 : index
    %33 = vector.load %arg4[%c0_17, %c0_18] : memref<1x32xf32, #tpu.memory_space<vmem>>, vector<1x32xf32>
    %34 = vector.broadcast %33 : vector<1x32xf32> to vector<128x32xf32>
    %35 = arith.addf %32, %34 : vector<128x32xf32>
    %cst_19 = arith.constant 0.000000e+00 : f32
    %36 = vector.broadcast %cst_19 : f32 to vector<128x32xf32>
    %37 = vector.extract_strided_slice %24 {offsets = [0, 1, 0], sizes = [8, 1, 32], strides = [1, 1, 1]} : vector<8x7x32xf32> to vector<8x1x32xf32>
    %38 = vector.shape_cast %35 : vector<128x32xf32> to vector<8x16x32xf32>
    %39 = vector.broadcast %37 : vector<8x1x32xf32> to vector<8x16x32xf32>
    %40 = arith.mulf %38, %39 : vector<8x16x32xf32>
    %41 = vector.shape_cast %40 : vector<8x16x32xf32> to vector<128x32xf32>
    %cst_20 = arith.constant 0.000000e+00 : f32
    %42 = vector.broadcast %cst_20 : f32 to vector<1x32xf32>
    %43 = vector.extract_strided_slice %41 {offsets = [0, 0], sizes = [127, 32], strides = [1, 1]} : vector<128x32xf32> to vector<127x32xf32>
    %44 = tpu.concatenate %42, %43 in 0 : vector<1x32xf32>, vector<127x32xf32> -> vector<128x32xf32>
    %c0_21 = arith.constant 0 : index
    %c0_22 = arith.constant 0 : index
    %c0_23 = arith.constant 0 : index
    %45 = vector.load %arg5[%c0_21, %c0_22, %c0_23] : memref<3x32x32xbf16, #tpu.memory_space<vmem>>, vector<1x32x32xbf16>
    %46 = vector.shape_cast %45 : vector<1x32x32xbf16> to vector<32x32xbf16>
    %47 = arith.truncf %44 : vector<128x32xf32> to vector<128x32xbf16>
    %cst_24 = arith.constant dense<0.000000e+00> : vector<128x32xf32>
    %48 = tpu.matmul %47, %46, %cst_24 {dimension_numbers = #tpu.dot_dimension_numbers<[1], [0], [0], [1], [0, 0, 1, 1], [], []>} : vector<128x32xbf16>, vector<32x32xbf16>, vector<128x32xf32> -> vector<128x32xf32>
    %c0_25 = arith.constant 0 : index
    %c0_26 = arith.constant 0 : index
    %c0_27 = arith.constant 0 : index
    %49 = vector.load %arg6[%c0_25, %c0_26, %c0_27] : memref<3x32x32xbf16, #tpu.memory_space<vmem>>, vector<1x32x32xbf16>
    %50 = vector.shape_cast %49 : vector<1x32x32xbf16> to vector<32x32xbf16>
    %51 = arith.truncf %41 : vector<128x32xf32> to vector<128x32xbf16>
    %cst_28 = arith.constant dense<0.000000e+00> : vector<128x32xf32>
    %52 = tpu.matmul %51, %50, %cst_28 {dimension_numbers = #tpu.dot_dimension_numbers<[1], [0], [0], [1], [0, 0, 1, 1], [], []>} : vector<128x32xbf16>, vector<32x32xbf16>, vector<128x32xf32> -> vector<128x32xf32>
    %53 = arith.addf %48, %52 : vector<128x32xf32>
    %c0_29 = arith.constant 0 : index
    %c0_30 = arith.constant 0 : index
    %c0_31 = arith.constant 0 : index
    %54 = vector.load %arg7[%c0_29, %c0_30, %c0_31] : memref<3x1x32xf32, #tpu.memory_space<vmem>>, vector<1x1x32xf32>
    %55 = vector.shape_cast %54 : vector<1x1x32xf32> to vector<1x32xf32>
    %56 = vector.broadcast %55 : vector<1x32xf32> to vector<128x32xf32>
    %57 = arith.addf %53, %56 : vector<128x32xf32>
    %cst_32 = arith.constant 0.000000e+00 : f32
    %58 = vector.broadcast %cst_32 : f32 to vector<128x32xf32>
    %59 = arith.maximumf %57, %58 : vector<128x32xf32>
    %60 = arith.truncf %59 : vector<128x32xf32> to vector<128x32xbf16>
    %c0_33 = arith.constant 0 : index
    %c0_34 = arith.constant 0 : index
    %c0_35 = arith.constant 0 : index
    %61 = vector.load %arg8[%c0_33, %c0_34, %c0_35] : memref<3x32x32xbf16, #tpu.memory_space<vmem>>, vector<1x32x32xbf16>
    %62 = vector.shape_cast %61 : vector<1x32x32xbf16> to vector<32x32xbf16>
    %cst_36 = arith.constant dense<0.000000e+00> : vector<128x32xf32>
    %63 = tpu.matmul %60, %62, %cst_36 {dimension_numbers = #tpu.dot_dimension_numbers<[1], [0], [0], [1], [0, 0, 1, 1], [], []>} : vector<128x32xbf16>, vector<32x32xbf16>, vector<128x32xf32> -> vector<128x32xf32>
    %64 = arith.addf %36, %63 : vector<128x32xf32>
    %c0_37 = arith.constant 0 : index
    %c0_38 = arith.constant 0 : index
    %c0_39 = arith.constant 0 : index
    %65 = vector.load %arg9[%c0_37, %c0_38, %c0_39] : memref<3x1x32xf32, #tpu.memory_space<vmem>>, vector<1x1x32xf32>
    %66 = vector.shape_cast %65 : vector<1x1x32xf32> to vector<1x32xf32>
    %67 = vector.broadcast %66 : vector<1x32xf32> to vector<128x32xf32>
    %68 = arith.addf %64, %67 : vector<128x32xf32>
    %c0_40 = arith.constant 0 : index
    %c0_41 = arith.constant 0 : index
    %c0_42 = arith.constant 0 : index
    %69 = vector.load %arg10[%c0_40, %c0_41, %c0_42] : memref<3x32x32xbf16, #tpu.memory_space<vmem>>, vector<1x32x32xbf16>
    %70 = vector.shape_cast %69 : vector<1x32x32xbf16> to vector<32x32xbf16>
    %cst_43 = arith.constant dense<0.000000e+00> : vector<128x32xf32>
    %71 = tpu.matmul %60, %70, %cst_43 {dimension_numbers = #tpu.dot_dimension_numbers<[1], [0], [0], [1], [0, 0, 1, 1], [], []>} : vector<128x32xbf16>, vector<32x32xbf16>, vector<128x32xf32> -> vector<128x32xf32>
    %c0_44 = arith.constant 0 : index
    %c0_45 = arith.constant 0 : index
    %c0_46 = arith.constant 0 : index
    %72 = vector.load %arg11[%c0_44, %c0_45, %c0_46] : memref<3x1x32xf32, #tpu.memory_space<vmem>>, vector<1x1x32xf32>
    %73 = vector.shape_cast %72 : vector<1x1x32xf32> to vector<1x32xf32>
    %74 = vector.broadcast %73 : vector<1x32xf32> to vector<128x32xf32>
    %75 = arith.addf %71, %74 : vector<128x32xf32>
    %76 = arith.addf %75, %35 : vector<128x32xf32>
    %77 = vector.extract_strided_slice %24 {offsets = [0, 2, 0], sizes = [8, 1, 32], strides = [1, 1, 1]} : vector<8x7x32xf32> to vector<8x1x32xf32>
    %78 = vector.shape_cast %76 : vector<128x32xf32> to vector<8x16x32xf32>
    %79 = vector.broadcast %77 : vector<8x1x32xf32> to vector<8x16x32xf32>
    %80 = arith.mulf %78, %79 : vector<8x16x32xf32>
    %81 = vector.shape_cast %80 : vector<8x16x32xf32> to vector<128x32xf32>
    %cst_47 = arith.constant 0.000000e+00 : f32
    %82 = vector.broadcast %cst_47 : f32 to vector<2x32xf32>
    %83 = vector.extract_strided_slice %81 {offsets = [0, 0], sizes = [126, 32], strides = [1, 1]} : vector<128x32xf32> to vector<126x32xf32>
    %84 = tpu.concatenate %82, %83 in 0 : vector<2x32xf32>, vector<126x32xf32> -> vector<128x32xf32>
    %c1 = arith.constant 1 : index
    %c0_48 = arith.constant 0 : index
    %c0_49 = arith.constant 0 : index
    %85 = vector.load %arg5[%c1, %c0_48, %c0_49] : memref<3x32x32xbf16, #tpu.memory_space<vmem>>, vector<1x32x32xbf16>
    %86 = vector.shape_cast %85 : vector<1x32x32xbf16> to vector<32x32xbf16>
    %87 = arith.truncf %84 : vector<128x32xf32> to vector<128x32xbf16>
    %cst_50 = arith.constant dense<0.000000e+00> : vector<128x32xf32>
    %88 = tpu.matmul %87, %86, %cst_50 {dimension_numbers = #tpu.dot_dimension_numbers<[1], [0], [0], [1], [0, 0, 1, 1], [], []>} : vector<128x32xbf16>, vector<32x32xbf16>, vector<128x32xf32> -> vector<128x32xf32>
    %c1_51 = arith.constant 1 : index
    %c0_52 = arith.constant 0 : index
    %c0_53 = arith.constant 0 : index
    %89 = vector.load %arg6[%c1_51, %c0_52, %c0_53] : memref<3x32x32xbf16, #tpu.memory_space<vmem>>, vector<1x32x32xbf16>
    %90 = vector.shape_cast %89 : vector<1x32x32xbf16> to vector<32x32xbf16>
    %91 = arith.truncf %81 : vector<128x32xf32> to vector<128x32xbf16>
    %cst_54 = arith.constant dense<0.000000e+00> : vector<128x32xf32>
    %92 = tpu.matmul %91, %90, %cst_54 {dimension_numbers = #tpu.dot_dimension_numbers<[1], [0], [0], [1], [0, 0, 1, 1], [], []>} : vector<128x32xbf16>, vector<32x32xbf16>, vector<128x32xf32> -> vector<128x32xf32>
    %93 = arith.addf %88, %92 : vector<128x32xf32>
    %c1_55 = arith.constant 1 : index
    %c0_56 = arith.constant 0 : index
    %c0_57 = arith.constant 0 : index
    %94 = vector.load %arg7[%c1_55, %c0_56, %c0_57] : memref<3x1x32xf32, #tpu.memory_space<vmem>>, vector<1x1x32xf32>
    %95 = vector.shape_cast %94 : vector<1x1x32xf32> to vector<1x32xf32>
    %96 = vector.broadcast %95 : vector<1x32xf32> to vector<128x32xf32>
    %97 = arith.addf %93, %96 : vector<128x32xf32>
    %cst_58 = arith.constant 0.000000e+00 : f32
    %98 = vector.broadcast %cst_58 : f32 to vector<128x32xf32>
    %99 = arith.maximumf %97, %98 : vector<128x32xf32>
    %100 = arith.truncf %99 : vector<128x32xf32> to vector<128x32xbf16>
    %c1_59 = arith.constant 1 : index
    %c0_60 = arith.constant 0 : index
    %c0_61 = arith.constant 0 : index
    %101 = vector.load %arg8[%c1_59, %c0_60, %c0_61] : memref<3x32x32xbf16, #tpu.memory_space<vmem>>, vector<1x32x32xbf16>
    %102 = vector.shape_cast %101 : vector<1x32x32xbf16> to vector<32x32xbf16>
    %cst_62 = arith.constant dense<0.000000e+00> : vector<128x32xf32>
    %103 = tpu.matmul %100, %102, %cst_62 {dimension_numbers = #tpu.dot_dimension_numbers<[1], [0], [0], [1], [0, 0, 1, 1], [], []>} : vector<128x32xbf16>, vector<32x32xbf16>, vector<128x32xf32> -> vector<128x32xf32>
    %104 = arith.addf %68, %103 : vector<128x32xf32>
    %c1_63 = arith.constant 1 : index
    %c0_64 = arith.constant 0 : index
    %c0_65 = arith.constant 0 : index
    %105 = vector.load %arg9[%c1_63, %c0_64, %c0_65] : memref<3x1x32xf32, #tpu.memory_space<vmem>>, vector<1x1x32xf32>
    %106 = vector.shape_cast %105 : vector<1x1x32xf32> to vector<1x32xf32>
    %107 = vector.broadcast %106 : vector<1x32xf32> to vector<128x32xf32>
    %108 = arith.addf %104, %107 : vector<128x32xf32>
    %c1_66 = arith.constant 1 : index
    %c0_67 = arith.constant 0 : index
    %c0_68 = arith.constant 0 : index
    %109 = vector.load %arg10[%c1_66, %c0_67, %c0_68] : memref<3x32x32xbf16, #tpu.memory_space<vmem>>, vector<1x32x32xbf16>
    %110 = vector.shape_cast %109 : vector<1x32x32xbf16> to vector<32x32xbf16>
    %cst_69 = arith.constant dense<0.000000e+00> : vector<128x32xf32>
    %111 = tpu.matmul %100, %110, %cst_69 {dimension_numbers = #tpu.dot_dimension_numbers<[1], [0], [0], [1], [0, 0, 1, 1], [], []>} : vector<128x32xbf16>, vector<32x32xbf16>, vector<128x32xf32> -> vector<128x32xf32>
    %c1_70 = arith.constant 1 : index
    %c0_71 = arith.constant 0 : index
    %c0_72 = arith.constant 0 : index
    %112 = vector.load %arg11[%c1_70, %c0_71, %c0_72] : memref<3x1x32xf32, #tpu.memory_space<vmem>>, vector<1x1x32xf32>
    %113 = vector.shape_cast %112 : vector<1x1x32xf32> to vector<1x32xf32>
    %114 = vector.broadcast %113 : vector<1x32xf32> to vector<128x32xf32>
    %115 = arith.addf %111, %114 : vector<128x32xf32>
    %116 = arith.addf %115, %76 : vector<128x32xf32>
    %117 = vector.extract_strided_slice %24 {offsets = [0, 3, 0], sizes = [8, 1, 32], strides = [1, 1, 1]} : vector<8x7x32xf32> to vector<8x1x32xf32>
    %118 = vector.shape_cast %116 : vector<128x32xf32> to vector<8x16x32xf32>
    %119 = vector.broadcast %117 : vector<8x1x32xf32> to vector<8x16x32xf32>
    %120 = arith.mulf %118, %119 : vector<8x16x32xf32>
    %121 = vector.shape_cast %120 : vector<8x16x32xf32> to vector<128x32xf32>
    %cst_73 = arith.constant 0.000000e+00 : f32
    %122 = vector.broadcast %cst_73 : f32 to vector<4x32xf32>
    %123 = vector.extract_strided_slice %121 {offsets = [0, 0], sizes = [124, 32], strides = [1, 1]} : vector<128x32xf32> to vector<124x32xf32>
    %124 = tpu.concatenate %122, %123 in 0 : vector<4x32xf32>, vector<124x32xf32> -> vector<128x32xf32>
    %c2 = arith.constant 2 : index
    %c0_74 = arith.constant 0 : index
    %c0_75 = arith.constant 0 : index
    %125 = vector.load %arg5[%c2, %c0_74, %c0_75] : memref<3x32x32xbf16, #tpu.memory_space<vmem>>, vector<1x32x32xbf16>
    %126 = vector.shape_cast %125 : vector<1x32x32xbf16> to vector<32x32xbf16>
    %127 = arith.truncf %124 : vector<128x32xf32> to vector<128x32xbf16>
    %cst_76 = arith.constant dense<0.000000e+00> : vector<128x32xf32>
    %128 = tpu.matmul %127, %126, %cst_76 {dimension_numbers = #tpu.dot_dimension_numbers<[1], [0], [0], [1], [0, 0, 1, 1], [], []>} : vector<128x32xbf16>, vector<32x32xbf16>, vector<128x32xf32> -> vector<128x32xf32>
    %c2_77 = arith.constant 2 : index
    %c0_78 = arith.constant 0 : index
    %c0_79 = arith.constant 0 : index
    %129 = vector.load %arg6[%c2_77, %c0_78, %c0_79] : memref<3x32x32xbf16, #tpu.memory_space<vmem>>, vector<1x32x32xbf16>
    %130 = vector.shape_cast %129 : vector<1x32x32xbf16> to vector<32x32xbf16>
    %131 = arith.truncf %121 : vector<128x32xf32> to vector<128x32xbf16>
    %cst_80 = arith.constant dense<0.000000e+00> : vector<128x32xf32>
    %132 = tpu.matmul %131, %130, %cst_80 {dimension_numbers = #tpu.dot_dimension_numbers<[1], [0], [0], [1], [0, 0, 1, 1], [], []>} : vector<128x32xbf16>, vector<32x32xbf16>, vector<128x32xf32> -> vector<128x32xf32>
    %133 = arith.addf %128, %132 : vector<128x32xf32>
    %c2_81 = arith.constant 2 : index
    %c0_82 = arith.constant 0 : index
    %c0_83 = arith.constant 0 : index
    %134 = vector.load %arg7[%c2_81, %c0_82, %c0_83] : memref<3x1x32xf32, #tpu.memory_space<vmem>>, vector<1x1x32xf32>
    %135 = vector.shape_cast %134 : vector<1x1x32xf32> to vector<1x32xf32>
    %136 = vector.broadcast %135 : vector<1x32xf32> to vector<128x32xf32>
    %137 = arith.addf %133, %136 : vector<128x32xf32>
    %cst_84 = arith.constant 0.000000e+00 : f32
    %138 = vector.broadcast %cst_84 : f32 to vector<128x32xf32>
    %139 = arith.maximumf %137, %138 : vector<128x32xf32>
    %140 = arith.truncf %139 : vector<128x32xf32> to vector<128x32xbf16>
    %c2_85 = arith.constant 2 : index
    %c0_86 = arith.constant 0 : index
    %c0_87 = arith.constant 0 : index
    %141 = vector.load %arg8[%c2_85, %c0_86, %c0_87] : memref<3x32x32xbf16, #tpu.memory_space<vmem>>, vector<1x32x32xbf16>
    %142 = vector.shape_cast %141 : vector<1x32x32xbf16> to vector<32x32xbf16>
    %cst_88 = arith.constant dense<0.000000e+00> : vector<128x32xf32>
    %143 = tpu.matmul %140, %142, %cst_88 {dimension_numbers = #tpu.dot_dimension_numbers<[1], [0], [0], [1], [0, 0, 1, 1], [], []>} : vector<128x32xbf16>, vector<32x32xbf16>, vector<128x32xf32> -> vector<128x32xf32>
    %144 = arith.addf %108, %143 : vector<128x32xf32>
    %c2_89 = arith.constant 2 : index
    %c0_90 = arith.constant 0 : index
    %c0_91 = arith.constant 0 : index
    %145 = vector.load %arg9[%c2_89, %c0_90, %c0_91] : memref<3x1x32xf32, #tpu.memory_space<vmem>>, vector<1x1x32xf32>
    %146 = vector.shape_cast %145 : vector<1x1x32xf32> to vector<1x32xf32>
    %147 = vector.broadcast %146 : vector<1x32xf32> to vector<128x32xf32>
    %148 = arith.addf %144, %147 : vector<128x32xf32>
    %149 = vector.extract_strided_slice %24 {offsets = [0, 4, 0], sizes = [8, 1, 32], strides = [1, 1, 1]} : vector<8x7x32xf32> to vector<8x1x32xf32>
    %150 = vector.shape_cast %148 : vector<128x32xf32> to vector<8x16x32xf32>
    %151 = vector.broadcast %149 : vector<8x1x32xf32> to vector<8x16x32xf32>
    %152 = arith.mulf %150, %151 : vector<8x16x32xf32>
    %153 = vector.shape_cast %152 : vector<8x16x32xf32> to vector<128x32xf32>
    %cst_92 = arith.constant 0.000000e+00 : f32
    %154 = vector.broadcast %cst_92 : f32 to vector<128x32xf32>
    %155 = arith.maximumf %153, %154 : vector<128x32xf32>
    %c0_93 = arith.constant 0 : index
    %c0_94 = arith.constant 0 : index
    %156 = vector.load %arg12[%c0_93, %c0_94] : memref<32x32xbf16, #tpu.memory_space<vmem>>, vector<32x32xbf16>
    %157 = arith.truncf %155 : vector<128x32xf32> to vector<128x32xbf16>
    %cst_95 = arith.constant dense<0.000000e+00> : vector<128x32xf32>
    %158 = tpu.matmul %157, %156, %cst_95 {dimension_numbers = #tpu.dot_dimension_numbers<[1], [0], [0], [1], [0, 0, 1, 1], [], []>} : vector<128x32xbf16>, vector<32x32xbf16>, vector<128x32xf32> -> vector<128x32xf32>
    %c0_96 = arith.constant 0 : index
    %c0_97 = arith.constant 0 : index
    %159 = vector.load %arg13[%c0_96, %c0_97] : memref<1x32xf32, #tpu.memory_space<vmem>>, vector<1x32xf32>
    %160 = vector.broadcast %159 : vector<1x32xf32> to vector<128x32xf32>
    %161 = arith.addf %158, %160 : vector<128x32xf32>
    %cst_98 = arith.constant 0.000000e+00 : f32
    %162 = vector.broadcast %cst_98 : f32 to vector<128x32xf32>
    %163 = arith.maximumf %161, %162 : vector<128x32xf32>
    %164 = vector.extract_strided_slice %24 {offsets = [0, 5, 0], sizes = [8, 1, 32], strides = [1, 1, 1]} : vector<8x7x32xf32> to vector<8x1x32xf32>
    %165 = vector.extract_strided_slice %24 {offsets = [0, 6, 0], sizes = [8, 1, 32], strides = [1, 1, 1]} : vector<8x7x32xf32> to vector<8x1x32xf32>
    %166 = vector.shape_cast %163 : vector<128x32xf32> to vector<8x16x32xf32>
    %167 = vector.broadcast %164 : vector<8x1x32xf32> to vector<8x16x32xf32>
    %168 = arith.mulf %166, %167 : vector<8x16x32xf32>
    %169 = vector.shape_cast %168 : vector<8x16x32xf32> to vector<128x32xf32>
    %c0_99 = arith.constant 0 : index
    %c0_100 = arith.constant 0 : index
    %170 = vector.load %arg14[%c0_99, %c0_100] : memref<32x16xbf16, #tpu.memory_space<vmem>>, vector<32x16xbf16>
    %171 = arith.truncf %169 : vector<128x32xf32> to vector<128x32xbf16>
    %cst_101 = arith.constant dense<0.000000e+00> : vector<128x16xf32>
    %172 = tpu.matmul %171, %170, %cst_101 {dimension_numbers = #tpu.dot_dimension_numbers<[1], [0], [0], [1], [0, 0, 1, 1], [], []>} : vector<128x32xbf16>, vector<32x16xbf16>, vector<128x16xf32> -> vector<128x16xf32>
    %c0_102 = arith.constant 0 : index
    %c0_103 = arith.constant 0 : index
    %173 = vector.load %arg15[%c0_102, %c0_103] : memref<1x16xf32, #tpu.memory_space<vmem>>, vector<1x16xf32>
    %174 = vector.broadcast %173 : vector<1x16xf32> to vector<128x16xf32>
    %175 = arith.addf %172, %174 : vector<128x16xf32>
    %176 = vector.broadcast %165 : vector<8x1x32xf32> to vector<8x16x32xf32>
    %177 = arith.mulf %166, %176 : vector<8x16x32xf32>
    %178 = vector.shape_cast %177 : vector<8x16x32xf32> to vector<128x32xf32>
    %c0_104 = arith.constant 0 : index
    %c0_105 = arith.constant 0 : index
    %179 = vector.load %arg16[%c0_104, %c0_105] : memref<32x16xbf16, #tpu.memory_space<vmem>>, vector<32x16xbf16>
    %180 = arith.truncf %178 : vector<128x32xf32> to vector<128x32xbf16>
    %cst_106 = arith.constant dense<0.000000e+00> : vector<128x16xf32>
    %181 = tpu.matmul %180, %179, %cst_106 {dimension_numbers = #tpu.dot_dimension_numbers<[1], [0], [0], [1], [0, 0, 1, 1], [], []>} : vector<128x32xbf16>, vector<32x16xbf16>, vector<128x16xf32> -> vector<128x16xf32>
    %c0_107 = arith.constant 0 : index
    %c0_108 = arith.constant 0 : index
    %182 = vector.load %arg17[%c0_107, %c0_108] : memref<1x16xf32, #tpu.memory_space<vmem>>, vector<1x16xf32>
    %183 = vector.broadcast %182 : vector<1x16xf32> to vector<128x16xf32>
    %184 = arith.addf %181, %183 : vector<128x16xf32>
    %185 = tpu.iota {dimensions = array<i32: 0>} : vector<8x128xi32>
    %186 = tpu.iota {dimensions = array<i32: 1>} : vector<8x128xi32>
    %c16_i32 = arith.constant 16 : i32
    %187 = vector.broadcast %c16_i32 : i32 to vector<8x128xi32>
    %188 = arith.muli %185, %187 : vector<8x128xi32>
    %c15_i32 = arith.constant 15 : i32
    %189 = vector.broadcast %c15_i32 : i32 to vector<8x128xi32>
    %190 = arith.addi %188, %189 : vector<8x128xi32>
    %191 = arith.cmpi eq, %186, %190 : vector<8x128xi32>
    %192 = arith.extui %191 : vector<8x128xi1> to vector<8x128xi32>
    %193 = arith.sitofp %192 : vector<8x128xi32> to vector<8x128xf32>
    %cst_109 = arith.constant dense<0.000000e+00> : vector<8x16xf32>
    %194 = tpu.matmul %193, %175, %cst_109 {dimension_numbers = #tpu.dot_dimension_numbers<[1], [0], [0], [1], [0, 0, 1, 1], [], []>} : vector<8x128xf32>, vector<128x16xf32>, vector<8x16xf32> -> vector<8x16xf32>
    %c0_110 = arith.constant 0 : index
    %c0_111 = arith.constant 0 : index
    %195 = vector.load %arg18[%c0_110, %c0_111] : memref<8x16xf32, #tpu.memory_space<vmem>>, vector<8x16xf32>
    tpu.vector_store %arg18[%c0_110, %c0_111], %194 {strides = array<i32>} : memref<8x16xf32, #tpu.memory_space<vmem>>, vector<8x16xf32>,
    %cst_112 = arith.constant dense<0.000000e+00> : vector<8x16xf32>
    %196 = tpu.matmul %193, %184, %cst_112 {dimension_numbers = #tpu.dot_dimension_numbers<[1], [0], [0], [1], [0, 0, 1, 1], [], []>} : vector<8x128xf32>, vector<128x16xf32>, vector<8x16xf32> -> vector<8x16xf32>
    %197 = math.exp %196 : vector<8x16xf32>
    %c0_113 = arith.constant 0 : index
    %c0_114 = arith.constant 0 : index
    %198 = vector.load %arg19[%c0_113, %c0_114] : memref<8x16xf32, #tpu.memory_space<vmem>>, vector<8x16xf32>
    tpu.vector_store %arg19[%c0_113, %c0_114], %197 {strides = array<i32>} : memref<8x16xf32, #tpu.memory_space<vmem>>, vector<8x16xf32>,
    return
  }
  func.func @transform_0(%arg0: i32) -> (i32, i32, i32) {
    %c0_i32 = arith.constant 0 : i32
    %c0_i32_0 = arith.constant 0 : i32
    %c0_i32_1 = arith.constant 0 : i32
    return %arg0, %c0_i32, %c0_i32_0 : i32, i32, i32
  }
  func.func @transform_1(%arg0: i32) -> (i32, i32, i32) {
    %c0_i32 = arith.constant 0 : i32
    %c0_i32_0 = arith.constant 0 : i32
    %c0_i32_1 = arith.constant 0 : i32
    return %arg0, %c0_i32, %c0_i32_0 : i32, i32, i32
  }
  func.func @transform_2(%arg0: i32) -> (i32, i32) {
    %c0_i32 = arith.constant 0 : i32
    %c0_i32_0 = arith.constant 0 : i32
    %c0_i32_1 = arith.constant 0 : i32
    return %c0_i32, %c0_i32_0 : i32, i32
  }
  func.func @transform_3(%arg0: i32) -> (i32, i32) {
    %c0_i32 = arith.constant 0 : i32
    %c0_i32_0 = arith.constant 0 : i32
    %c0_i32_1 = arith.constant 0 : i32
    return %c0_i32, %c0_i32_0 : i32, i32
  }
  func.func @transform_4(%arg0: i32) -> (i32, i32, i32) {
    %c0_i32 = arith.constant 0 : i32
    %c0_i32_0 = arith.constant 0 : i32
    %c0_i32_1 = arith.constant 0 : i32
    %c0_i32_2 = arith.constant 0 : i32
    return %c0_i32, %c0_i32_0, %c0_i32_1 : i32, i32, i32
  }
  func.func @transform_5(%arg0: i32) -> (i32, i32, i32) {
    %c0_i32 = arith.constant 0 : i32
    %c0_i32_0 = arith.constant 0 : i32
    %c0_i32_1 = arith.constant 0 : i32
    %c0_i32_2 = arith.constant 0 : i32
    return %c0_i32, %c0_i32_0, %c0_i32_1 : i32, i32, i32
  }
  func.func @transform_6(%arg0: i32) -> (i32, i32, i32) {
    %c0_i32 = arith.constant 0 : i32
    %c0_i32_0 = arith.constant 0 : i32
    %c0_i32_1 = arith.constant 0 : i32
    %c0_i32_2 = arith.constant 0 : i32
    return %c0_i32, %c0_i32_0, %c0_i32_1 : i32, i32, i32
  }
  func.func @transform_7(%arg0: i32) -> (i32, i32, i32) {
    %c0_i32 = arith.constant 0 : i32
    %c0_i32_0 = arith.constant 0 : i32
    %c0_i32_1 = arith.constant 0 : i32
    %c0_i32_2 = arith.constant 0 : i32
    return %c0_i32, %c0_i32_0, %c0_i32_1 : i32, i32, i32
  }
  func.func @transform_8(%arg0: i32) -> (i32, i32, i32) {
    %c0_i32 = arith.constant 0 : i32
    %c0_i32_0 = arith.constant 0 : i32
    %c0_i32_1 = arith.constant 0 : i32
    %c0_i32_2 = arith.constant 0 : i32
    return %c0_i32, %c0_i32_0, %c0_i32_1 : i32, i32, i32
  }
  func.func @transform_9(%arg0: i32) -> (i32, i32, i32) {
    %c0_i32 = arith.constant 0 : i32
    %c0_i32_0 = arith.constant 0 : i32
    %c0_i32_1 = arith.constant 0 : i32
    %c0_i32_2 = arith.constant 0 : i32
    return %c0_i32, %c0_i32_0, %c0_i32_1 : i32, i32, i32
  }
  func.func @transform_10(%arg0: i32) -> (i32, i32, i32) {
    %c0_i32 = arith.constant 0 : i32
    %c0_i32_0 = arith.constant 0 : i32
    %c0_i32_1 = arith.constant 0 : i32
    %c0_i32_2 = arith.constant 0 : i32
    return %c0_i32, %c0_i32_0, %c0_i32_1 : i32, i32, i32
  }
  func.func @transform_11(%arg0: i32) -> (i32, i32) {
    %c0_i32 = arith.constant 0 : i32
    %c0_i32_0 = arith.constant 0 : i32
    %c0_i32_1 = arith.constant 0 : i32
    return %c0_i32, %c0_i32_0 : i32, i32
  }
  func.func @transform_12(%arg0: i32) -> (i32, i32) {
    %c0_i32 = arith.constant 0 : i32
    %c0_i32_0 = arith.constant 0 : i32
    %c0_i32_1 = arith.constant 0 : i32
    return %c0_i32, %c0_i32_0 : i32, i32
  }
  func.func @transform_13(%arg0: i32) -> (i32, i32) {
    %c0_i32 = arith.constant 0 : i32
    %c0_i32_0 = arith.constant 0 : i32
    %c0_i32_1 = arith.constant 0 : i32
    return %c0_i32, %c0_i32_0 : i32, i32
  }
  func.func @transform_14(%arg0: i32) -> (i32, i32) {
    %c0_i32 = arith.constant 0 : i32
    %c0_i32_0 = arith.constant 0 : i32
    %c0_i32_1 = arith.constant 0 : i32
    return %c0_i32, %c0_i32_0 : i32, i32
  }
  func.func @transform_15(%arg0: i32) -> (i32, i32) {
    %c0_i32 = arith.constant 0 : i32
    %c0_i32_0 = arith.constant 0 : i32
    %c0_i32_1 = arith.constant 0 : i32
    return %c0_i32, %c0_i32_0 : i32, i32
  }
  func.func @transform_16(%arg0: i32) -> (i32, i32) {
    %c0_i32 = arith.constant 0 : i32
    %c0_i32_0 = arith.constant 0 : i32
    %c0_i32_1 = arith.constant 0 : i32
    return %c0_i32, %c0_i32_0 : i32, i32
  }
  func.func @transform_17(%arg0: i32) -> (i32, i32) {
    %c0_i32 = arith.constant 0 : i32
    %c0_i32_0 = arith.constant 0 : i32
    return %arg0, %c0_i32 : i32, i32
  }
  func.func @transform_18(%arg0: i32) -> (i32, i32) {
    %c0_i32 = arith.constant 0 : i32
    %c0_i32_0 = arith.constant 0 : i32
    return %arg0, %c0_i32 : i32, i32
  }
}

</mosaic_0001>

<bundles_post_ra>
// kernel: wavenet_forward.1
= control target key start
LH: loop header
LB: loop body
LE: loop exit
PB: predicated region body
PF: predicated region fallthrough
CT: control target
= control target key end

     0   :  { %s3581_s27 = smov 0   ;;  %s4535_s0 = inlined_call_operand.vmem [shape: f32[16,16,4], index: 0, kind: input, shape index: {}]   ;;  %s4536_s1 = inlined_call_operand.vmem [shape: f32[16,7,32], index: 1, kind: input, shape index: {}]   ;;  %s4537_s2 = inlined_call_operand.vmem [shape: bf16[4,32], index: 2, kind: input, shape index: {}]   ;;  %s4538_s3 = inlined_call_operand.vmem [shape: f32[1,32], index: 3, kind: input, shape index: {}]   ;;  %s4539_s4 = inlined_call_operand.vmem [shape: bf16[3,32,32], index: 4, kind: input, shape index: {}]   ;;  %s4540_s5 = inlined_call_operand.vmem [shape: bf16[3,32,32], index: 5, kind: input, shape index: {}]   ;;  %s4541_s6 = inlined_call_operand.vmem [shape: f32[3,1,32], index: 6, kind: input, shape index: {}]   ;;  %s4542_s7 = inlined_call_operand.vmem [shape: bf16[3,32,32], index: 7, kind: input, shape index: {}]   ;;  %s4543_s8 = inlined_call_operand.vmem [shape: f32[3,1,32], index: 8, kind: input, shape index: {}]   ;;  %s4544_s9 = inlined_call_operand.vmem [shape: bf16[3,32,32], index: 9, kind: input, shape index: {}]   ;;  %s4545_s10 = inlined_call_operand.vmem [shape: f32[3,1,32], index: 10, kind: input, shape index: {}]   ;;  %s4546_s11 = inlined_call_operand.vmem [shape: bf16[32,32], index: 11, kind: input, shape index: {}]   ;;  %s4547_s12 = inlined_call_operand.vmem [shape: f32[1,32], index: 12, kind: input, shape index: {}]   ;;  %s4548_s13 = inlined_call_operand.vmem [shape: bf16[32,16], index: 13, kind: input, shape index: {}]   ;;  %s4549_s14 = inlined_call_operand.vmem [shape: f32[1,16], index: 14, kind: input, shape index: {}]   ;;  %s4550_s15 = inlined_call_operand.vmem [shape: bf16[32,16], index: 15, kind: input, shape index: {}]   ;;  %s4551_s16 = inlined_call_operand.vmem [shape: f32[1,16], index: 16, kind: input, shape index: {}]   ;;  %s4552_s17 = inlined_call_operand.vmem [shape: f32[16,16], index: 17, kind: output, shape index: {0}]   ;;  %s4553_s18 = inlined_call_operand.vmem [shape: f32[16,16], index: 18, kind: output, shape index: {1}]  }
   0x1   :  { %4554 = sst [smem:[#allocation2_spill]] %s4535_s0 }
   0x2   :  { %4555 = sst [smem:[#allocation3_spill]] %s4536_s1 }
   0x3   :  { %4556 = sst [smem:[#allocation4_spill]] %s4537_s2 }
   0x4 LB: > { %s3587_s28 = sadd.s32 4294967295, %s3482_s27   ;;  %p3074_p0 = scmp.ge.s32.totalorder %s3482_s27, 1  ;;  %s3482_s27 = sphi %s3581_s27, %s29_s27  }
   0x5   : > { %p528_p1 = scmp.lt.s32.totalorder %s3482_s27, 3 }
   0x7   : > { %p529_p2 = pnand %p3074_p0, %p528_p1 }
   0x8   : > { %s4557_s0 = sld [smem:[#allocation4_spill]] (!%p529_p2)  ;;  %s3075_s19 = sshll.u32 (!%p529_p2), %s3587_s28, 3 }
   0x9   : > { %532 = sbr.rel (%p529_p2) target bundleno = 1697 (0x6a1), region = 88  ;;  %p592_p3 = scmp.lt.s32.totalorder (!%p529_p2), %s3075_s19, 15 }
   0xa   : > { %s4558_s22 = sld [smem:[#allocation3_spill]] (!%p529_p2)  ;;  %p604_p4 = scmp.lt.s32.totalorder (!%p529_p2), %s3587_s28, 1 }
   0xb   : > { %s4563_s26 = sld [smem:[#allocation2_spill]] (!%p529_p2) }
   0xe   : > { %v916_v0 = vld [vmem:[%s4557_s0] sm:$0x3]  ;;  %vm954_vm0 = vcmask 1041408   ;;  %v3484_v2 = vmov 0.1   ;;  %s4571_s19 = smov (!%p592_p3, %s3075_s19), 15 }
   0xf   : > { %v956_v1 = vsel %vm954_vm0, %v916_v0, 0  ;;  %3408 = vrcp.f32 %v3484_v2  ;;  %s3079_s1 = sshll.u32 %s4571_s19, 3  ;;  %s3352_s23 = sshll.u32 %s4571_s19, 4  ;;  %vm929_vm10 = vcmask 31744  }
  0x10   : > { %965 = vmatpush.bf16.msra.mxu0 %v956_v1  ;;  %3381 = vmatpush.bf16.msra.mxu3 %v956_v1  ;;  %s3602_s2 = scalar_lea.vmem %s4558_s22, %s3079_s1  ;;  %s4573_s28 = smov (!%p604_p4, %s3587_s28), 1 }
  0x11   : > { %v613_v4 = vld [vmem:[%s3602_s2] sm:$0x7f]  ;;  %v614_v5 = vld [vmem:[%s3602_s2 + $0x8] sm:$0x7f]  ;;  %v615_v6 = vld [vmem:[%s3602_s2 + $0x10] sm:$0x7f]  ;;  %s3637_s29 = scalar_lea.vmem %s4563_s26, %s3352_s23 }
  0x12   : > { %v621_v7 = vadd.f32 1e-07, %v613_v4  ;;  %v653_v8 = vsub.f32 1.0, %v613_v4  ;;  %v622_v10 = vadd.f32 1e-07, %v614_v5  ;;  %v654_v11 = vsub.f32 1.0, %v614_v5 }
  0x13   : > { %v655_v12 = vsub.f32 1.0, %v615_v6  ;;  %v623_v15 = vadd.f32 1e-07, %v615_v6  ;;  %v616_v39 = vld [vmem:[%s3602_s2 + $0x18] sm:$0x7f]  ;;  %s3080_s19 = sshll.u32 %s4573_s28, 3 }
  0x14   : > { %3410 = vlog2.f32 %v621_v7  ;;  %v661_v13 = vadd.f32 1e-07, %v653_v8  ;;  %v662_v16 = vadd.f32 1e-07, %v654_v11  ;;  %v624_v41 = vadd.f32 1e-07, %v616_v39  ;;  %s607_s21 = scalar_lea.vmem %s4552_s17, %s3080_s19  ;;  %s611_s23 = scalar_lea.vmem %s4553_s18, %s3080_s19 }
  0x15   : > { %v3409_v3 = vpop.eup %3408  ;;  %3412 = vlog2.f32 %v622_v10  ;;  %v663_v17 = vadd.f32 1e-07, %v655_v12  ;;  %v656_v42 = vsub.f32 1.0, %v616_v39  ;;  %v617_v63 = vld [vmem:[%s3602_s2 + $0x20] sm:$0x7f] }
  0x16   : > { %v694_v9 = vmul.f32 0.1, %v3409_v3  ;;  %3414 = vlog2.f32 %v661_v13  ;;  %vm698_vm1 = vweird.f32 %v3409_v3  ;;  %v625_v2 = vadd.f32 1e-07, %v617_v63 }
  0x17   : > { %3416 = vlog2.f32 %v662_v16  ;;  %v664_v46 = vadd.f32 1e-07, %v656_v42  ;;  %v618_v42 = vld [vmem:[%s3602_s2 + $0x28] sm:$0x7f] }
  0x18   : > { %v695_v14 = vsub.f32 1.0, %v694_v9  ;;  %3418 = vlog2.f32 %v623_v15 }
  0x19   : > { %3420 = vlog2.f32 %v663_v17 }
  0x1a   : > { %v696_v18 = vmul.f32 %v3409_v3, %v695_v14  ;;  %v3411_v19 = vpop.eup %3410  ;;  %3422 = vlog2.f32 %v624_v41 }
  0x1b   : > { %v3413_v21 = vpop.eup %3412  ;;  %v630_v22 = vmul.f32 0.6931472, %v3411_v19  ;;  %3424 = vlog2.f32 %v664_v46 }
  0x1c   : > { %v697_v20 = vadd.f32 %v3409_v3, %v696_v18  ;;  %v3415_v23 = vpop.eup %3414  ;;  %v632_v24 = vmul.f32 0.6931472, %v3413_v21 }
  0x1d   : > { %v3417_v25 = vpop.eup %3416  ;;  %v645_v26 = vadd.f32 -2.1972237, %v630_v22  ;;  %v670_v27 = vmul.f32 0.6931472, %v3415_v23 }
  0x1e   : > { %v3419_v28 = vpop.eup %3418  ;;  %v3607_v29 = vsel %vm698_vm1, %v3409_v3, %v697_v20  ;;  %v646_v30 = vadd.f32 -2.1972237, %v632_v24  ;;  %v672_v31 = vmul.f32 0.6931472, %v3417_v25  ;;  %v657_v3 = vsub.f32 1.0, %v617_v63 }
  0x1f   : > { %v3421_v32 = vpop.eup %3420  ;;  %v685_v33 = vsub.f32 %v645_v26, %v670_v27  ;;  %v634_v34 = vmul.f32 0.6931472, %v3419_v28 }
  0x20   : > { %v686_v35 = vsub.f32 %v646_v30, %v672_v31  ;;  %v674_v36 = vmul.f32 0.6931472, %v3421_v32  ;;  %v3423_v52 = vpop.eup %3422  ;;  %v665_v5 = vadd.f32 1e-07, %v657_v3  ;;  %v620_v31 = vld [vmem:[%s3602_s2 + $0x38] sm:$0x7f] }
  0x21   : > { %v700_v37 = vmul.f32 %v3607_v29, %v685_v33  ;;  %v647_v38 = vadd.f32 -2.1972237, %v634_v34  ;;  %v636_v53 = vmul.f32 0.6931472, %v3423_v52  ;;  %v3425_v54 = vpop.eup %3424 }
  0x22   : > { %v701_v40 = vmul.f32 %v3607_v29, %v686_v35  ;;  %v676_v57 = vmul.f32 0.6931472, %v3425_v54 }
  0x23   : > { %v708_v43 = vsub.f32 0.0, %v700_v37  ;;  %v687_v44 = vsub.f32 %v647_v38, %v674_v36  ;;  %v648_v56 = vadd.f32 -2.1972237, %v636_v53  ;;  %v628_v37 = vadd.f32 1e-07, %v620_v31 }
  0x24   : > { %v709_v45 = vsub.f32 0.0, %v701_v40  ;;  %v660_v38 = vsub.f32 1.0, %v620_v31 }
  0x25   : > { %v716_v47 = vmul.f32 1.442695, %v708_v43  ;;  %v702_v48 = vmul.f32 %v3607_v29, %v687_v44  ;;  %v688_v61 = vsub.f32 %v648_v56, %v676_v57 }
  0x26   : > { %v718_v49 = vmul.f32 1.442695, %v709_v45  ;;  %v668_v45 = vadd.f32 1e-07, %v660_v38 }
  0x27   : > { %3426 = vpow2.f32 %v716_v47  ;;  %v710_v50 = vsub.f32 0.0, %v702_v48  ;;  %v703_v1 = vmul.f32 %v3607_v29, %v688_v61  ;;  %v626_v47 = vadd.f32 1e-07, %v618_v42 }
  0x28   : > { %3428 = vpow2.f32 %v718_v49  ;;  %v658_v48 = vsub.f32 1.0, %v618_v42  ;;  %v876_v49 = vld [vmem:[%s3637_s29] sm:$0xff] }
  0x29   : > { %v720_v51 = vmul.f32 1.442695, %v710_v50  ;;  %v711_v4 = vsub.f32 0.0, %v703_v1  ;;  %v877_v50 = vld [vmem:[%s3637_s29 + $0x8] sm:$0xff] }
  0x2a   : > { %v666_v54 = vadd.f32 1e-07, %v658_v48 }
  0x2b   : > { %3430 = vpow2.f32 %v720_v51  ;;  %v722_v7 = vmul.f32 1.442695, %v711_v4 }
  0x2d   : > { %v3427_v55 = vpop.eup %3426 }
  0x2e   : > { %v3429_v58 = vpop.eup %3428  ;;  %v732_v59 = vadd.f32 1.0, %v3427_v55 }
  0x2f   : > { %v733_v60 = vadd.f32 1.0, %v3429_v58 }
  0x30   : > { %3432 = vrcp.f32 %v732_v59  ;;  %vm745_vm2 = vweird.f32 %v732_v59  ;;  %v751_v10 = vand.u32 2147483648, %v732_v59  ;;  %v749_v13 = vand.u32 2147483647, %v732_v59 }
  0x31   : > { %v3431_v62 = vpop.eup %3430  ;;  %3434 = vrcp.f32 %v733_v60  ;;  %vm760_vm4 = vweird.f32 %v733_v60  ;;  %v766_v21 = vand.u32 2147483648, %v733_v60  ;;  %v764_v25 = vand.u32 2147483647, %v733_v60 }
  0x32   : > { %v3614_v0 = vadd.f32 1.0, %v3431_v62  ;;  %v752_v19 = vor.u32 1.1754944e-38, %v751_v10  ;;  %vm750_vm7 = vcmp.eq.f32.partialorder %v749_v13, 8.507059e+37 }
  0x33   : > { %v767_v36 = vor.u32 1.1754944e-38, %v766_v21  ;;  %vm765_vm9 = vcmp.eq.f32.partialorder %v764_v25, 8.507059e+37  ;;  %v619_v25 = vld [vmem:[%s3602_s2 + $0x30] sm:$0x7f] }
  0x34   : > { %3436 = vrcp.f32 %v3614_v0  ;;  %vm775_vm11 = vweird.f32 %v3614_v0  ;;  %v781_v3 = vand.u32 2147483648, %v3614_v0  ;;  %v659_v28 = vsub.f32 1.0, %v619_v25 }
  0x35   : > { %3438 = vlog2.f32 %v625_v2  ;;  %v779_v2 = vand.u32 2147483647, %v3614_v0 }
  0x36   : > { %v3433_v6 = vpop.eup %3432  ;;  %3440 = vlog2.f32 %v665_v5 }
  0x37   : > { %v3435_v8 = vpop.eup %3434  ;;  %v741_v9 = vmul.f32 %v3433_v6, %v732_v59  ;;  %vm746_vm3 = vweird.f32 %v3433_v6  ;;  %3442 = vpow2.f32 %v722_v7  ;;  %vm780_vm14 = vcmp.eq.f32.partialorder %v779_v2, 8.507059e+37 }
  0x38   : > { %v756_v11 = vmul.f32 %v3435_v8, %v733_v60  ;;  %vm761_vm5 = vweird.f32 %v3435_v8  ;;  %vm3620_vm6 = vmor %vm745_vm2, %vm746_vm3  ;;  %3444 = vlog2.f32 %v628_v37 }
  0x39   : > { %v742_v12 = vsub.f32 1.0, %v741_v9  ;;  %vm3627_vm8 = vmor %vm760_vm4, %vm761_vm5  ;;  %3446 = vlog2.f32 %v668_v45 }
  0x3a   : > { %v3618_v14 = vpop.eup %3436  ;;  %v757_v15 = vsub.f32 1.0, %v756_v11  ;;  %3448 = vlog2.f32 %v626_v47 }
  0x3b   : > { %v3439_v16 = vpop.eup %3438  ;;  %v743_v17 = vmul.f32 %v3433_v6, %v742_v12  ;;  %v771_v26 = vmul.f32 %v3618_v14, %v3614_v0  ;;  %vm776_vm12 = vweird.f32 %v3618_v14  ;;  %v782_v12 = vor.u32 1.1754944e-38, %v781_v3 }
  0x3c   : > { %v758_v20 = vmul.f32 %v3435_v8, %v757_v15  ;;  %v638_v22 = vmul.f32 0.6931472, %v3439_v16  ;;  %v3441_v23 = vpop.eup %3440  ;;  %vm3662_vm13 = vmor %vm775_vm11, %vm776_vm12 }
  0x3d   : > { %v744_v24 = vadd.f32 %v3433_v6, %v743_v17  ;;  %v3443_v32 = vpop.eup %3442  ;;  %v678_v34 = vmul.f32 0.6931472, %v3441_v23  ;;  %v772_v41 = vsub.f32 1.0, %v771_v26 }
  0x3e   : > { %v759_v27 = vadd.f32 %v3435_v8, %v758_v20  ;;  %v649_v30 = vadd.f32 -2.1972237, %v638_v22  ;;  %v3642_v43 = vadd.f32 1.0, %v3443_v32  ;;  %v3445_v60 = vpop.eup %3444  ;;  %v879_v20 = vld [vmem:[%s3637_s29 + $0x18] sm:$0xff] }
  0x3f   : > { %v748_v33 = vsel %vm3620_vm6, %v3433_v6, %v744_v24  ;;  %v773_v55 = vmul.f32 %v3618_v14, %v772_v41  ;;  %v644_v63 = vmul.f32 0.6931472, %v3445_v60  ;;  %v3447_v1 = vpop.eup %3446  ;;  %v881_v60 = vld [vmem:[%s3637_s29 + $0x28] sm:$0xff] }
  0x40   : > { %v753_v35 = vsel %vm750_vm7, %v752_v19, %v748_v33  ;;  %v763_v40 = vsel %vm3627_vm8, %v3435_v8, %v759_v27  ;;  %v689_v44 = vsub.f32 %v649_v30, %v678_v34  ;;  %3450 = vrcp.f32 %v3642_v43  ;;  %v3449_v4 = vpop.eup %3448  ;;  %v878_v19 = vld [vmem:[%s3637_s29 + $0x10] sm:$0xff] }
  0x41   : > { %v860_v39 = vsub.f32 1.0, %v753_v35  ;;  %v768_v51 = vsel %vm765_vm9, %v767_v36, %v763_v40  ;;  %3452 = vlog2.f32 %v666_v54  ;;  %v774_v6 = vadd.f32 %v3618_v14, %v773_v55 }
  0x42   : > { %v704_v52 = vmul.f32 %v3607_v29, %v689_v44  ;;  %v861_v59 = vsub.f32 1.0, %v768_v51  ;;  %v652_v9 = vadd.f32 -2.1972237, %v644_v63  ;;  %v684_v0 = vmul.f32 0.6931472, %v3447_v1 }
  0x43   : > { %v3644_v46 = vmul.f32 1.1111112, %v860_v39  ;;  %v640_v11 = vmul.f32 0.6931472, %v3449_v4  ;;  %v778_v16 = vsel %vm3662_vm13, %v3618_v14, %v774_v6  ;;  %v627_v27 = vadd.f32 1e-07, %v619_v25 }
  0x44   : > { %v712_v56 = vsub.f32 0.0, %v704_v52  ;;  %v3657_v5 = vmul.f32 1.1111112, %v861_v59  ;;  %v692_v17 = vsub.f32 %v652_v9, %v684_v0  ;;  %v783_v26 = vsel %vm780_vm14, %v782_v12, %v778_v16  ;;  %v880_v59 = vld [vmem:[%s3637_s29 + $0x20] sm:$0xff] }
  0x45   : > { %v892_v53 = vperm.slane %v3644_v46, 0  ;;  %v650_v18 = vadd.f32 -2.1972237, %v640_v11  ;;  %v667_v35 = vadd.f32 1e-07, %v659_v28  ;;  %v862_v39 = vsub.f32 1.0, %v783_v26 }
  0x46   : > { %v724_v61 = vmul.f32 1.442695, %v712_v56  ;;  %v3660_v7 = vpop.eup %3450  ;;  %v893_v15 = vperm.slane %v3657_v5, 0  ;;  %v707_v23 = vmul.f32 %v3607_v29, %v692_v17  ;;  %vm790_vm15 = vweird.f32 %v3642_v43  ;;  %v882_v28 = vld [vmem:[%s3637_s29 + $0x30] sm:$0xff]  ;;  %v888_v25 = vld [vmem:[%s3637_s29 + $0x60] sm:$0xff] }
  0x47   : > { %v900_v57 = vmul.f32 %v892_v53, %v876_v49  ;;  %v901_v58 = vmul.f32 %v892_v53, %v877_v50  ;;  %v3453_v10 = vpop.eup %3452  ;;  %v786_v21 = vmul.f32 %v3660_v7, %v3642_v43  ;;  %vm791_vm1 = vweird.f32 %v3660_v7 }
  0x48   : > { %3454 = vpow2.f32 %v724_v61  ;;  %v680_v13 = vmul.f32 0.6931472, %v3453_v10  ;;  %v902_v30 = vmul.f32 %v893_v15, %v878_v19  ;;  %v903_v31 = vmul.f32 %v893_v15, %v879_v20  ;;  %vm3689_vm2 = vmor %vm790_vm15, %vm791_vm1 }
  0x49   : > { %v917_v62 = vpack.c.bf16 %v901_v58, %v900_v57  ;;  %v715_v32 = vsub.f32 0.0, %v707_v23  ;;  %v787_v33 = vsub.f32 1.0, %v786_v21  ;;  %3456 = vlog2.f32 %v627_v27 }
  0x4a   : > { %v690_v24 = vsub.f32 %v650_v18, %v680_v13  ;;  %3458 = vlog2.f32 %v667_v35  ;;  %v918_v38 = vpack.c.bf16 %v903_v31, %v902_v30  ;;  %v3684_v44 = vmul.f32 1.1111112, %v862_v39  ;;  %v883_v30 = vld [vmem:[%s3637_s29 + $0x38] sm:$0xff] }
  0x4b   : > { %3082 = vmatmul.msk.bf16.vlgmr.msra.gmra.mxu0 %vm929_vm10, %v917_v62  ;;  %v730_v36 = vmul.f32 1.442695, %v715_v32  ;;  %v788_v41 = vmul.f32 %v3660_v7, %v787_v33  ;;  %v796_v45 = vand.u32 2147483648, %v3642_v43  ;;  %v794_v49 = vand.u32 2147483647, %v3642_v43 }
  0x4c   : > { %v705_v14 = vmul.f32 %v3607_v29, %v690_v24  ;;  %v894_v57 = vperm.slane %v3684_v44, 0 }
  0x4d   : > { %3460 = vpow2.f32 %v730_v36  ;;  %v789_v48 = vadd.f32 %v3660_v7, %v788_v41  ;;  %v797_v58 = vor.u32 1.1754944e-38, %v796_v45  ;;  %vm795_vm3 = vcmp.eq.f32.partialorder %v794_v49, 8.507059e+37  ;;  %v891_v41 = vld [vmem:[%s3637_s29 + $0x78] sm:$0xff] }
  0x4e   : > { %v3455_v22 = vpop.eup %3454  ;;  %v713_v37 = vsub.f32 0.0, %v705_v14  ;;  %v904_v2 = vmul.f32 %v894_v57, %v880_v59  ;;  %v905_v3 = vmul.f32 %v894_v57, %v881_v60  ;;  %v884_v60 = vld [vmem:[%s3637_s29 + $0x40] sm:$0xff] }
  0x4f   : > { %v3677_v34 = vadd.f32 1.0, %v3455_v22  ;;  %v3457_v42 = vpop.eup %3456  ;;  %v793_v43 = vsel %vm3689_vm2, %v3660_v7, %v789_v48 }
  0x50   : > { %v726_v40 = vmul.f32 1.442695, %v713_v37  ;;  %v3459_v47 = vpop.eup %3458  ;;  %v642_v50 = vmul.f32 0.6931472, %v3457_v42  ;;  %v798_v4 = vsel %vm795_vm3, %v797_v58, %v793_v43  ;;  %v919_v11 = vpack.c.bf16 %v905_v3, %v904_v2  ;;  %v885_v43 = vld [vmem:[%s3637_s29 + $0x48] sm:$0xff] }
  0x51   : > { %3462 = vrcp.f32 %v3677_v34  ;;  %v682_v53 = vmul.f32 0.6931472, %v3459_v47  ;;  %v863_v0 = vsub.f32 1.0, %v798_v4  ;;  %vm805_vm4 = vweird.f32 %v3677_v34 }
  0x52   : > { %3464 = vpow2.f32 %v726_v40  ;;  %v651_v56 = vadd.f32 -2.1972237, %v642_v50  ;;  %v811_v19 = vand.u32 2147483648, %v3677_v34  ;;  %v809_v22 = vand.u32 2147483647, %v3677_v34  ;;  %v890_v40 = vld [vmem:[%s3637_s29 + $0x70] sm:$0xff] }
  0x53   : > { %v3461_v51 = vpop.eup %3460  ;;  %v3708_v17 = vmul.f32 1.1111112, %v863_v0 }
  0x54   : > { %v739_v55 = vadd.f32 1.0, %v3461_v51  ;;  %v691_v61 = vsub.f32 %v651_v56, %v682_v53  ;;  %v812_v31 = vor.u32 1.1754944e-38, %v811_v19  ;;  %vm810_vm12 = vcmp.eq.f32.partialorder %v809_v22, 8.507059e+37 }
  0x55   : > { %v895_v26 = vperm.slane %v3708_v17, 0 }
  0x56   : > { %3466 = vrcp.f32 %v739_v55  ;;  %v706_v1 = vmul.f32 %v3607_v29, %v691_v61  ;;  %v856_v16 = vand.u32 2147483648, %v739_v55  ;;  %vm850_vm5 = vweird.f32 %v739_v55 }
  0x57   : > { %v3693_v54 = vpop.eup %3462  ;;  %v854_v18 = vand.u32 2147483647, %v739_v55  ;;  %v906_v36 = vmul.f32 %v895_v26, %v882_v28  ;;  %v907_v37 = vmul.f32 %v895_v26, %v883_v30  ;;  %v889_v26 = vld [vmem:[%s3637_s29 + $0x68] sm:$0xff] }
  0x58   : > { %v3465_v62 = vpop.eup %3464  ;;  %v801_v63 = vmul.f32 %v3693_v54, %v3677_v34  ;;  %v714_v8 = vsub.f32 0.0, %v706_v1  ;;  %vm806_vm7 = vweird.f32 %v3693_v54  ;;  %v857_v20 = vor.u32 1.1754944e-38, %v856_v16 }
  0x59   : > { %v3704_v6 = vadd.f32 1.0, %v3465_v62  ;;  %vm855_vm9 = vcmp.eq.f32.partialorder %v854_v18, 8.507059e+37  ;;  %vm3718_vm11 = vmor %vm805_vm4, %vm806_vm7  ;;  %v920_v48 = vpack.c.bf16 %v907_v37, %v906_v36  ;;  %v1007_v37 = vperm.slane %v3644_v46, 1 }
  0x5a   : > { %v802_v9 = vsub.f32 1.0, %v801_v63  ;;  %v728_v12 = vmul.f32 1.442695, %v714_v8 }
  0x5b   : > { %3083 = vmatmul.msk.bf16.gmra.mxu0 %vm929_vm10, %v918_v38  ;;  %3468 = vrcp.f32 %v3704_v6  ;;  %vm820_vm13 = vweird.f32 %v3704_v6  ;;  %v824_v57 = vand.u32 2147483647, %v3704_v6 }
  0x5c   : > { %v3467_v10 = vpop.eup %3466  ;;  %v803_v13 = vmul.f32 %v3693_v54, %v802_v9  ;;  %3470 = vpow2.f32 %v728_v12 }
  0x5d   : > { %v846_v7 = vmul.f32 %v3467_v10, %v739_v55  ;;  %vm851_vm6 = vweird.f32 %v3467_v10  ;;  %v826_v55 = vand.u32 2147483648, %v3704_v6  ;;  %vm825_vm1 = vcmp.eq.f32.partialorder %v824_v57, 8.507059e+37 }
  0x5e   : > { %vm852_vm8 = vmor %vm850_vm5, %vm851_vm6  ;;  %v804_v21 = vadd.f32 %v3693_v54, %v803_v13  ;;  %v886_v13 = vld [vmem:[%s3637_s29 + $0x50] sm:$0xff]  ;;  %vm1047_vm6 = vcmask 1040384  }
  0x5f   : > { %v847_v15 = vsub.f32 1.0, %v846_v7  ;;  %v827_v61 = vor.u32 1.1754944e-38, %v826_v55  ;;  %v1008_v55 = vperm.slane %v3657_v5, 1 }
  0x60   : > { %v808_v33 = vsel %vm3718_vm11, %v3693_v54, %v804_v21 }
  0x61   : > { %v848_v29 = vmul.f32 %v3467_v10, %v847_v15  ;;  %v3469_v24 = vpop.eup %3468  ;;  %v813_v39 = vsel %vm810_vm12, %v812_v31, %v808_v33  ;;  %v887_v15 = vld [vmem:[%s3637_s29 + $0x58] sm:$0xff]  ;;  %v3356_v31 = vld [vmem:[%s4540_s5 + $0x8] sm:$0xff]  ;;  %v3353_v33 = vld [vmem:[%s4539_s4] sm:$0xff] }
  0x62   : > { %v3471_v14 = vpop.eup %3470  ;;  %v816_v35 = vmul.f32 %v3469_v24, %v3704_v6  ;;  %v864_v49 = vsub.f32 1.0, %v813_v39  ;;  %vm821_vm14 = vweird.f32 %v3469_v24  ;;  %1163 = vmatpush.bf16.msra.mxu1 %v3356_v31  ;;  %3382 = vmatpush.bf16.msrb.mxu3 %v3356_v31 }
  0x63   : > { %v849_v23 = vadd.f32 %v3467_v10, %v848_v29  ;;  %v738_v42 = vadd.f32 1.0, %v3471_v14  ;;  %vm822_vm15 = vmor %vm820_vm13, %vm821_vm14  ;;  %v3355_v14 = vld [vmem:[%s4540_s5] sm:$0xff] }
  0x64   : > { %v817_v47 = vsub.f32 1.0, %v816_v35  ;;  %v3735_v54 = vmul.f32 1.1111112, %v864_v49 }
  0x65   : > { %v853_v27 = vsel %vm852_vm8, %v3467_v10, %v849_v23  ;;  %3472 = vrcp.f32 %v738_v42  ;;  %vm835_vm2 = vweird.f32 %v738_v42  ;;  %v841_v0 = vand.u32 2147483648, %v738_v42 }
  0x66   : > { %v858_v32 = vsel %vm855_vm9, %v857_v20, %v853_v27  ;;  %v818_v53 = vmul.f32 %v3469_v24, %v817_v47  ;;  %v896_v59 = vperm.slane %v3735_v54, 0  ;;  %v839_v7 = vand.u32 2147483647, %v738_v42  ;;  %1164 = vmatpush.bf16.msra.mxu1 %v3355_v14  ;;  %3383 = vmatpush.bf16.msrb.mxu3 %v3355_v14 }
  0x67   : > { %v867_v34 = vsub.f32 1.0, %v858_v32  ;;  %v842_v16 = vor.u32 1.1754944e-38, %v841_v0  ;;  %v3354_v32 = vld [vmem:[%s4539_s4 + $0x8] sm:$0xff]  ;;  %vm2949_vm8 = vcmask 130048  }
  0x68   : > { %v819_v56 = vadd.f32 %v3469_v24, %v818_v53  ;;  %v908_v1 = vmul.f32 %v896_v59, %v884_v60  ;;  %v909_v2 = vmul.f32 %v896_v59, %v885_v43  ;;  %vm840_vm5 = vcmp.eq.f32.partialorder %v839_v7, 8.507059e+37  ;;  %1248 = vmatpush.bf16.msra.mxu2 %v3354_v32 }
  0x69   : > { %v3729_v38 = vmul.f32 1.1111112, %v867_v34  ;;  %v3772_v34 = vld [vmem:[%s4538_s3] ss:$0 sm:$0xff] }
  0x6a   : > { %v823_v62 = vsel %vm822_vm15, %v3469_v24, %v819_v56  ;;  %v921_v8 = vpack.c.bf16 %v909_v2, %v908_v1 }
  0x6b   : > { %3084 = vmatmul.msk.bf16.gmra.mxu0 %vm929_vm10, %v919_v11  ;;  %v899_v45 = vperm.slane %v3729_v38, 0  ;;  %v3473_v58 = vpop.eup %3472  ;;  %v828_v3 = vsel %vm825_vm1, %v827_v61, %v823_v62 }
  0x6c   : > { %v831_v63 = vmul.f32 %v3473_v58, %v738_v42  ;;  %v865_v9 = vsub.f32 1.0, %v828_v3  ;;  %vm836_vm3 = vweird.f32 %v3473_v58  ;;  %1249 = vmatpush.bf16.msra.mxu2 %v3353_v33 }
  0x6d   : > { %v914_v50 = vmul.f32 %v899_v45, %v890_v40  ;;  %v915_v51 = vmul.f32 %v899_v45, %v891_v41  ;;  %vm837_vm4 = vmor %vm835_vm2, %vm836_vm3 }
  0x6e   : > { %v832_v4 = vsub.f32 1.0, %v831_v63  ;;  %v3745_v6 = vmul.f32 1.1111112, %v865_v9 }
  0x6f   : > { %v924_v52 = vpack.c.bf16 %v915_v51, %v914_v50 }
  0x70   : > { %v833_v10 = vmul.f32 %v3473_v58, %v832_v4  ;;  %v897_v12 = vperm.slane %v3745_v6, 0  ;;  %v1009_v4 = vperm.slane %v3684_v44, 1 }
  0x71   : > { %3089 = vmatmul.msk.bf16.vlgmr.msra.gmra.mxu3 %vm929_vm10, %v924_v52 }
  0x72   : > { %v834_v11 = vadd.f32 %v3473_v58, %v833_v10  ;;  %v910_v18 = vmul.f32 %v897_v12, %v886_v13  ;;  %v911_v19 = vmul.f32 %v897_v12, %v887_v15  ;;  %3384 = vmatpush.bf16.msra.mxu3 %v3354_v32 }
  0x74   : > { %v838_v29 = vsel %vm837_vm4, %v3473_v58, %v834_v11  ;;  %v922_v21 = vpack.c.bf16 %v911_v19, %v910_v18  ;;  %v1010_v19 = vperm.slane %v3708_v17, 1 }
  0x75   : > { %v843_v20 = vsel %vm840_vm5, %v842_v16, %v838_v29 }
  0x76   : > { %v866_v22 = vsub.f32 1.0, %v843_v20  ;;  %3385 = vmatpush.bf16.msra.mxu3 %v3353_v33 }
  0x78   : > { %v3751_v23 = vmul.f32 1.1111112, %v866_v22 }
  0x7a   : > { %v898_v24 = vperm.slane %v3751_v23, 0 }
  0x7b   : > { %3085 = vmatmul.msk.bf16.gmra.mxu0 %vm929_vm10, %v920_v48 }
  0x7c   : > { %v912_v27 = vmul.f32 %v898_v24, %v888_v25  ;;  %v913_v28 = vmul.f32 %v898_v24, %v889_v26 }
  0x7e   : > { %v923_v30 = vpack.c.bf16 %v913_v28, %v912_v27  ;;  %v1014_v28 = vperm.slane %v3729_v38, 1 }
  0x8b   : > { %3086 = vmatmul.msk.bf16.gmra.mxu0 %vm929_vm10, %v921_v8 }
  0x9b   : > { %3087 = vmatmul.msk.bf16.gmra.mxu0 %vm929_vm10, %v922_v21 }
  0xab   : > { %3088 = vmatmul.msk.bf16.gmra.mxu0 %vm929_vm10, %v923_v30  ;;  %vm1132_vm10 = vcmask 261120  }
  0xc8   : > { %v967_v35 = vpop.f32.mrf.mxu0 }
  0xc9   : > { %v3775_v36 = vadd.f32 %v3772_v34, %v967_v35 }
  0xcb   : > { %v1015_v39 = vmul.f32 %v1007_v37, %v3775_v36 }
  0xcd   : > { %v1048_v42 = vrot.slane %v1015_v39, 7 }
  0xcf   : > { %v1095_v50 = vsel %vm1047_vm6, 0.0, %v1048_v42 }
  0xd0   : > { %v969_v40 = vpop.f32.mrf.mxu0 }
  0xd1   : > { %v3780_v41 = vadd.f32 %v3772_v34, %v969_v40 }
  0xd3   : > { %v1016_v45 = vmul.f32 %v1007_v37, %v3780_v41 }
  0xd5   : > { %v1049_v47 = vrot.slane %v1016_v45, 7  ;;  %v1112_v48 = vpack.c.bf16 %v1016_v45, %v1015_v39 }
  0xd7   : > { %3098 = vmatmul.msk.bf16.vlgmr.msra.gmra.mxu1 %vm1132_vm10, %v1112_v48  ;;  %v1050_v49 = vsel %vm1047_vm6, %v1048_v42, %v1049_v47 }
  0xd8   : > { %v972_v51 = vpop.f32.mrf.mxu0  ;;  %v1100_v52 = vpack.c.bf16 %v1050_v49, %v1095_v50 }
  0xd9   : > { %v3788_v53 = vadd.f32 %v3772_v34, %v972_v51 }
  0xda   : > { %3114 = vmatmul.msk.bf16.vlgmr.msra.gmra.mxu2 %vm1132_vm10, %v1100_v52 }
  0xdb   : > { %v1017_v56 = vmul.f32 %v1008_v55, %v3788_v53 }
  0xdd   : > { %v1051_v59 = vrot.slane %v1017_v56, 7 }
  0xdf   : > { %v1052_v62 = vsel %vm1047_vm6, %v1049_v47, %v1051_v59  ;;  %v1011_v47 = vperm.slane %v3735_v54, 1 }
  0xe0   : > { %v974_v57 = vpop.f32.mrf.mxu0 }
  0xe1   : > { %v3793_v58 = vadd.f32 %v3772_v34, %v974_v57 }
  0xe3   : > { %v1018_v60 = vmul.f32 %v1008_v55, %v3793_v58 }
  0xe5   : > { %v1053_v43 = vrot.slane %v1018_v60, 7  ;;  %v1113_v61 = vpack.c.bf16 %v1018_v60, %v1017_v56 }
  0xe7   : > { %3099 = vmatmul.msk.bf16.gmra.mxu1 %vm1132_vm10, %v1113_v61  ;;  %v1054_v63 = vsel %vm1047_vm6, %v1051_v59, %v1053_v43 }
  0xe8   : > { %v977_v1 = vpop.f32.mrf.mxu0  ;;  %v1101_v2 = vpack.c.bf16 %v1054_v63, %v1052_v62  ;;  %v1012_v63 = vperm.slane %v3745_v6, 1 }
  0xe9   : > { %v3801_v3 = vadd.f32 %v3772_v34, %v977_v1 }
  0xea   : > { %3115 = vmatmul.msk.bf16.gmra.mxu2 %vm1132_vm10, %v1101_v2 }
  0xeb   : > { %v1019_v8 = vmul.f32 %v1009_v4, %v3801_v3 }
  0xed   : > { %v1055_v0 = vrot.slane %v1019_v8, 7 }
  0xef   : > { %v1056_v13 = vsel %vm1047_vm6, %v1053_v43, %v1055_v0 }
  0xf0   : > { %v979_v9 = vpop.f32.mrf.mxu0 }
  0xf1   : > { %v3806_v10 = vadd.f32 %v3772_v34, %v979_v9 }
  0xf3   : > { %v1020_v11 = vmul.f32 %v1009_v4, %v3806_v10 }
  0xf4   : > { %v1002_v20 = vpop.f32.mrf.mxu3 }
  0xf5   : > { %v1057_v7 = vrot.slane %v1020_v11, 7  ;;  %v1114_v12 = vpack.c.bf16 %v1020_v11, %v1019_v8  ;;  %v3823_v27 = vadd.f32 %v3772_v34, %v1002_v20 }
  0xf7   : > { %3100 = vmatmul.msk.bf16.gmra.mxu1 %vm1132_vm10, %v1114_v12  ;;  %v1058_v15 = vsel %vm1047_vm6, %v1055_v0, %v1057_v7  ;;  %v1029_v35 = vmul.f32 %v1014_v28, %v3823_v27 }
  0xf8   : > { %v982_v16 = vpop.f32.mrf.mxu0  ;;  %v1102_v29 = vpack.c.bf16 %v1058_v15, %v1056_v13 }
  0xf9   : > { %v3814_v18 = vadd.f32 %v3772_v34, %v982_v16 }
  0xfa   : > { %3116 = vmatmul.msk.bf16.gmra.mxu2 %vm1132_vm10, %v1102_v29  ;;  %v1013_v29 = vperm.slane %v3751_v23, 1 }
  0xfb   : > { %v1021_v21 = vmul.f32 %v1010_v19, %v3814_v18 }
  0xfc   : > { %v1004_v32 = vpop.f32.mrf.mxu3 }
  0xfd   : > { %v1059_v25 = vrot.slane %v1021_v21, 7  ;;  %v3831_v37 = vadd.f32 %v3772_v34, %v1004_v32 }
  0xff   : > { %v1060_v14 = vsel %vm1047_vm6, %v1057_v7, %v1059_v25  ;;  %v1030_v42 = vmul.f32 %v1014_v28, %v3831_v37 }
 0x100   : > { %v984_v22 = vpop.f32.mrf.mxu0 }
 0x101   : > { %v3819_v24 = vadd.f32 %v3772_v34, %v984_v22  ;;  %v1119_v48 = vpack.c.bf16 %v1030_v42, %v1029_v35  ;;  %v1075_v22 = vrot.slane %v1029_v35, 7  ;;  %v3360_v35 = vld [vmem:[%s4544_s9 + $0x8] sm:$0xff] }
 0x102   : > { %1454 = vmatpush.bf16.msrb.mxu0 %v3360_v35 }
 0x103   : > { %v1022_v26 = vmul.f32 %v1010_v19, %v3819_v24  ;;  %3105 = vmatmul.msk.bf16.vlgmr.msrb.gmra.mxu3 %vm1132_vm10, %v1119_v48  ;;  %v3359_v48 = vld [vmem:[%s4544_s9] sm:$0xff] }
 0x105   : > { %v1061_v30 = vrot.slane %v1022_v26, 7  ;;  %v1115_v31 = vpack.c.bf16 %v1022_v26, %v1021_v21 }
 0x106   : > { %1455 = vmatpush.bf16.msrb.mxu0 %v3359_v48 }
 0x107   : > { %3101 = vmatmul.msk.bf16.gmra.mxu1 %vm1132_vm10, %v1115_v31  ;;  %v1062_v33 = vsel %vm1047_vm6, %v1059_v25, %v1061_v30  ;;  %v1077_v25 = vrot.slane %v1030_v42, 7  ;;  %v3358_v42 = vld [vmem:[%s4542_s7 + $0x8] sm:$0xff] }
 0x108   : > { %v987_v39 = vpop.f32.mrf.mxu0  ;;  %v1103_v40 = vpack.c.bf16 %v1062_v33, %v1060_v14  ;;  %1385 = vmatpush.bf16.msrb.mxu3 %v3358_v42 }
 0x109   : > { %v3836_v45 = vadd.f32 %v3772_v34, %v987_v39  ;;  %v1078_v32 = vsel %vm1047_vm6, %v1075_v22, %v1077_v25 }
 0x10a   : > { %3117 = vmatmul.msk.bf16.gmra.mxu2 %vm1132_vm10, %v1103_v40 }
 0x10b   : > { %v1023_v49 = vmul.f32 %v1011_v47, %v3836_v45 }
 0x10d   : > { %v1063_v52 = vrot.slane %v1023_v49, 7 }
 0x10f   : > { %v1064_v59 = vsel %vm1047_vm6, %v1061_v30, %v1063_v52 }
 0x110   : > { %v989_v50 = vpop.f32.mrf.mxu0 }
 0x111   : > { %v3842_v51 = vadd.f32 %v3772_v34, %v989_v50 }
 0x113   : > { %v1024_v55 = vmul.f32 %v1011_v47, %v3842_v51  ;;  %v3357_v47 = vld [vmem:[%s4542_s7] sm:$0xff] }
 0x114   : > { %1386 = vmatpush.bf16.msrb.mxu3 %v3357_v47 }
 0x115   : > { %v1065_v56 = vrot.slane %v1024_v55, 7  ;;  %v1116_v57 = vpack.c.bf16 %v1024_v55, %v1023_v49 }
 0x117   : > { %3102 = vmatmul.msk.bf16.gmra.mxu1 %vm1132_vm10, %v1116_v57  ;;  %v1066_v60 = vsel %vm1047_vm6, %v1063_v52, %v1065_v56 }
 0x118   : > { %v992_v43 = vpop.f32.mrf.mxu0  ;;  %v1104_v61 = vpack.c.bf16 %v1066_v60, %v1064_v59 }
 0x119   : > { %v3850_v62 = vadd.f32 %v3772_v34, %v992_v43 }
 0x11a   : > { %3118 = vmatmul.msk.bf16.gmra.mxu2 %vm1132_vm10, %v1104_v61 }
 0x11b   : > { %v1025_v1 = vmul.f32 %v1012_v63, %v3850_v62 }
 0x11d   : > { %v1067_v8 = vrot.slane %v1025_v1, 7 }
 0x11f   : > { %v1068_v7 = vsel %vm1047_vm6, %v1065_v56, %v1067_v8  ;;  %v3893_v56 = vld [vmem:[%s4541_s6] ss:$0 sm:$0xff] }
 0x120   : > { %v994_v2 = vpop.f32.mrf.mxu0 }
 0x121   : > { %v3855_v4 = vadd.f32 %v3772_v34, %v994_v2 }
 0x123   : > { %v1026_v9 = vmul.f32 %v1012_v63, %v3855_v4 }
 0x125   : > { %v1069_v0 = vrot.slane %v1026_v9, 7  ;;  %v1117_v11 = vpack.c.bf16 %v1026_v9, %v1025_v1 }
 0x127   : > { %3103 = vmatmul.msk.bf16.gmra.mxu1 %vm1132_vm10, %v1117_v11  ;;  %v1070_v12 = vsel %vm1047_vm6, %v1067_v8, %v1069_v0 }
 0x128   : > { %v997_v13 = vpop.f32.mrf.mxu0  ;;  %v1105_v15 = vpack.c.bf16 %v1070_v12, %v1068_v7 }
 0x129   : > { %v3863_v16 = vadd.f32 %v3772_v34, %v997_v13 }
 0x12a   : > { %3119 = vmatmul.msk.bf16.gmra.mxu2 %vm1132_vm10, %v1105_v15 }
 0x12b   : > { %v1027_v19 = vmul.f32 %v1013_v29, %v3863_v16 }
 0x12d   : > { %v1071_v26 = vrot.slane %v1027_v19, 7 }
 0x12f   : > { %v1072_v33 = vsel %vm1047_vm6, %v1069_v0, %v1071_v26 }
 0x130   : > { %v999_v20 = vpop.f32.mrf.mxu0 }
 0x131   : > { %v3868_v21 = vadd.f32 %v3772_v34, %v999_v20 }
 0x133   : > { %v1028_v28 = vmul.f32 %v1013_v29, %v3868_v21 }
 0x135   : > { %v1073_v30 = vrot.slane %v1028_v28, 7  ;;  %v1118_v31 = vpack.c.bf16 %v1028_v28, %v1027_v19 }
 0x137   : > { %v1076_v14 = vsel %vm1047_vm6, %v1073_v30, %v1075_v22  ;;  %3104 = vmatmul.msk.bf16.gmra.mxu1 %vm1132_vm10, %v1118_v31  ;;  %v1074_v39 = vsel %vm1047_vm6, %v1071_v26, %v1073_v30 }
 0x138   : > { %v1107_v40 = vpack.c.bf16 %v1078_v32, %v1076_v14  ;;  %v1106_v34 = vpack.c.bf16 %v1074_v39, %v1072_v33 }
 0x13a   : > { %3120 = vmatmul.msk.bf16.gmra.mxu2 %vm1132_vm10, %v1106_v34  ;;  %3121 = vmatmul.msk.bf16.vlgmr.msra.gmra.mxu3 %vm1132_vm10, %v1107_v40 }
 0x154   : > { %v1166_v49 = vpop.f32.mrf.mxu1 }
 0x15c   : > { %v1168_v50 = vpop.f32.mrf.mxu1 }
 0x15d   : > { %v1251_v52 = vpop.f32.mrf.mxu2 }
 0x15e   : > { %v1252_v55 = vadd.f32 %v1251_v52, %v1166_v49 }
 0x160   : > { %v1295_v60 = vadd.f32 %v3893_v56, %v1252_v55 }
 0x162   : > { %v1311_v63 = vmax.f32 %v1295_v60, 0.0 }
 0x164   : > { %v1171_v57 = vpop.f32.mrf.mxu1 }
 0x165   : > { %v1253_v59 = vpop.f32.mrf.mxu2 }
 0x166   : > { %v1254_v43 = vadd.f32 %v1253_v59, %v1168_v50 }
 0x168   : > { %v1296_v61 = vadd.f32 %v3893_v56, %v1254_v43 }
 0x16a   : > { %v1312_v1 = vmax.f32 %v1296_v61, 0.0 }
 0x16c   : > { %v1327_v2 = vpack.c.bf16 %v1312_v1, %v1311_v63  ;;  %v1173_v8 = vpop.f32.mrf.mxu1 }
 0x16d   : > { %v1256_v9 = vpop.f32.mrf.mxu2 }
 0x16e   : > { %3130 = vmatmul.msk.bf16.vlgmr.msrb.gmra.mxu3 %vm1132_vm10, %v1327_v2  ;;  %3146 = vmatmul.msk.bf16.vlgmr.msrb.gmra.mxu0 %vm1132_vm10, %v1327_v2  ;;  %v1257_v0 = vadd.f32 %v1256_v9, %v1171_v57 }
 0x170   : > { %v1297_v12 = vadd.f32 %v3893_v56, %v1257_v0 }
 0x172   : > { %v1313_v29 = vmax.f32 %v1297_v12, 0.0 }
 0x174   : > { %v1176_v11 = vpop.f32.mrf.mxu1 }
 0x175   : > { %v1258_v7 = vpop.f32.mrf.mxu2 }
 0x176   : > { %v1259_v13 = vadd.f32 %v1258_v7, %v1173_v8 }
 0x178   : > { %v1298_v15 = vadd.f32 %v3893_v56, %v1259_v13 }
 0x17a   : > { %v1314_v19 = vmax.f32 %v1298_v15, 0.0 }
 0x17c   : > { %v1178_v20 = vpop.f32.mrf.mxu1  ;;  %v1328_v22 = vpack.c.bf16 %v1314_v19, %v1313_v29 }
 0x17d   : > { %v1261_v25 = vpop.f32.mrf.mxu2 }
 0x17e   : > { %3131 = vmatmul.msk.bf16.gmra.mxu3 %vm1132_vm10, %v1328_v22  ;;  %3147 = vmatmul.msk.bf16.gmra.mxu0 %vm1132_vm10, %v1328_v22  ;;  %v1262_v26 = vadd.f32 %v1261_v25, %v1176_v11 }
 0x180   : > { %v1299_v31 = vadd.f32 %v3893_v56, %v1262_v26 }
 0x182   : > { %v1315_v33 = vmax.f32 %v1299_v31, 0.0 }
 0x184   : > { %v1181_v28 = vpop.f32.mrf.mxu1 }
 0x185   : > { %v1263_v30 = vpop.f32.mrf.mxu2 }
 0x186   : > { %v1264_v32 = vadd.f32 %v1263_v30, %v1178_v20  ;;  %v1201_v13 = vpop.f32.mrf.mxu3 }
 0x188   : > { %v1300_v14 = vadd.f32 %v3893_v56, %v1264_v32 }
 0x18a   : > { %v1316_v39 = vmax.f32 %v1300_v14, 0.0 }
 0x18c   : > { %v1183_v40 = vpop.f32.mrf.mxu1  ;;  %v1329_v34 = vpack.c.bf16 %v1316_v39, %v1315_v33 }
 0x18d   : > { %v1266_v35 = vpop.f32.mrf.mxu2 }
 0x18e   : > { %3132 = vmatmul.msk.bf16.gmra.mxu3 %vm1132_vm10, %v1329_v34  ;;  %3148 = vmatmul.msk.bf16.gmra.mxu0 %vm1132_vm10, %v1329_v34  ;;  %v1267_v42 = vadd.f32 %v1266_v35, %v1181_v28  ;;  %v1203_v26 = vpop.f32.mrf.mxu3 }
 0x190   : > { %v1301_v49 = vadd.f32 %v3893_v56, %v1267_v42 }
 0x192   : > { %v1317_v55 = vmax.f32 %v1301_v49, 0.0 }
 0x194   : > { %v1186_v47 = vpop.f32.mrf.mxu1 }
 0x195   : > { %v1268_v48 = vpop.f32.mrf.mxu2 }
 0x196   : > { %v1269_v50 = vadd.f32 %v1268_v48, %v1183_v40 }
 0x198   : > { %v1302_v52 = vadd.f32 %v3893_v56, %v1269_v50 }
 0x19a   : > { %v1318_v57 = vmax.f32 %v1302_v52, 0.0 }
 0x19c   : > { %v1330_v59 = vpack.c.bf16 %v1318_v57, %v1317_v55  ;;  %v1188_v60 = vpop.f32.mrf.mxu1 }
 0x19d   : > { %v1271_v43 = vpop.f32.mrf.mxu2 }
 0x19e   : > { %3133 = vmatmul.msk.bf16.gmra.mxu3 %vm1132_vm10, %v1330_v59  ;;  %3149 = vmatmul.msk.bf16.gmra.mxu0 %vm1132_vm10, %v1330_v59  ;;  %v1272_v61 = vadd.f32 %v1271_v43, %v1186_v47  ;;  %v3362_v59 = vld [vmem:[%s4539_s4 + $0x18] sm:$0xff] }
 0x19f   : > { %1754 = vmatpush.bf16.msrb.mxu2 %v3362_v59 }
 0x1a0   : > { %v1303_v1 = vadd.f32 %v3893_v56, %v1272_v61 }
 0x1a2   : > { %v1319_v0 = vmax.f32 %v1303_v1, 0.0 }
 0x1a4   : > { %v1191_v8 = vpop.f32.mrf.mxu1 }
 0x1a5   : > { %v1273_v63 = vpop.f32.mrf.mxu2 }
 0x1a6   : > { %v1274_v2 = vadd.f32 %v1273_v63, %v1188_v60  ;;  %v3364_v60 = vld [vmem:[%s4540_s5 + $0x18] sm:$0xff]  ;;  %v3363_v63 = vld [vmem:[%s4540_s5 + $0x10] sm:$0xff] }
 0x1a7   : > { %1669 = vmatpush.bf16.msrb.mxu1 %v3364_v60 }
 0x1a8   : > { %v1304_v9 = vadd.f32 %v3893_v56, %v1274_v2 }
 0x1aa   : > { %v1320_v11 = vmax.f32 %v1304_v9, 0.0 }
 0x1ab   : > { %1670 = vmatpush.bf16.msrb.mxu1 %v3363_v63 }
 0x1ac   : > { %v1331_v7 = vpack.c.bf16 %v1320_v11, %v1319_v0  ;;  %v1193_v15 = vpop.f32.mrf.mxu1 }
 0x1ad   : > { %v1276_v12 = vpop.f32.mrf.mxu2 }
 0x1ae   : > { %3134 = vmatmul.msk.bf16.gmra.mxu3 %vm1132_vm10, %v1331_v7  ;;  %3150 = vmatmul.msk.bf16.gmra.mxu0 %vm1132_vm10, %v1331_v7  ;;  %v1277_v29 = vadd.f32 %v1276_v12, %v1191_v8  ;;  %v3361_v8 = vld [vmem:[%s4539_s4 + $0x10] sm:$0xff]  ;;  %v1513_v12 = vperm.slane %v3644_v46, 2 }
 0x1af   : > { %1755 = vmatpush.bf16.msrb.mxu2 %v3361_v8 }
 0x1b0   : > { %v1305_v20 = vadd.f32 %v3893_v56, %v1277_v29 }
 0x1b2   : > { %v1321_v28 = vmax.f32 %v1305_v20, 0.0 }
 0x1b4   : > { %v1196_v31 = vpop.f32.mrf.mxu1 }
 0x1b5   : > { %v1278_v19 = vpop.f32.mrf.mxu2 }
 0x1b6   : > { %v1279_v22 = vadd.f32 %v1278_v19, %v1193_v15 }
 0x1b8   : > { %v1306_v25 = vadd.f32 %v3893_v56, %v1279_v22 }
 0x1ba   : > { %v1322_v30 = vmax.f32 %v1306_v25, 0.0 }
 0x1bc   : > { %v1332_v32 = vpack.c.bf16 %v1322_v30, %v1321_v28  ;;  %v1198_v40 = vpop.f32.mrf.mxu1 }
 0x1bd   : > { %v1281_v14 = vpop.f32.mrf.mxu2  ;;  %v1286_v39 = vpop.f32.mrf.mxu3 }
 0x1be   : > { %3135 = vmatmul.msk.bf16.gmra.mxu3 %vm1132_vm10, %v1332_v32  ;;  %3151 = vmatmul.msk.bf16.gmra.mxu0 %vm1132_vm10, %v1332_v32  ;;  %v1282_v33 = vadd.f32 %v1281_v14, %v1196_v31  ;;  %v1287_v57 = vadd.f32 %v1286_v39, %v1201_v13  ;;  %v1514_v14 = vperm.slane %v3657_v5, 2 }
 0x1c0   : > { %v1307_v35 = vadd.f32 %v3893_v56, %v1282_v33  ;;  %v1309_v61 = vadd.f32 %v3893_v56, %v1287_v57  ;;  %v1515_v57 = vperm.slane %v3684_v44, 2 }
 0x1c2   : > { %v1323_v48 = vmax.f32 %v1307_v35, 0.0  ;;  %v1325_v2 = vmax.f32 %v1309_v61, 0.0 }
 0x1c5   : > { %v1283_v34 = vpop.f32.mrf.mxu2  ;;  %v1288_v52 = vpop.f32.mrf.mxu3 }
 0x1c6   : > { %v1284_v42 = vadd.f32 %v1283_v34, %v1198_v40  ;;  %v1289_v55 = vadd.f32 %v1288_v52, %v1203_v26 }
 0x1c8   : > { %v1308_v47 = vadd.f32 %v3893_v56, %v1284_v42  ;;  %v1310_v43 = vadd.f32 %v3893_v56, %v1289_v55  ;;  %v3942_v56 = vld [vmem:[%s4545_s10] ss:$0 sm:$0xff] }
 0x1ca   : > { %v1324_v49 = vmax.f32 %v1308_v47, 0.0  ;;  %v1326_v1 = vmax.f32 %v1310_v43, 0.0 }
 0x1cc   : > { %v1333_v50 = vpack.c.bf16 %v1324_v49, %v1323_v48  ;;  %v1334_v9 = vpack.c.bf16 %v1326_v1, %v1325_v2 }
 0x1ce   : > { %3136 = vmatmul.msk.bf16.gmra.mxu3 %vm1132_vm10, %v1333_v50  ;;  %3152 = vmatmul.msk.bf16.gmra.mxu0 %vm1132_vm10, %v1333_v50 }
 0x1de   : > { %3137 = vmatmul.msk.bf16.gmra.mxu3 %vm1132_vm10, %v1334_v9  ;;  %3153 = vmatmul.msk.bf16.gmra.mxu0 %vm1132_vm10, %v1334_v9 }
 0x1eb   : > { %v1457_v0 = vpop.f32.mrf.mxu0 }
 0x1ec   : > { %v1458_v11 = vadd.f32 %v3942_v56, %v1457_v0 }
 0x1ee   : > { %v3946_v7 = vadd.f32 %v1458_v11, %v3775_v36 }
 0x1f0   : > { %v1521_v15 = vmul.f32 %v1513_v12, %v3946_v7 }
 0x1f2   : > { %v1553_v20 = vrot.slane %v1521_v15, 6 }
 0x1f3   : > { %v1459_v13 = vpop.f32.mrf.mxu0 }
 0x1f4   : > { %v1460_v29 = vadd.f32 %v3942_v56, %v1459_v13  ;;  %v1600_v31 = vsel %vm954_vm0, 0.0, %v1553_v20  ;;  %v1516_v13 = vperm.slane %v3708_v17, 2 }
 0x1f6   : > { %v3952_v19 = vadd.f32 %v1460_v29, %v3780_v41 }
 0x1f8   : > { %v1522_v22 = vmul.f32 %v1513_v12, %v3952_v19 }
 0x1fa   : > { %v1554_v25 = vrot.slane %v1522_v22, 6  ;;  %v1619_v26 = vpack.c.bf16 %v1522_v22, %v1521_v15 }
 0x1fb   : > { %v1462_v28 = vpop.f32.mrf.mxu0 }
 0x1fc   : > { %v1463_v30 = vadd.f32 %v3942_v56, %v1462_v28  ;;  %3170 = vmatmul.msk.bf16.vlgmr.msrb.gmra.mxu1 %vm1132_vm10, %v1619_v26  ;;  %v1555_v36 = vsel %vm954_vm0, %v1553_v20, %v1554_v25 }
 0x1fd   : > { %v1606_v32 = vpack.c.bf16 %v1555_v36, %v1600_v31 }
 0x1fe   : > { %v3961_v41 = vadd.f32 %v1463_v30, %v3788_v53 }
 0x1ff   : > { %3186 = vmatmul.msk.bf16.vlgmr.msrb.gmra.mxu2 %vm1132_vm10, %v1606_v32 }
 0x200   : > { %v1523_v39 = vmul.f32 %v1514_v14, %v3961_v41 }
 0x202   : > { %v1556_v35 = vrot.slane %v1523_v39, 6 }
 0x203   : > { %v1464_v33 = vpop.f32.mrf.mxu0 }
 0x204   : > { %v1465_v40 = vadd.f32 %v3942_v56, %v1464_v33  ;;  %v1557_v53 = vsel %vm954_vm0, %v1554_v25, %v1556_v35  ;;  %v1517_v33 = vperm.slane %v3735_v54, 2 }
 0x206   : > { %v3967_v34 = vadd.f32 %v1465_v40, %v3793_v58 }
 0x208   : > { %v1524_v42 = vmul.f32 %v1514_v14, %v3967_v34 }
 0x20a   : > { %v1558_v47 = vrot.slane %v1524_v42, 6  ;;  %v1620_v48 = vpack.c.bf16 %v1524_v42, %v1523_v39 }
 0x20b   : > { %v1467_v49 = vpop.f32.mrf.mxu0 }
 0x20c   : > { %v1468_v50 = vadd.f32 %v3942_v56, %v1467_v49  ;;  %3171 = vmatmul.msk.bf16.gmra.mxu1 %vm1132_vm10, %v1620_v48  ;;  %v1559_v52 = vsel %vm954_vm0, %v1556_v35, %v1558_v47 }
 0x20d   : > { %v1607_v55 = vpack.c.bf16 %v1559_v52, %v1557_v53 }
 0x20e   : > { %v3976_v58 = vadd.f32 %v1468_v50, %v3801_v3 }
 0x20f   : > { %3187 = vmatmul.msk.bf16.gmra.mxu2 %vm1132_vm10, %v1607_v55 }
 0x210   : > { %v1525_v60 = vmul.f32 %v1515_v57, %v3976_v58 }
 0x212   : > { %v1560_v63 = vrot.slane %v1525_v60, 6 }
 0x213   : > { %v1469_v59 = vpop.f32.mrf.mxu0 }
 0x214   : > { %v1470_v43 = vadd.f32 %v3942_v56, %v1469_v59  ;;  %v1561_v3 = vsel %vm954_vm0, %v1558_v47, %v1560_v63  ;;  %v1518_v59 = vperm.slane %v3745_v6, 2 }
 0x216   : > { %v3982_v61 = vadd.f32 %v1470_v43, %v3806_v10 }
 0x218   : > { %v1526_v1 = vmul.f32 %v1515_v57, %v3982_v61 }
 0x21a   : > { %v1562_v2 = vrot.slane %v1526_v1, 6  ;;  %v1621_v8 = vpack.c.bf16 %v1526_v1, %v1525_v60 }
 0x21b   : > { %v1472_v9 = vpop.f32.mrf.mxu0 }
 0x21c   : > { %v1473_v0 = vadd.f32 %v3942_v56, %v1472_v9  ;;  %3172 = vmatmul.msk.bf16.gmra.mxu1 %vm1132_vm10, %v1621_v8  ;;  %v1563_v11 = vsel %vm954_vm0, %v1560_v63, %v1562_v2 }
 0x21d   : > { %v1608_v12 = vpack.c.bf16 %v1563_v11, %v1561_v3 }
 0x21e   : > { %v3991_v10 = vadd.f32 %v1473_v0, %v3814_v18 }
 0x21f   : > { %3188 = vmatmul.msk.bf16.gmra.mxu2 %vm1132_vm10, %v1608_v12 }
 0x220   : > { %v1527_v29 = vmul.f32 %v1516_v13, %v3991_v10 }
 0x222   : > { %v1564_v25 = vrot.slane %v1527_v29, 6 }
 0x223   : > { %v1474_v15 = vpop.f32.mrf.mxu0 }
 0x224   : > { %v1475_v20 = vadd.f32 %v3942_v56, %v1474_v15  ;;  %v1565_v18 = vsel %vm954_vm0, %v1562_v2, %v1564_v25 }
 0x226   : > { %v3997_v22 = vadd.f32 %v1475_v20, %v3819_v24 }
 0x228   : > { %v1528_v26 = vmul.f32 %v1516_v13, %v3997_v22 }
 0x22a   : > { %v1566_v28 = vrot.slane %v1528_v26, 6  ;;  %v1622_v30 = vpack.c.bf16 %v1528_v26, %v1527_v29  ;;  %v1519_v29 = vperm.slane %v3751_v23, 2 }
 0x22b   : > { %v1477_v36 = vpop.f32.mrf.mxu0 }
 0x22c   : > { %v1478_v31 = vadd.f32 %v3942_v56, %v1477_v36  ;;  %3173 = vmatmul.msk.bf16.gmra.mxu1 %vm1132_vm10, %v1622_v30  ;;  %v1567_v32 = vsel %vm954_vm0, %v1564_v25, %v1566_v28 }
 0x22d   : > { %v1609_v14 = vpack.c.bf16 %v1567_v32, %v1565_v18 }
 0x22e   : > { %v4006_v24 = vadd.f32 %v1478_v31, %v3836_v45 }
 0x22f   : > { %3189 = vmatmul.msk.bf16.gmra.mxu2 %vm1132_vm10, %v1609_v14 }
 0x230   : > { %v1529_v40 = vmul.f32 %v1517_v33, %v4006_v24 }
 0x232   : > { %v1568_v47 = vrot.slane %v1529_v40, 6 }
 0x233   : > { %v1479_v39 = vpop.f32.mrf.mxu0 }
 0x234   : > { %v1480_v35 = vadd.f32 %v3942_v56, %v1479_v39  ;;  %v1569_v45 = vsel %vm954_vm0, %v1566_v28, %v1568_v47 }
 0x236   : > { %v4012_v42 = vadd.f32 %v1480_v35, %v3842_v51 }
 0x238   : > { %v1530_v48 = vmul.f32 %v1517_v33, %v4012_v42 }
 0x23a   : > { %v1570_v49 = vrot.slane %v1530_v48, 6  ;;  %v1623_v50 = vpack.c.bf16 %v1530_v48, %v1529_v40  ;;  %v1520_v40 = vperm.slane %v3729_v38, 2 }
 0x23b   : > { %v1482_v53 = vpop.f32.mrf.mxu0 }
 0x23c   : > { %v1483_v52 = vadd.f32 %v3942_v56, %v1482_v53  ;;  %3174 = vmatmul.msk.bf16.gmra.mxu1 %vm1132_vm10, %v1623_v50  ;;  %v1571_v55 = vsel %vm954_vm0, %v1568_v47, %v1570_v49 }
 0x23d   : > { %v1610_v57 = vpack.c.bf16 %v1571_v55, %v1569_v45 }
 0x23e   : > { %v4021_v51 = vadd.f32 %v1483_v52, %v3850_v62 }
 0x23f   : > { %3190 = vmatmul.msk.bf16.gmra.mxu2 %vm1132_vm10, %v1610_v57 }
 0x240   : > { %v1531_v43 = vmul.f32 %v1518_v59, %v4021_v51 }
 0x242   : > { %v1572_v2 = vrot.slane %v1531_v43, 6 }
 0x243   : > { %v1484_v60 = vpop.f32.mrf.mxu0 }
 0x244   : > { %v1485_v63 = vadd.f32 %v3942_v56, %v1484_v60  ;;  %v1573_v62 = vsel %vm954_vm0, %v1570_v49, %v1572_v2  ;;  %v4076_v60 = vpop.f32.mrf.mxu3 }
 0x246   : > { %v4027_v1 = vadd.f32 %v1485_v63, %v3855_v4  ;;  %v3368_v4 = vld [vmem:[%s4544_s9 + $0x18] sm:$0xff] }
 0x247   : > { %1997 = vmatpush.bf16.msra.mxu0 %v3368_v4 }
 0x248   : > { %v1532_v8 = vmul.f32 %v1518_v59, %v4027_v1  ;;  %v3367_v59 = vld [vmem:[%s4544_s9 + $0x10] sm:$0xff] }
 0x24a   : > { %v1574_v9 = vrot.slane %v1532_v8, 6  ;;  %v1624_v0 = vpack.c.bf16 %v1532_v8, %v1531_v43 }
 0x24b   : > { %v1487_v3 = vpop.f32.mrf.mxu0  ;;  %1998 = vmatpush.bf16.msra.mxu0 %v3367_v59 }
 0x24c   : > { %v1488_v11 = vadd.f32 %v3942_v56, %v1487_v3  ;;  %3175 = vmatmul.msk.bf16.gmra.mxu1 %vm1132_vm10, %v1624_v0  ;;  %v1575_v12 = vsel %vm954_vm0, %v1572_v2, %v1574_v9  ;;  %v4078_v63 = vpop.f32.mrf.mxu3  ;;  %v4083_v0 = vld [vmem:[%s4541_s6 + $0x1] ss:$0 sm:$0xff] }
 0x24d   : > { %v1611_v13 = vpack.c.bf16 %v1575_v12, %v1573_v62 }
 0x24e   : > { %v4039_v15 = vadd.f32 %v1488_v11, %v3863_v16 }
 0x24f   : > { %3191 = vmatmul.msk.bf16.gmra.mxu2 %vm1132_vm10, %v1611_v13 }
 0x250   : > { %v1533_v25 = vmul.f32 %v1519_v29, %v4039_v15 }
 0x252   : > { %v1576_v30 = vrot.slane %v1533_v25, 6 }
 0x253   : > { %v1489_v20 = vpop.f32.mrf.mxu0 }
 0x254   : > { %v1490_v26 = vadd.f32 %v3942_v56, %v1489_v20  ;;  %v1577_v14 = vsel %vm954_vm0, %v1574_v9, %v1576_v30  ;;  %v4085_v62 = vpop.f32.mrf.mxu3 }
 0x256   : > { %v4045_v28 = vadd.f32 %v1490_v26, %v3868_v21 }
 0x258   : > { %v1534_v36 = vmul.f32 %v1519_v29, %v4045_v28 }
 0x25a   : > { %v1578_v31 = vrot.slane %v1534_v36, 6  ;;  %v1625_v18 = vpack.c.bf16 %v1534_v36, %v1533_v25 }
 0x25b   : > { %v1492_v32 = vpop.f32.mrf.mxu0 }
 0x25c   : > { %v1493_v16 = vadd.f32 %v3942_v56, %v1492_v32  ;;  %3176 = vmatmul.msk.bf16.gmra.mxu1 %vm1132_vm10, %v1625_v18  ;;  %v1579_v33 = vsel %vm954_vm0, %v1576_v30, %v1578_v31  ;;  %v4091_v36 = vpop.f32.mrf.mxu3 }
 0x25d   : > { %v1612_v39 = vpack.c.bf16 %v1579_v33, %v1577_v14 }
 0x25e   : > { %v4054_v21 = vadd.f32 %v1493_v16, %v3823_v27  ;;  %v3366_v27 = vld [vmem:[%s4542_s7 + $0x18] sm:$0xff] }
 0x25f   : > { %3192 = vmatmul.msk.bf16.gmra.mxu2 %vm1132_vm10, %v1612_v39  ;;  %1889 = vmatpush.bf16.msra.mxu3 %v3366_v27 }
 0x260   : > { %v1535_v47 = vmul.f32 %v1520_v40, %v4054_v21 }
 0x262   : > { %v1580_v50 = vrot.slane %v1535_v47, 6 }
 0x263   : > { %v1494_v35 = vpop.f32.mrf.mxu0 }
 0x264   : > { %v1495_v48 = vadd.f32 %v3942_v56, %v1494_v35  ;;  %v1581_v55 = vsel %vm954_vm0, %v1578_v31, %v1580_v50  ;;  %v4095_v39 = vpop.f32.mrf.mxu3 }
 0x266   : > { %v4060_v49 = vadd.f32 %v1495_v48, %v3831_v37  ;;  %v3365_v37 = vld [vmem:[%s4542_s7 + $0x10] sm:$0xff] }
 0x267   : > { %1890 = vmatpush.bf16.msra.mxu3 %v3365_v37 }
 0x268   : > { %v1536_v53 = vmul.f32 %v1520_v40, %v4060_v49 }
 0x26a   : > { %v1582_v52 = vrot.slane %v1536_v53, 6  ;;  %v1626_v45 = vpack.c.bf16 %v1536_v53, %v1535_v47 }
 0x26c   : > { %3177 = vmatmul.msk.bf16.gmra.mxu1 %vm1132_vm10, %v1626_v45  ;;  %v1583_v57 = vsel %vm954_vm0, %v1580_v50, %v1582_v52  ;;  %v4099_v52 = vpop.f32.mrf.mxu3  ;;  %vm2096_vm0 = vcmask 1043456  }
 0x26d   : > { %v1613_v56 = vpack.c.bf16 %v1583_v57, %v1581_v55 }
 0x26f   : > { %3193 = vmatmul.msk.bf16.gmra.mxu2 %vm1132_vm10, %v1613_v56 }
 0x279   : > { %v1672_v43 = vpop.f32.mrf.mxu1 }
 0x281   : > { %v1674_v2 = vpop.f32.mrf.mxu1 }
 0x282   : > { %v1757_v8 = vpop.f32.mrf.mxu2 }
 0x283   : > { %v1758_v9 = vadd.f32 %v1757_v8, %v1672_v43 }
 0x285   : > { %v1802_v12 = vadd.f32 %v4083_v0, %v1758_v9  ;;  %v4103_v9 = vpop.f32.mrf.mxu3 }
 0x287   : > { %v1818_v29 = vmax.f32 %v1802_v12, 0.0 }
 0x289   : > { %v1677_v3 = vpop.f32.mrf.mxu1 }
 0x28a   : > { %v1759_v11 = vpop.f32.mrf.mxu2 }
 0x28b   : > { %v1760_v13 = vadd.f32 %v1759_v11, %v1674_v2 }
 0x28d   : > { %v1803_v4 = vadd.f32 %v4083_v0, %v1760_v13 }
 0x28f   : > { %v1819_v20 = vmax.f32 %v1803_v4, 0.0 }
 0x291   : > { %v1834_v25 = vpack.c.bf16 %v1819_v20, %v1818_v29  ;;  %v1679_v26 = vpop.f32.mrf.mxu1  ;;  %v4108_v29 = vpop.f32.mrf.mxu3 }
 0x292   : > { %v1762_v30 = vpop.f32.mrf.mxu2 }
 0x293   : > { %3207 = vmatmul.msk.bf16.vlgmr.msra.gmra.mxu3 %vm1132_vm10, %v1834_v25  ;;  %3229 = vmatmul.msk.bf16.vlgmr.msra.gmra.mxu0 %vm1132_vm10, %v1834_v25  ;;  %v1763_v31 = vadd.f32 %v1762_v30, %v1677_v3 }
 0x295   : > { %v1804_v16 = vadd.f32 %v4083_v0, %v1763_v31 }
 0x297   : > { %v1820_v40 = vmax.f32 %v1804_v16, 0.0 }
 0x299   : > { %v1682_v18 = vpop.f32.mrf.mxu1 }
 0x29a   : > { %v1764_v32 = vpop.f32.mrf.mxu2 }
 0x29b   : > { %v1765_v14 = vadd.f32 %v1764_v32, %v1679_v26  ;;  %v4113_v32 = vpop.f32.mrf.mxu3 }
 0x29d   : > { %v1805_v33 = vadd.f32 %v4083_v0, %v1765_v14 }
 0x29f   : > { %v1821_v35 = vmax.f32 %v1805_v33, 0.0 }
 0x2a1   : > { %v1835_v47 = vpack.c.bf16 %v1821_v35, %v1820_v40  ;;  %v1684_v48 = vpop.f32.mrf.mxu1 }
 0x2a2   : > { %v1767_v50 = vpop.f32.mrf.mxu2 }
 0x2a3   : > { %3208 = vmatmul.msk.bf16.gmra.mxu3 %vm1132_vm10, %v1835_v47  ;;  %3230 = vmatmul.msk.bf16.gmra.mxu0 %vm1132_vm10, %v1835_v47  ;;  %v1768_v53 = vadd.f32 %v1767_v50, %v1682_v18 }
 0x2a5   : > { %v1806_v55 = vadd.f32 %v4083_v0, %v1768_v53  ;;  %v4117_v53 = vpop.f32.mrf.mxu3 }
 0x2a7   : > { %v1822_v37 = vmax.f32 %v1806_v55, 0.0 }
 0x2a9   : > { %v1687_v45 = vpop.f32.mrf.mxu1 }
 0x2aa   : > { %v1769_v27 = vpop.f32.mrf.mxu2 }
 0x2ab   : > { %v1770_v57 = vadd.f32 %v1769_v27, %v1684_v48 }
 0x2ad   : > { %v1807_v56 = vadd.f32 %v4083_v0, %v1770_v57 }
 0x2af   : > { %v1823_v59 = vmax.f32 %v1807_v56, 0.0 }
 0x2b1   : > { %v1836_v43 = vpack.c.bf16 %v1823_v59, %v1822_v37  ;;  %v1689_v2 = vpop.f32.mrf.mxu1  ;;  %v4121_v37 = vpop.f32.mrf.mxu3 }
 0x2b2   : > { %v1772_v8 = vpop.f32.mrf.mxu2 }
 0x2b3   : > { %3209 = vmatmul.msk.bf16.gmra.mxu3 %vm1132_vm10, %v1836_v43  ;;  %3231 = vmatmul.msk.bf16.gmra.mxu0 %vm1132_vm10, %v1836_v43  ;;  %v1773_v3 = vadd.f32 %v1772_v8, %v1687_v45 }
 0x2b5   : > { %v1808_v13 = vadd.f32 %v4083_v0, %v1773_v3 }
 0x2b7   : > { %v1824_v25 = vmax.f32 %v1808_v13, 0.0 }
 0x2b9   : > { %v1692_v11 = vpop.f32.mrf.mxu1 }
 0x2ba   : > { %v1774_v12 = vpop.f32.mrf.mxu2 }
 0x2bb   : > { %v1775_v4 = vadd.f32 %v1774_v12, %v1689_v2 }
 0x2bd   : > { %v1809_v20 = vadd.f32 %v4083_v0, %v1775_v4  ;;  %v3370_v4 = vld [vmem:[%s4539_s4 + $0x28] sm:$0xff] }
 0x2be   : > { %2298 = vmatpush.bf16.msra.mxu2 %v3370_v4  ;;  %v4158_v4 = vld [vmem:[%s4545_s10 + $0x1] ss:$0 sm:$0xff] }
 0x2bf   : > { %v1825_v26 = vmax.f32 %v1809_v20, 0.0  ;;  %v3372_v20 = vld [vmem:[%s4540_s5 + $0x28] sm:$0xff] }
 0x2c0   : > { %2213 = vmatpush.bf16.msra.mxu1 %v3372_v20 }
 0x2c1   : > { %v1837_v30 = vpack.c.bf16 %v1825_v26, %v1824_v25  ;;  %v1694_v31 = vpop.f32.mrf.mxu1  ;;  %v4133_v25 = vpop.f32.mrf.mxu3 }
 0x2c2   : > { %v1777_v18 = vpop.f32.mrf.mxu2 }
 0x2c3   : > { %3210 = vmatmul.msk.bf16.gmra.mxu3 %vm1132_vm10, %v1837_v30  ;;  %3232 = vmatmul.msk.bf16.gmra.mxu0 %vm1132_vm10, %v1837_v30  ;;  %v1778_v16 = vadd.f32 %v1777_v18, %v1692_v11 }
 0x2c5   : > { %v1810_v40 = vadd.f32 %v4083_v0, %v1778_v16 }
 0x2c7   : > { %v1826_v48 = vmax.f32 %v1810_v40, 0.0 }
 0x2c9   : > { %v1697_v14 = vpop.f32.mrf.mxu1 }
 0x2ca   : > { %v1779_v33 = vpop.f32.mrf.mxu2 }
 0x2cb   : > { %v1780_v35 = vadd.f32 %v1779_v33, %v1694_v31  ;;  %v4137_v33 = vpop.f32.mrf.mxu3 }
 0x2cd   : > { %v1811_v47 = vadd.f32 %v4083_v0, %v1780_v35 }
 0x2cf   : > { %v1827_v50 = vmax.f32 %v1811_v47, 0.0 }
 0x2d1   : > { %v1838_v45 = vpack.c.bf16 %v1827_v50, %v1826_v48  ;;  %v1699_v27 = vpop.f32.mrf.mxu1 }
 0x2d2   : > { %v1782_v55 = vpop.f32.mrf.mxu2 }
 0x2d3   : > { %3211 = vmatmul.msk.bf16.gmra.mxu3 %vm1132_vm10, %v1838_v45  ;;  %3233 = vmatmul.msk.bf16.gmra.mxu0 %vm1132_vm10, %v1838_v45  ;;  %v1783_v57 = vadd.f32 %v1782_v55, %v1697_v14 }
 0x2d5   : > { %v1812_v59 = vadd.f32 %v4083_v0, %v1783_v57 }
 0x2d7   : > { %v1828_v3 = vmax.f32 %v1812_v59, 0.0 }
 0x2d9   : > { %v1702_v2 = vpop.f32.mrf.mxu1 }
 0x2da   : > { %v1784_v56 = vpop.f32.mrf.mxu2 }
 0x2db   : > { %v1785_v43 = vadd.f32 %v1784_v56, %v1699_v27  ;;  %v4141_v27 = vpop.f32.mrf.mxu3 }
 0x2dd   : > { %v1813_v8 = vadd.f32 %v4083_v0, %v1785_v43  ;;  %v3371_v43 = vld [vmem:[%s4540_s5 + $0x20] sm:$0xff] }
 0x2de   : > { %2214 = vmatpush.bf16.msra.mxu1 %v3371_v43 }
 0x2df   : > { %v1829_v11 = vmax.f32 %v1813_v8, 0.0 }
 0x2e1   : > { %v1839_v12 = vpack.c.bf16 %v1829_v11, %v1828_v3  ;;  %v1704_v26 = vpop.f32.mrf.mxu1  ;;  %v3369_v11 = vld [vmem:[%s4539_s4 + $0x20] sm:$0xff] }
 0x2e2   : > { %v1787_v13 = vpop.f32.mrf.mxu2  ;;  %2299 = vmatpush.bf16.msra.mxu2 %v3369_v11  ;;  %v2057_v11 = vperm.slane %v3657_v5, 3 }
 0x2e3   : > { %3212 = vmatmul.msk.bf16.gmra.mxu3 %vm1132_vm10, %v1839_v12  ;;  %3234 = vmatmul.msk.bf16.gmra.mxu0 %vm1132_vm10, %v1839_v12  ;;  %v1788_v30 = vadd.f32 %v1787_v13, %v1702_v2  ;;  %v4153_v13 = vpop.f32.mrf.mxu3 }
 0x2e5   : > { %v1814_v18 = vadd.f32 %v4083_v0, %v1788_v30 }
 0x2e7   : > { %v1830_v40 = vmax.f32 %v1814_v18, 0.0 }
 0x2e9   : > { %v1707_v47 = vpop.f32.mrf.mxu1 }
 0x2ea   : > { %v1789_v31 = vpop.f32.mrf.mxu2 }
 0x2eb   : > { %v1790_v16 = vadd.f32 %v1789_v31, %v1704_v26  ;;  %v4165_v26 = vld [vmem:[%s4543_s8] ss:$0 sm:$0xff] }
 0x2ec   : > { %v1389_v31 = vadd.f32 %v4165_v26, %v4076_v60 }
 0x2ed   : > { %v1815_v14 = vadd.f32 %v4083_v0, %v1790_v16  ;;  %v2056_v16 = vperm.slane %v3644_v46, 3 }
 0x2ef   : > { %v1831_v35 = vmax.f32 %v1815_v14, 0.0 }
 0x2f1   : > { %v1840_v48 = vpack.c.bf16 %v1831_v35, %v1830_v40  ;;  %v1709_v55 = vpop.f32.mrf.mxu1 }
 0x2f2   : > { %v1792_v50 = vpop.f32.mrf.mxu2 }
 0x2f3   : > { %3213 = vmatmul.msk.bf16.gmra.mxu3 %vm1132_vm10, %v1840_v48  ;;  %3235 = vmatmul.msk.bf16.gmra.mxu0 %vm1132_vm10, %v1840_v48  ;;  %v1793_v45 = vadd.f32 %v1792_v50, %v1707_v47 }
 0x2f5   : > { %v1816_v56 = vadd.f32 %v4083_v0, %v1793_v45 }
 0x2f7   : > { %v1832_v8 = vmax.f32 %v1816_v56, 0.0 }
 0x2fa   : > { %v1794_v57 = vpop.f32.mrf.mxu2 }
 0x2fb   : > { %v1795_v59 = vadd.f32 %v1794_v57, %v1709_v55 }
 0x2fd   : > { %v1817_v2 = vadd.f32 %v4083_v0, %v1795_v59  ;;  %v4160_v0 = vpop.f32.mrf.mxu3 }
 0x2ff   : > { %v1833_v3 = vmax.f32 %v1817_v2, 0.0 }
 0x301   : > { %v1841_v12 = vpack.c.bf16 %v1833_v3, %v1832_v8 }
 0x303   : > { %3214 = vmatmul.msk.bf16.gmra.mxu3 %vm1132_vm10, %v1841_v12  ;;  %3236 = vmatmul.msk.bf16.gmra.mxu0 %vm1132_vm10, %v1841_v12 }
 0x310   : > { %v2000_v20 = vpop.f32.mrf.mxu0 }
 0x311   : > { %v2001_v30 = vadd.f32 %v4158_v4, %v2000_v20 }
 0x313   : > { %v2040_v18 = vadd.f32 %v2001_v30, %v3946_v7 }
 0x315   : > { %v2064_v47 = vmul.f32 %v2056_v16, %v2040_v18 }
 0x316   : > { %v1892_v14 = vpop.f32.mrf.mxu3 }
 0x317   : > { %v4172_v40 = vadd.f32 %v1892_v14, %v1389_v31  ;;  %v2097_v45 = vrot.slane %v2064_v47, 4 }
 0x318   : > { %v2002_v35 = vpop.f32.mrf.mxu0 }
 0x319   : > { %v2003_v48 = vadd.f32 %v4158_v4, %v2002_v35  ;;  %v2144_v7 = vsel %vm2096_vm0, 0.0, %v2097_v45 }
 0x31b   : > { %v2041_v50 = vadd.f32 %v2003_v48, %v3952_v19  ;;  %v1394_v19 = vadd.f32 %v4165_v26, %v4085_v62 }
 0x31d   : > { %v2065_v55 = vmul.f32 %v2056_v16, %v2041_v50 }
 0x31e   : > { %v4176_v57 = vpop.f32.mrf.mxu3 }
 0x31f   : > { %v2098_v56 = vrot.slane %v2065_v55, 4  ;;  %v2163_v60 = vpack.c.bf16 %v2065_v55, %v2064_v47 }
 0x320   : > { %v2005_v59 = vpop.f32.mrf.mxu0 }
 0x321   : > { %v2099_v43 = vsel %vm2096_vm0, %v2097_v45, %v2098_v56  ;;  %v2006_v2 = vadd.f32 %v4158_v4, %v2005_v59  ;;  %3253 = vmatmul.msk.bf16.vlgmr.msra.gmra.mxu1 %vm1132_vm10, %v2163_v60 }
 0x322   : > { %v2150_v8 = vpack.c.bf16 %v2099_v43, %v2144_v7  ;;  %v2058_v7 = vperm.slane %v3684_v44, 3 }
 0x323   : > { %v2042_v3 = vadd.f32 %v2006_v2, %v3961_v41 }
 0x324   : > { %3269 = vmatmul.msk.bf16.vlgmr.msra.gmra.mxu2 %vm1132_vm10, %v2150_v8 }
 0x325   : > { %v2066_v31 = vmul.f32 %v2057_v11, %v2042_v3 }
 0x326   : > { %v1897_v12 = vpop.f32.mrf.mxu3 }
 0x327   : > { %v4187_v20 = vadd.f32 %v1897_v12, %v1394_v19  ;;  %v2100_v14 = vrot.slane %v2066_v31, 4 }
 0x328   : > { %v2007_v30 = vpop.f32.mrf.mxu0 }
 0x329   : > { %v2008_v18 = vadd.f32 %v4158_v4, %v2007_v30  ;;  %v2101_v45 = vsel %vm2096_vm0, %v2098_v56, %v2100_v14 }
 0x32b   : > { %v2043_v16 = vadd.f32 %v2008_v18, %v3967_v34  ;;  %v1399_v34 = vadd.f32 %v4165_v26, %v4095_v39 }
 0x32d   : > { %v2067_v35 = vmul.f32 %v2057_v11, %v2043_v16 }
 0x32e   : > { %v4191_v47 = vpop.f32.mrf.mxu3 }
 0x32f   : > { %v2102_v48 = vrot.slane %v2067_v35, 4  ;;  %v2164_v50 = vpack.c.bf16 %v2067_v35, %v2066_v31 }
 0x330   : > { %v2010_v62 = vpop.f32.mrf.mxu0 }
 0x331   : > { %v2011_v41 = vadd.f32 %v4158_v4, %v2010_v62  ;;  %3254 = vmatmul.msk.bf16.gmra.mxu1 %vm1132_vm10, %v2164_v50  ;;  %v2103_v55 = vsel %vm2096_vm0, %v2100_v14, %v2102_v48  ;;  %v2059_v62 = vperm.slane %v3708_v17, 3 }
 0x332   : > { %v2151_v60 = vpack.c.bf16 %v2103_v55, %v2101_v45 }
 0x333   : > { %v2044_v59 = vadd.f32 %v2011_v41, %v3976_v58 }
 0x334   : > { %3270 = vmatmul.msk.bf16.gmra.mxu2 %vm1132_vm10, %v2151_v60 }
 0x335   : > { %v2068_v19 = vmul.f32 %v2058_v7, %v2044_v59 }
 0x336   : > { %v1902_v43 = vpop.f32.mrf.mxu3 }
 0x337   : > { %v4202_v2 = vadd.f32 %v1902_v43, %v1399_v34  ;;  %v2104_v11 = vrot.slane %v2068_v19, 4 }
 0x338   : > { %v2012_v8 = vpop.f32.mrf.mxu0 }
 0x339   : > { %v2013_v3 = vadd.f32 %v4158_v4, %v2012_v8  ;;  %v2105_v16 = vsel %vm2096_vm0, %v2102_v48, %v2104_v11 }
 0x33b   : > { %v2045_v56 = vadd.f32 %v2013_v3, %v3982_v61  ;;  %v1404_v61 = vadd.f32 %v4165_v26, %v4103_v9 }
 0x33d   : > { %v2069_v12 = vmul.f32 %v2058_v7, %v2045_v56 }
 0x33e   : > { %v4206_v30 = vpop.f32.mrf.mxu3 }
 0x33f   : > { %v2106_v31 = vrot.slane %v2069_v12, 4  ;;  %v2165_v18 = vpack.c.bf16 %v2069_v12, %v2068_v19  ;;  %v2060_v12 = vperm.slane %v3735_v54, 3 }
 0x340   : > { %v2015_v39 = vpop.f32.mrf.mxu0 }
 0x341   : > { %v2016_v58 = vadd.f32 %v4158_v4, %v2015_v39  ;;  %3255 = vmatmul.msk.bf16.gmra.mxu1 %vm1132_vm10, %v2165_v18  ;;  %v2107_v14 = vsel %vm2096_vm0, %v2104_v11, %v2106_v31 }
 0x342   : > { %v2152_v35 = vpack.c.bf16 %v2107_v14, %v2105_v16 }
 0x343   : > { %v2046_v50 = vadd.f32 %v2016_v58, %v3991_v10 }
 0x344   : > { %3271 = vmatmul.msk.bf16.gmra.mxu2 %vm1132_vm10, %v2152_v35 }
 0x345   : > { %v2070_v60 = vmul.f32 %v2059_v62, %v2046_v50 }
 0x346   : > { %v1907_v41 = vpop.f32.mrf.mxu3 }
 0x347   : > { %v4217_v45 = vadd.f32 %v1907_v41, %v1404_v61  ;;  %v2108_v59 = vrot.slane %v2070_v60, 4 }
 0x348   : > { %v2017_v55 = vpop.f32.mrf.mxu0 }
 0x349   : > { %v2018_v34 = vadd.f32 %v4158_v4, %v2017_v55  ;;  %v2109_v3 = vsel %vm2096_vm0, %v2106_v31, %v2108_v59 }
 0x34b   : > { %v2047_v48 = vadd.f32 %v2018_v34, %v3997_v22 }
 0x34d   : > { %v2071_v7 = vmul.f32 %v2059_v62, %v2047_v48 }
 0x34e   : > { %v4221_v43 = vpop.f32.mrf.mxu3 }
 0x34f   : > { %v2110_v8 = vrot.slane %v2071_v7, 4  ;;  %v2166_v19 = vpack.c.bf16 %v2071_v7, %v2070_v60 }
 0x350   : > { %v2020_v9 = vpop.f32.mrf.mxu0 }
 0x351   : > { %v2021_v10 = vadd.f32 %v4158_v4, %v2020_v9  ;;  %3256 = vmatmul.msk.bf16.gmra.mxu1 %vm1132_vm10, %v2166_v19  ;;  %v2111_v56 = vsel %vm2096_vm0, %v2108_v59, %v2110_v8  ;;  %v2061_v59 = vperm.slane %v3745_v6, 3 }
 0x352   : > { %v2153_v11 = vpack.c.bf16 %v2111_v56, %v2109_v3 }
 0x353   : > { %v2048_v22 = vadd.f32 %v2021_v10, %v4006_v24 }
 0x354   : > { %3272 = vmatmul.msk.bf16.gmra.mxu2 %vm1132_vm10, %v2153_v11 }
 0x355   : > { %v2072_v58 = vmul.f32 %v2060_v12, %v2048_v22 }
 0x356   : > { %v4230_v18 = vpop.f32.mrf.mxu3 }
 0x357   : > { %v2112_v35 = vrot.slane %v2072_v58, 4 }
 0x358   : > { %v2022_v39 = vpop.f32.mrf.mxu0 }
 0x359   : > { %v2023_v16 = vadd.f32 %v4158_v4, %v2022_v39  ;;  %v2113_v24 = vsel %vm2096_vm0, %v2110_v8, %v2112_v35 }
 0x35b   : > { %v2049_v14 = vadd.f32 %v2023_v16, %v4012_v42  ;;  %v1414_v42 = vadd.f32 %v4165_v26, %v4121_v37 }
 0x35d   : > { %v2073_v61 = vmul.f32 %v2060_v12, %v2049_v14 }
 0x35e   : > { %v4234_v31 = vpop.f32.mrf.mxu3 }
 0x35f   : > { %v2114_v50 = vrot.slane %v2073_v61, 4  ;;  %v2167_v62 = vpack.c.bf16 %v2073_v61, %v2072_v58 }
 0x360   : > { %v2025_v41 = vpop.f32.mrf.mxu0 }
 0x361   : > { %v2026_v55 = vadd.f32 %v4158_v4, %v2025_v41  ;;  %3257 = vmatmul.msk.bf16.gmra.mxu1 %vm1132_vm10, %v2167_v62  ;;  %v2115_v60 = vsel %vm2096_vm0, %v2112_v35, %v2114_v50  ;;  %v1419_v35 = vadd.f32 %v4165_v26, %v4137_v33  ;;  %v2062_v62 = vperm.slane %v3751_v23, 3 }
 0x362   : > { %v2154_v34 = vpack.c.bf16 %v2115_v60, %v2113_v24 }
 0x363   : > { %v2050_v48 = vadd.f32 %v2026_v55, %v4021_v51 }
 0x364   : > { %3273 = vmatmul.msk.bf16.gmra.mxu2 %vm1132_vm10, %v2154_v34 }
 0x365   : > { %v2074_v10 = vmul.f32 %v2061_v59, %v2050_v48 }
 0x366   : > { %v1917_v7 = vpop.f32.mrf.mxu3 }
 0x367   : > { %v4245_v19 = vadd.f32 %v1917_v7, %v1414_v42  ;;  %v2116_v56 = vrot.slane %v2074_v10, 4 }
 0x368   : > { %v2027_v9 = vpop.f32.mrf.mxu0 }
 0x369   : > { %v2028_v3 = vadd.f32 %v4158_v4, %v2027_v9  ;;  %v2117_v58 = vsel %vm2096_vm0, %v2114_v50, %v2116_v56 }
 0x36b   : > { %v2051_v8 = vadd.f32 %v2028_v3, %v4027_v1  ;;  %v3374_v1 = vld [vmem:[%s4542_s7 + $0x28] sm:$0xff] }
 0x36c   : > { %2433 = vmatpush.bf16.msrb.mxu3 %v3374_v1 }
 0x36d   : > { %v2075_v11 = vmul.f32 %v2061_v59, %v2051_v8 }
 0x36e   : > { %v4249_v22 = vpop.f32.mrf.mxu3 }
 0x36f   : > { %v2118_v12 = vrot.slane %v2075_v11, 4  ;;  %v2168_v39 = vpack.c.bf16 %v2075_v11, %v2074_v10  ;;  %v2063_v11 = vperm.slane %v3729_v38, 3 }
 0x370   : > { %v2030_v37 = vpop.f32.mrf.mxu0 }
 0x371   : > { %v2031_v51 = vadd.f32 %v4158_v4, %v2030_v37  ;;  %3258 = vmatmul.msk.bf16.gmra.mxu1 %vm1132_vm10, %v2168_v39  ;;  %v2119_v16 = vsel %vm2096_vm0, %v2116_v56, %v2118_v12 }
 0x372   : > { %v2155_v14 = vpack.c.bf16 %v2119_v16, %v2117_v58 }
 0x373   : > { %v2052_v61 = vadd.f32 %v2031_v51, %v4039_v15 }
 0x374   : > { %3274 = vmatmul.msk.bf16.gmra.mxu2 %vm1132_vm10, %v2155_v14 }
 0x375   : > { %v2076_v24 = vmul.f32 %v2062_v62, %v2052_v61 }
 0x376   : > { %v1922_v41 = vpop.f32.mrf.mxu3 }
 0x377   : > { %v4263_v55 = vadd.f32 %v1922_v41, %v1419_v35  ;;  %v2120_v42 = vrot.slane %v2076_v24, 4  ;;  %v3373_v41 = vld [vmem:[%s4542_s7 + $0x20] sm:$0xff] }
 0x378   : > { %v2032_v50 = vpop.f32.mrf.mxu0  ;;  %2434 = vmatpush.bf16.msrb.mxu3 %v3373_v41 }
 0x379   : > { %v2033_v60 = vadd.f32 %v4158_v4, %v2032_v50  ;;  %v2121_v10 = vsel %vm2096_vm0, %v2118_v12, %v2120_v42 }
 0x37b   : > { %v2053_v34 = vadd.f32 %v2033_v60, %v4045_v28  ;;  %v1424_v28 = vadd.f32 %v4165_v26, %v4153_v13  ;;  %v4292_v60 = vld [vmem:[%s4541_s6 + $0x2] ss:$0 sm:$0xff] }
 0x37d   : > { %v2077_v48 = vmul.f32 %v2062_v62, %v2053_v34 }
 0x37e   : > { %v4267_v59 = vpop.f32.mrf.mxu3 }
 0x37f   : > { %v2122_v7 = vrot.slane %v2077_v48, 4  ;;  %v2169_v33 = vpack.c.bf16 %v2077_v48, %v2076_v24 }
 0x380   : > { %v2035_v9 = vpop.f32.mrf.mxu0 }
 0x381   : > { %v2036_v15 = vadd.f32 %v4158_v4, %v2035_v9  ;;  %3259 = vmatmul.msk.bf16.gmra.mxu1 %vm1132_vm10, %v2169_v33  ;;  %v2123_v3 = vsel %vm2096_vm0, %v2120_v42, %v2122_v7 }
 0x382   : > { %v2156_v8 = vpack.c.bf16 %v2123_v3, %v2121_v10 }
 0x383   : > { %v2054_v56 = vadd.f32 %v2036_v15, %v4054_v21 }
 0x384   : > { %3275 = vmatmul.msk.bf16.gmra.mxu2 %vm1132_vm10, %v2156_v8 }
 0x385   : > { %v2078_v58 = vmul.f32 %v2063_v11, %v2054_v56 }
 0x386   : > { %v1927_v39 = vpop.f32.mrf.mxu3 }
 0x387   : > { %v4278_v37 = vadd.f32 %v1927_v39, %v1424_v28  ;;  %v2124_v14 = vrot.slane %v2078_v58, 4 }
 0x388   : > { %v2037_v51 = vpop.f32.mrf.mxu0 }
 0x389   : > { %v2038_v16 = vadd.f32 %v4158_v4, %v2037_v51  ;;  %v2125_v13 = vsel %vm2096_vm0, %v2122_v7, %v2124_v14 }
 0x38b   : > { %v2055_v12 = vadd.f32 %v2038_v16, %v4060_v49 }
 0x38d   : > { %v2079_v1 = vmul.f32 %v2063_v11, %v2055_v12 }
 0x38f   : > { %v2126_v35 = vrot.slane %v2079_v1, 4  ;;  %v2170_v61 = vpack.c.bf16 %v2079_v1, %v2078_v58 }
 0x391   : > { %3260 = vmatmul.msk.bf16.gmra.mxu1 %vm1132_vm10, %v2170_v61  ;;  %v2127_v21 = vsel %vm2096_vm0, %v2124_v14, %v2126_v35 }
 0x392   : > { %v2157_v62 = vpack.c.bf16 %v2127_v21, %v2125_v13 }
 0x394   : > { %3276 = vmatmul.msk.bf16.gmra.mxu2 %vm1132_vm10, %v2157_v62 }
 0x39e   : > { %v2216_v4 = vpop.f32.mrf.mxu1 }
 0x3a6   : > { %v2218_v49 = vpop.f32.mrf.mxu1 }
 0x3a7   : > { %v2301_v50 = vpop.f32.mrf.mxu2 }
 0x3a8   : > { %v2302_v24 = vadd.f32 %v2301_v50, %v2216_v4 }
 0x3aa   : > { %v2346_v48 = vadd.f32 %v4292_v60, %v2302_v24 }
 0x3ac   : > { %v2362_v9 = vmax.f32 %v2346_v48, 0.0 }
 0x3ae   : > { %v2221_v34 = vpop.f32.mrf.mxu1 }
 0x3af   : > { %v2303_v42 = vpop.f32.mrf.mxu2 }
 0x3b0   : > { %v2304_v7 = vadd.f32 %v2303_v42, %v2218_v49 }
 0x3b2   : > { %v2347_v33 = vadd.f32 %v4292_v60, %v2304_v7 }
 0x3b4   : > { %v2363_v15 = vmax.f32 %v2347_v33, 0.0 }
 0x3b6   : > { %v2378_v10 = vpack.c.bf16 %v2363_v15, %v2362_v9  ;;  %v2223_v3 = vpop.f32.mrf.mxu1 }
 0x3b7   : > { %v2306_v8 = vpop.f32.mrf.mxu2 }
 0x3b8   : > { %3290 = vmatmul.msk.bf16.vlgmr.msrb.gmra.mxu3 %vm1132_vm10, %v2378_v10  ;;  %v2307_v28 = vadd.f32 %v2306_v8, %v2221_v34 }
 0x3ba   : > { %v2348_v39 = vadd.f32 %v4292_v60, %v2307_v28 }
 0x3bc   : > { %v2364_v16 = vmax.f32 %v2348_v39, 0.0 }
 0x3be   : > { %v2226_v56 = vpop.f32.mrf.mxu1 }
 0x3bf   : > { %v2308_v11 = vpop.f32.mrf.mxu2 }
 0x3c0   : > { %v2309_v51 = vadd.f32 %v2308_v11, %v2223_v3 }
 0x3c2   : > { %v2349_v58 = vadd.f32 %v4292_v60, %v2309_v51 }
 0x3c4   : > { %v2365_v12 = vmax.f32 %v2349_v58, 0.0 }
 0x3c6   : > { %v2379_v14 = vpack.c.bf16 %v2365_v12, %v2364_v16  ;;  %v2228_v1 = vpop.f32.mrf.mxu1 }
 0x3c7   : > { %v2311_v35 = vpop.f32.mrf.mxu2 }
 0x3c8   : > { %3291 = vmatmul.msk.bf16.gmra.mxu3 %vm1132_vm10, %v2379_v14  ;;  %v2312_v61 = vadd.f32 %v2311_v35, %v2226_v56 }
 0x3ca   : > { %v2350_v62 = vadd.f32 %v4292_v60, %v2312_v61 }
 0x3cc   : > { %v2366_v49 = vmax.f32 %v2350_v62, 0.0 }
 0x3ce   : > { %v2231_v13 = vpop.f32.mrf.mxu1 }
 0x3cf   : > { %v2313_v21 = vpop.f32.mrf.mxu2 }
 0x3d0   : > { %v2314_v41 = vadd.f32 %v2313_v21, %v2228_v1 }
 0x3d2   : > { %v2351_v4 = vadd.f32 %v4292_v60, %v2314_v41 }
 0x3d4   : > { %v2367_v50 = vmax.f32 %v2351_v4, 0.0 }
 0x3d6   : > { %v2380_v24 = vpack.c.bf16 %v2367_v50, %v2366_v49  ;;  %v2233_v34 = vpop.f32.mrf.mxu1 }
 0x3d7   : > { %v2316_v42 = vpop.f32.mrf.mxu2 }
 0x3d8   : > { %3292 = vmatmul.msk.bf16.gmra.mxu3 %vm1132_vm10, %v2380_v24  ;;  %v2317_v48 = vadd.f32 %v2316_v42, %v2231_v13 }
 0x3da   : > { %v2352_v9 = vadd.f32 %v4292_v60, %v2317_v48 }
 0x3dc   : > { %v2368_v3 = vmax.f32 %v2352_v9, 0.0 }
 0x3de   : > { %v2236_v7 = vpop.f32.mrf.mxu1 }
 0x3df   : > { %v2318_v33 = vpop.f32.mrf.mxu2 }
 0x3e0   : > { %v2319_v15 = vadd.f32 %v2318_v33, %v2233_v34  ;;  %v3376_v33 = vld [vmem:[%s4546_s11 + $0x8] sm:$0xff] }
 0x3e1   : > { %2611 = vmatpush.bf16.msrb.mxu0 %v3376_v33  ;;  %v2513_v33 = vperm.slane %v3644_v46, 4 }
 0x3e2   : > { %v2353_v10 = vadd.f32 %v4292_v60, %v2319_v15 }
 0x3e4   : > { %v2369_v8 = vmax.f32 %v2353_v10, 0.0 }
 0x3e6   : > { %v2381_v28 = vpack.c.bf16 %v2369_v8, %v2368_v3  ;;  %v2238_v56 = vpop.f32.mrf.mxu1 }
 0x3e7   : > { %v2321_v11 = vpop.f32.mrf.mxu2 }
 0x3e8   : > { %3293 = vmatmul.msk.bf16.gmra.mxu3 %vm1132_vm10, %v2381_v28  ;;  %v2322_v39 = vadd.f32 %v2321_v11, %v2236_v7 }
 0x3ea   : > { %v2354_v16 = vadd.f32 %v4292_v60, %v2322_v39 }
 0x3ec   : > { %v2370_v1 = vmax.f32 %v2354_v16, 0.0 }
 0x3ee   : > { %v2241_v51 = vpop.f32.mrf.mxu1 }
 0x3ef   : > { %v2323_v58 = vpop.f32.mrf.mxu2 }
 0x3f0   : > { %v2324_v12 = vadd.f32 %v2323_v58, %v2238_v56 }
 0x3f2   : > { %v2355_v14 = vadd.f32 %v4292_v60, %v2324_v12 }
 0x3f4   : > { %v2371_v35 = vmax.f32 %v2355_v14, 0.0 }
 0x3f6   : > { %v2382_v61 = vpack.c.bf16 %v2371_v35, %v2370_v1  ;;  %v2243_v13 = vpop.f32.mrf.mxu1 }
 0x3f7   : > { %v2326_v21 = vpop.f32.mrf.mxu2 }
 0x3f8   : > { %3294 = vmatmul.msk.bf16.gmra.mxu3 %vm1132_vm10, %v2382_v61  ;;  %v2327_v62 = vadd.f32 %v2326_v21, %v2241_v51 }
 0x3fa   : > { %v2356_v4 = vadd.f32 %v4292_v60, %v2327_v62 }
 0x3fc   : > { %v2372_v34 = vmax.f32 %v2356_v4, 0.0  ;;  %v4324_v4 = vpop.f32.mrf.mxu3 }
 0x3fe   : > { %v2246_v50 = vpop.f32.mrf.mxu1 }
 0x3ff   : > { %v2328_v41 = vpop.f32.mrf.mxu2 }
 0x400   : > { %v2329_v49 = vadd.f32 %v2328_v41, %v2243_v13  ;;  %v3375_v41 = vld [vmem:[%s4546_s11] sm:$0xff] }
 0x401   : > { %2612 = vmatpush.bf16.msrb.mxu0 %v3375_v41 }
 0x402   : > { %v2357_v24 = vadd.f32 %v4292_v60, %v2329_v49  ;;  %v4329_v49 = vld [vmem:[%s4543_s8 + $0x1] ss:$0 sm:$0xff] }
 0x404   : > { %v2373_v42 = vmax.f32 %v2357_v24, 0.0  ;;  %v1953_v24 = vadd.f32 %v4329_v49, %v4172_v40 }
 0x406   : > { %v2383_v48 = vpack.c.bf16 %v2373_v42, %v2372_v34  ;;  %v2248_v9 = vpop.f32.mrf.mxu1 }
 0x407   : > { %v2331_v7 = vpop.f32.mrf.mxu2 }
 0x408   : > { %3295 = vmatmul.msk.bf16.gmra.mxu3 %vm1132_vm10, %v2383_v48  ;;  %v2332_v15 = vadd.f32 %v2331_v7, %v2246_v50  ;;  %v4339_v48 = vld [vmem:[%s4543_s8 + $0x2] ss:$0 sm:$0xff] }
 0x40a   : > { %v2358_v3 = vadd.f32 %v4292_v60, %v2332_v15 }
 0x40c   : > { %v2374_v56 = vmax.f32 %v2358_v3, 0.0 }
 0x40e   : > { %v2251_v39 = vpop.f32.mrf.mxu1 }
 0x40f   : > { %v2333_v10 = vpop.f32.mrf.mxu2 }
 0x410   : > { %v2334_v8 = vadd.f32 %v2333_v10, %v2248_v9 }
 0x412   : > { %v2359_v28 = vadd.f32 %v4292_v60, %v2334_v8 }
 0x414   : > { %v2375_v11 = vmax.f32 %v2359_v28, 0.0 }
 0x416   : > { %v2384_v51 = vpack.c.bf16 %v2375_v11, %v2374_v56  ;;  %v2253_v12 = vpop.f32.mrf.mxu1  ;;  %v1396_v56 = vadd.f32 %v4165_v26, %v4091_v36 }
 0x417   : > { %v2336_v58 = vpop.f32.mrf.mxu2 }
 0x418   : > { %3296 = vmatmul.msk.bf16.gmra.mxu3 %vm1132_vm10, %v2384_v51  ;;  %v2337_v16 = vadd.f32 %v2336_v58, %v2251_v39  ;;  %v1955_v39 = vadd.f32 %v4329_v49, %v4187_v20  ;;  %v1935_v51 = vadd.f32 %v4191_v47, %v1396_v56  ;;  %v1401_v47 = vadd.f32 %v4165_v26, %v4099_v52 }
 0x41a   : > { %v2360_v1 = vadd.f32 %v4292_v60, %v2337_v16 }
 0x41c   : > { %v2376_v13 = vmax.f32 %v2360_v1, 0.0 }
 0x41f   : > { %v2338_v14 = vpop.f32.mrf.mxu2 }
 0x420   : > { %v2339_v35 = vadd.f32 %v2338_v14, %v2253_v12  ;;  %v2514_v12 = vperm.slane %v3657_v5, 4  ;;  %v1956_v14 = vadd.f32 %v4329_v49, %v1935_v51 }
 0x422   : > { %v2361_v61 = vadd.f32 %v4292_v60, %v2339_v35  ;;  %v1391_v60 = vadd.f32 %v4165_v26, %v4078_v63 }
 0x424   : > { %v2377_v21 = vmax.f32 %v2361_v61, 0.0  ;;  %v1933_v34 = vadd.f32 %v4176_v57, %v1391_v60  ;;  %v1937_v60 = vadd.f32 %v4206_v30, %v1401_v47  ;;  %v1406_v30 = vadd.f32 %v4165_v26, %v4108_v29 }
 0x425   : > { %v1409_v29 = vadd.f32 %v4165_v26, %v4113_v32 }
 0x426   : > { %v2385_v62 = vpack.c.bf16 %v2377_v21, %v2376_v13  ;;  %v1954_v9 = vadd.f32 %v4329_v49, %v1933_v34 }
 0x428   : > { %3297 = vmatmul.msk.bf16.gmra.mxu3 %vm1132_vm10, %v2385_v62 }
 0x43b   : > { %v2436_v50 = vpop.f32.mrf.mxu3 }
 0x43c   : > { %v2476_v42 = vadd.f32 %v2436_v50, %v1953_v24  ;;  %v1957_v50 = vadd.f32 %v4329_v49, %v4202_v2 }
 0x43e   : > { %v2497_v7 = vadd.f32 %v4339_v48, %v2476_v42  ;;  %v2515_v42 = vperm.slane %v3684_v44, 4 }
 0x440   : > { %v2521_v63 = vmul.f32 %v2513_v33, %v2497_v7  ;;  %v1958_v7 = vadd.f32 %v4329_v49, %v1937_v60 }
 0x442   : > { %v2537_v8 = vmax.f32 %v2521_v63, 0.0 }
 0x443   : > { %v2438_v15 = vpop.f32.mrf.mxu3 }
 0x444   : > { %v2477_v10 = vadd.f32 %v2438_v15, %v1954_v9 }
 0x446   : > { %v2498_v3 = vadd.f32 %v4339_v48, %v2477_v10 }
 0x448   : > { %v2522_v40 = vmul.f32 %v2513_v33, %v2498_v3 }
 0x44a   : > { %v2538_v57 = vmax.f32 %v2522_v40, 0.0 }
 0x44b   : > { %v2441_v28 = vpop.f32.mrf.mxu3 }
 0x44c   : > { %v2557_v11 = vpack.c.bf16 %v2538_v57, %v2537_v8  ;;  %v2478_v58 = vadd.f32 %v2441_v28, %v1955_v39  ;;  %v1959_v8 = vadd.f32 %v4329_v49, %v4217_v45  ;;  %v1939_v57 = vadd.f32 %v4221_v43, %v1406_v30 }
 0x44d   : > { %v1940_v45 = vadd.f32 %v4230_v18, %v1409_v29  ;;  %v2519_v29 = vperm.slane %v3751_v23, 4 }
 0x44e   : > { %3307 = vmatmul.msk.bf16.vlgmr.msrb.gmra.mxu0 %vm1132_vm10, %v2557_v11  ;;  %v2499_v16 = vadd.f32 %v4339_v48, %v2478_v58  ;;  %v2516_v11 = vperm.slane %v3708_v17, 4  ;;  %v1960_v39 = vadd.f32 %v4329_v49, %v1939_v57 }
 0x450   : > { %v2523_v61 = vmul.f32 %v2514_v12, %v2499_v16 }
 0x452   : > { %v2539_v21 = vmax.f32 %v2523_v61, 0.0  ;;  %v1411_v61 = vadd.f32 %v4165_v26, %v4117_v53 }
 0x453   : > { %v2443_v1 = vpop.f32.mrf.mxu3 }
 0x454   : > { %v2479_v35 = vadd.f32 %v2443_v1, %v1956_v14 }
 0x456   : > { %v2500_v36 = vadd.f32 %v4339_v48, %v2479_v35 }
 0x458   : > { %v2524_v13 = vmul.f32 %v2514_v12, %v2500_v36 }
 0x45a   : > { %v2540_v62 = vmax.f32 %v2524_v13, 0.0  ;;  %v1961_v13 = vadd.f32 %v4329_v49, %v1940_v45 }
 0x45b   : > { %v2446_v20 = vpop.f32.mrf.mxu3 }
 0x45c   : > { %v2558_v41 = vpack.c.bf16 %v2540_v62, %v2539_v21  ;;  %v2480_v24 = vadd.f32 %v2446_v20, %v1957_v50  ;;  %v1941_v21 = vadd.f32 %v4234_v31, %v1411_v61  ;;  %v2517_v20 = vperm.slane %v3735_v54, 4 }
 0x45d   : > { %v1416_v31 = vadd.f32 %v4165_v26, %v4133_v25  ;;  %v1426_v61 = vadd.f32 %v4165_v26, %v4160_v0 }
 0x45e   : > { %3308 = vmatmul.msk.bf16.gmra.mxu0 %vm1132_vm10, %v2558_v41  ;;  %v2501_v34 = vadd.f32 %v4339_v48, %v2480_v24  ;;  %v1962_v18 = vadd.f32 %v4329_v49, %v1941_v21 }
 0x45f   : > { %v1947_v21 = vadd.f32 %v4324_v4, %v1426_v61 }
 0x460   : > { %v2525_v15 = vmul.f32 %v2515_v42, %v2501_v34 }
 0x462   : > { %v2541_v63 = vmax.f32 %v2525_v15, 0.0 }
 0x463   : > { %v2448_v33 = vpop.f32.mrf.mxu3 }
 0x464   : > { %v2481_v9 = vadd.f32 %v2448_v33, %v1958_v7  ;;  %v1963_v33 = vadd.f32 %v4329_v49, %v4245_v19 }
 0x466   : > { %v2502_v52 = vadd.f32 %v4339_v48, %v2481_v9  ;;  %v1943_v9 = vadd.f32 %v4249_v22, %v1416_v31  ;;  %v1421_v22 = vadd.f32 %v4165_v26, %v4141_v27  ;;  %v3377_v26 = vld [vmem:[%s4548_s13] sm:$0xff] }
 0x468   : > { %v2526_v10 = vmul.f32 %v2515_v42, %v2502_v52 }
 0x46a   : > { %v2542_v3 = vmax.f32 %v2526_v10, 0.0  ;;  %v2518_v10 = vperm.slane %v3745_v6, 4 }
 0x46b   : > { %v2451_v2 = vpop.f32.mrf.mxu3 }
 0x46c   : > { %v2559_v40 = vpack.c.bf16 %v2542_v3, %v2541_v63  ;;  %v2482_v28 = vadd.f32 %v2451_v2, %v1959_v8  ;;  %v1964_v63 = vadd.f32 %v4329_v49, %v1943_v9 }
 0x46e   : > { %3309 = vmatmul.msk.bf16.gmra.mxu0 %vm1132_vm10, %v2559_v40  ;;  %v2503_v56 = vadd.f32 %v4339_v48, %v2482_v28 }
 0x470   : > { %v2527_v16 = vmul.f32 %v2516_v11, %v2503_v56  ;;  %v1965_v56 = vadd.f32 %v4329_v49, %v4263_v55 }
 0x472   : > { %v2543_v14 = vmax.f32 %v2527_v16, 0.0 }
 0x473   : > { %v2453_v51 = vpop.f32.mrf.mxu3 }
 0x474   : > { %v2483_v58 = vadd.f32 %v2453_v51, %v1960_v39  ;;  %v1945_v39 = vadd.f32 %v4267_v59, %v1421_v22 }
 0x476   : > { %v2504_v12 = vadd.f32 %v4339_v48, %v2483_v58  ;;  %v3380_v58 = vld [vmem:[%s4550_s15 + $0x8] sm:$0xff]  ;;  %v1966_v55 = vadd.f32 %v4329_v49, %v1945_v39 }
 0x477   : > { %2877 = vmatpush.bf16.msrb.mxu2 %v3380_v58 }
 0x478   : > { %v2528_v43 = vmul.f32 %v2516_v11, %v2504_v12  ;;  %v3378_v11 = vld [vmem:[%s4548_s13 + $0x8] sm:$0xff] }
 0x479   : > { %2752 = vmatpush.bf16.msrb.mxu1 %v3378_v11 }
 0x47a   : > { %v2544_v1 = vmax.f32 %v2528_v43, 0.0 }
 0x47b   : > { %v2456_v35 = vpop.f32.mrf.mxu3 }
 0x47c   : > { %v2560_v36 = vpack.c.bf16 %v2544_v1, %v2543_v14  ;;  %v2484_v62 = vadd.f32 %v2456_v35, %v1961_v13  ;;  %v1967_v13 = vadd.f32 %v4329_v49, %v4278_v37  ;;  %v3379_v37 = vld [vmem:[%s4550_s15] sm:$0xff] }
 0x47d   : > { %2753 = vmatpush.bf16.msrb.mxu1 %v3377_v26  ;;  %2878 = vmatpush.bf16.msrb.mxu2 %v3379_v37 }
 0x47e   : > { %3310 = vmatmul.msk.bf16.gmra.mxu0 %vm1132_vm10, %v2560_v36  ;;  %v2505_v32 = vadd.f32 %v4339_v48, %v2484_v62 }
 0x480   : > { %v2529_v50 = vmul.f32 %v2517_v20, %v2505_v32 }
 0x482   : > { %v2545_v24 = vmax.f32 %v2529_v50, 0.0 }
 0x483   : > { %v2458_v47 = vpop.f32.mrf.mxu3 }
 0x484   : > { %v2485_v41 = vadd.f32 %v2458_v47, %v1962_v18  ;;  %v1968_v18 = vadd.f32 %v4329_v49, %v1947_v21 }
 0x486   : > { %v2506_v60 = vadd.f32 %v4339_v48, %v2485_v41 }
 0x488   : > { %v2530_v53 = vmul.f32 %v2517_v20, %v2506_v60  ;;  %v2520_v20 = vperm.slane %v3729_v38, 4 }
 0x48a   : > { %v2546_v34 = vmax.f32 %v2530_v53, 0.0 }
 0x48b   : > { %v2461_v42 = vpop.f32.mrf.mxu3 }
 0x48c   : > { %v2561_v7 = vpack.c.bf16 %v2546_v34, %v2545_v24  ;;  %v2486_v15 = vadd.f32 %v2461_v42, %v1963_v33  ;;  %v2795_v33 = vperm.slane %v3644_v46, 6 }
 0x48e   : > { %3311 = vmatmul.msk.bf16.gmra.mxu0 %vm1132_vm10, %v2561_v7  ;;  %v2507_v52 = vadd.f32 %v4339_v48, %v2486_v15  ;;  %v2670_v7 = vperm.slane %v3644_v46, 5  ;;  %v2671_v46 = vperm.slane %v3657_v5, 5 }
 0x490   : > { %v2531_v30 = vmul.f32 %v2518_v10, %v2507_v52 }
 0x492   : > { %v2547_v8 = vmax.f32 %v2531_v30, 0.0 }
 0x493   : > { %v2463_v3 = vpop.f32.mrf.mxu3 }
 0x494   : > { %v2487_v2 = vadd.f32 %v2463_v3, %v1964_v63 }
 0x496   : > { %v2508_v25 = vadd.f32 %v4339_v48, %v2487_v2 }
 0x498   : > { %v2532_v40 = vmul.f32 %v2518_v10, %v2508_v25 }
 0x49a   : > { %v2548_v57 = vmax.f32 %v2532_v40, 0.0 }
 0x49b   : > { %v2466_v19 = vpop.f32.mrf.mxu3 }
 0x49c   : > { %v2562_v28 = vpack.c.bf16 %v2548_v57, %v2547_v8  ;;  %v2488_v51 = vadd.f32 %v2466_v19, %v1965_v56  ;;  %v2796_v19 = vperm.slane %v3657_v5, 6  ;;  %v2672_v5 = vperm.slane %v3684_v44, 5 }
 0x49e   : > { %3312 = vmatmul.msk.bf16.gmra.mxu0 %vm1132_vm10, %v2562_v28  ;;  %v2509_v27 = vadd.f32 %v4339_v48, %v2488_v51 }
 0x4a0   : > { %v2533_v45 = vmul.f32 %v2519_v29, %v2509_v27 }
 0x4a2   : > { %v2549_v14 = vmax.f32 %v2533_v45, 0.0  ;;  %v2797_v45 = vperm.slane %v3684_v44, 6  ;;  %v2673_v44 = vperm.slane %v3708_v17, 5 }
 0x4a3   : > { %v2468_v16 = vpop.f32.mrf.mxu3 }
 0x4a4   : > { %v2489_v12 = vadd.f32 %v2468_v16, %v1966_v55 }
 0x4a6   : > { %v2510_v59 = vadd.f32 %v4339_v48, %v2489_v12 }
 0x4a8   : > { %v2534_v43 = vmul.f32 %v2519_v29, %v2510_v59 }
 0x4aa   : > { %v2550_v1 = vmax.f32 %v2534_v43, 0.0 }
 0x4ab   : > { %v2471_v35 = vpop.f32.mrf.mxu3 }
 0x4ac   : > { %v2563_v36 = vpack.c.bf16 %v2550_v1, %v2549_v14  ;;  %v2490_v62 = vadd.f32 %v2471_v35, %v1967_v13 }
 0x4ae   : > { %3313 = vmatmul.msk.bf16.gmra.mxu0 %vm1132_vm10, %v2563_v36  ;;  %v2511_v32 = vadd.f32 %v4339_v48, %v2490_v62 }
 0x4b0   : > { %v2535_v50 = vmul.f32 %v2520_v20, %v2511_v32 }
 0x4b2   : > { %v2551_v60 = vmax.f32 %v2535_v50, 0.0 }
 0x4b3   : > { %v2473_v47 = vpop.f32.mrf.mxu3 }
 0x4b4   : > { %v2491_v41 = vadd.f32 %v2473_v47, %v1968_v18  ;;  %v2798_v18 = vperm.slane %v3708_v17, 6  ;;  %v2674_v17 = vperm.slane %v3735_v54, 5 }
 0x4b6   : > { %v2512_v0 = vadd.f32 %v4339_v48, %v2491_v41  ;;  %v4433_v48 = vld [vmem:[%s4547_s12] ss:$0 sm:$0xff] }
 0x4b8   : > { %v2536_v4 = vmul.f32 %v2520_v20, %v2512_v0 }
 0x4ba   : > { %v2552_v53 = vmax.f32 %v2536_v4, 0.0 }
 0x4bc   : > { %v2564_v24 = vpack.c.bf16 %v2552_v53, %v2551_v60 }
 0x4be   : > { %3314 = vmatmul.msk.bf16.gmra.mxu0 %vm1132_vm10, %v2564_v24 }
 0x4cb   : > { %v2614_v49 = vpop.f32.mrf.mxu0 }
 0x4cc   : > { %v2615_v34 = vadd.f32 %v4433_v48, %v2614_v49 }
 0x4ce   : > { %v2654_v31 = vmax.f32 %v2615_v34, 0.0 }
 0x4d0   : > { %v2678_v52 = vmul.f32 %v2670_v7, %v2654_v31  ;;  %v2803_v10 = vmul.f32 %v2795_v33, %v2654_v31 }
 0x4d3   : > { %v2616_v42 = vpop.f32.mrf.mxu0 }
 0x4d4   : > { %v2617_v9 = vadd.f32 %v4433_v48, %v2616_v42  ;;  %v2799_v42 = vperm.slane %v3735_v54, 6  ;;  %v2675_v54 = vperm.slane %v3745_v6, 5 }
 0x4d6   : > { %v2655_v15 = vmax.f32 %v2617_v9, 0.0 }
 0x4d8   : > { %v2679_v63 = vmul.f32 %v2670_v7, %v2655_v15  ;;  %v2804_v3 = vmul.f32 %v2795_v33, %v2655_v15 }
 0x4da   : > { %v2698_v2 = vpack.c.bf16 %v2679_v63, %v2678_v52  ;;  %v2823_v30 = vpack.c.bf16 %v2804_v3, %v2803_v10 }
 0x4db   : > { %v2619_v25 = vpop.f32.mrf.mxu0 }
 0x4dc   : > { %3323 = vmatmul.msk.bf16.vlgmr.msrb.gmra.mxu1 %vm1132_vm10, %v2698_v2  ;;  %3339 = vmatmul.msk.bf16.vlgmr.msrb.gmra.mxu2 %vm1132_vm10, %v2823_v30  ;;  %v2620_v40 = vadd.f32 %v4433_v48, %v2619_v25 }
 0x4de   : > { %v2656_v57 = vmax.f32 %v2620_v40, 0.0  ;;  %v2800_v40 = vperm.slane %v3745_v6, 6  ;;  %v2676_v6 = vperm.slane %v3751_v23, 5 }
 0x4e0   : > { %v2680_v56 = vmul.f32 %v2671_v46, %v2656_v57  ;;  %v2805_v11 = vmul.f32 %v2796_v19, %v2656_v57 }
 0x4e3   : > { %v2621_v8 = vpop.f32.mrf.mxu0 }
 0x4e4   : > { %v2622_v22 = vadd.f32 %v4433_v48, %v2621_v8 }
 0x4e6   : > { %v2657_v28 = vmax.f32 %v2622_v22, 0.0 }
 0x4e8   : > { %v2681_v39 = vmul.f32 %v2671_v46, %v2657_v28  ;;  %v2806_v51 = vmul.f32 %v2796_v19, %v2657_v28 }
 0x4ea   : > { %v2699_v58 = vpack.c.bf16 %v2681_v39, %v2680_v56  ;;  %v2824_v27 = vpack.c.bf16 %v2806_v51, %v2805_v11 }
 0x4eb   : > { %v2624_v29 = vpop.f32.mrf.mxu0 }
 0x4ec   : > { %3324 = vmatmul.msk.bf16.gmra.mxu1 %vm1132_vm10, %v2699_v58  ;;  %3340 = vmatmul.msk.bf16.gmra.mxu2 %vm1132_vm10, %v2824_v27  ;;  %v2625_v55 = vadd.f32 %v4433_v48, %v2624_v29  ;;  %v2801_v29 = vperm.slane %v3751_v23, 6  ;;  %v2677_v23 = vperm.slane %v3729_v38, 5 }
 0x4ee   : > { %v2658_v12 = vmax.f32 %v2625_v55, 0.0 }
 0x4f0   : > { %v2682_v14 = vmul.f32 %v2672_v5, %v2658_v12  ;;  %v2807_v1 = vmul.f32 %v2797_v45, %v2658_v12 }
 0x4f3   : > { %v2626_v16 = vpop.f32.mrf.mxu0 }
 0x4f4   : > { %v2627_v59 = vadd.f32 %v4433_v48, %v2626_v16 }
 0x4f6   : > { %v2659_v43 = vmax.f32 %v2627_v59, 0.0 }
 0x4f8   : > { %v2683_v35 = vmul.f32 %v2672_v5, %v2659_v43  ;;  %v2808_v61 = vmul.f32 %v2797_v45, %v2659_v43 }
 0x4fa   : > { %v2700_v36 = vpack.c.bf16 %v2683_v35, %v2682_v14  ;;  %v2825_v13 = vpack.c.bf16 %v2808_v61, %v2807_v1 }
 0x4fb   : > { %v2629_v21 = vpop.f32.mrf.mxu0 }
 0x4fc   : > { %3325 = vmatmul.msk.bf16.gmra.mxu1 %vm1132_vm10, %v2700_v36  ;;  %3341 = vmatmul.msk.bf16.gmra.mxu2 %vm1132_vm10, %v2825_v13  ;;  %v2630_v62 = vadd.f32 %v4433_v48, %v2629_v21  ;;  %v2802_v13 = vperm.slane %v3729_v38, 6 }
 0x4fe   : > { %v2660_v20 = vmax.f32 %v2630_v62, 0.0 }
 0x500   : > { %v2684_v50 = vmul.f32 %v2673_v44, %v2660_v20  ;;  %v2809_v0 = vmul.f32 %v2798_v18, %v2660_v20 }
 0x503   : > { %v2631_v32 = vpop.f32.mrf.mxu0 }
 0x504   : > { %v2632_v47 = vadd.f32 %v4433_v48, %v2631_v32 }
 0x506   : > { %v2661_v41 = vmax.f32 %v2632_v47, 0.0 }
 0x508   : > { %v2685_v26 = vmul.f32 %v2673_v44, %v2661_v41  ;;  %v2810_v37 = vmul.f32 %v2798_v18, %v2661_v41 }
 0x50a   : > { %v2701_v4 = vpack.c.bf16 %v2685_v26, %v2684_v50  ;;  %v2826_v60 = vpack.c.bf16 %v2810_v37, %v2809_v0 }
 0x50b   : > { %v2634_v53 = vpop.f32.mrf.mxu0 }
 0x50c   : > { %3326 = vmatmul.msk.bf16.gmra.mxu1 %vm1132_vm10, %v2701_v4  ;;  %3342 = vmatmul.msk.bf16.gmra.mxu2 %vm1132_vm10, %v2826_v60  ;;  %v2635_v24 = vadd.f32 %v4433_v48, %v2634_v53 }
 0x50e   : > { %v2662_v34 = vmax.f32 %v2635_v24, 0.0 }
 0x510   : > { %v2686_v33 = vmul.f32 %v2674_v17, %v2662_v34  ;;  %v2811_v9 = vmul.f32 %v2799_v42, %v2662_v34 }
 0x513   : > { %v2636_v49 = vpop.f32.mrf.mxu0 }
 0x514   : > { %v2637_v31 = vadd.f32 %v4433_v48, %v2636_v49 }
 0x516   : > { %v2663_v7 = vmax.f32 %v2637_v31, 0.0 }
 0x518   : > { %v2687_v15 = vmul.f32 %v2674_v17, %v2663_v7  ;;  %v2812_v52 = vmul.f32 %v2799_v42, %v2663_v7 }
 0x51a   : > { %v2702_v10 = vpack.c.bf16 %v2687_v15, %v2686_v33  ;;  %v2827_v63 = vpack.c.bf16 %v2812_v52, %v2811_v9 }
 0x51b   : > { %v2639_v3 = vpop.f32.mrf.mxu0 }
 0x51c   : > { %3327 = vmatmul.msk.bf16.gmra.mxu1 %vm1132_vm10, %v2702_v10  ;;  %3343 = vmatmul.msk.bf16.gmra.mxu2 %vm1132_vm10, %v2827_v63  ;;  %v2640_v2 = vadd.f32 %v4433_v48, %v2639_v3 }
 0x51e   : > { %v2664_v25 = vmax.f32 %v2640_v2, 0.0 }
 0x520   : > { %v2688_v46 = vmul.f32 %v2675_v54, %v2664_v25  ;;  %v2813_v19 = vmul.f32 %v2800_v40, %v2664_v25 }
 0x523   : > { %v2641_v30 = vpop.f32.mrf.mxu0 }
 0x524   : > { %v2642_v8 = vadd.f32 %v4433_v48, %v2641_v30 }
 0x526   : > { %v2665_v57 = vmax.f32 %v2642_v8, 0.0 }
 0x528   : > { %v2689_v22 = vmul.f32 %v2675_v54, %v2665_v57  ;;  %v2814_v28 = vmul.f32 %v2800_v40, %v2665_v57  ;;  %v3406_v40 = vld [vmem:[%s4549_s14] ss:$0 sm:$0xff] }
 0x52a   : > { %v2703_v56 = vpack.c.bf16 %v2689_v22, %v2688_v46  ;;  %v2828_v11 = vpack.c.bf16 %v2814_v28, %v2813_v19 }
 0x52b   : > { %v2644_v39 = vpop.f32.mrf.mxu0 }
 0x52c   : > { %3328 = vmatmul.msk.bf16.gmra.mxu1 %vm1132_vm10, %v2703_v56  ;;  %3344 = vmatmul.msk.bf16.gmra.mxu2 %vm1132_vm10, %v2828_v11  ;;  %v2645_v51 = vadd.f32 %v4433_v48, %v2644_v39 }
 0x52e   : > { %v2666_v27 = vmax.f32 %v2645_v51, 0.0 }
 0x530   : > { %v2690_v12 = vmul.f32 %v2676_v6, %v2666_v27  ;;  %v2815_v5 = vmul.f32 %v2801_v29, %v2666_v27  ;;  %v2920_v27 = vlaneseq }
 0x533   : > { %v2646_v58 = vpop.f32.mrf.mxu0 }
 0x534   : > { %v2647_v55 = vadd.f32 %v4433_v48, %v2646_v58 }
 0x536   : > { %v2667_v16 = vmax.f32 %v2647_v55, 0.0 }
 0x538   : > { %v2691_v45 = vmul.f32 %v2676_v6, %v2667_v16  ;;  %v2816_v59 = vmul.f32 %v2801_v29, %v2667_v16  ;;  %v2921_v16 = vshrl.u32 %v2920_v27, 7 }
 0x53a   : > { %v2704_v43 = vpack.c.bf16 %v2691_v45, %v2690_v12  ;;  %v2829_v14 = vpack.c.bf16 %v2816_v59, %v2815_v5  ;;  %v2924_v45 = vmul.u32 16, %v2921_v16 }
 0x53b   : > { %v2649_v1 = vpop.f32.mrf.mxu0 }
 0x53c   : > { %3329 = vmatmul.msk.bf16.gmra.mxu1 %vm1132_vm10, %v2704_v43  ;;  %3345 = vmatmul.msk.bf16.gmra.mxu2 %vm1132_vm10, %v2829_v14  ;;  %v2650_v35 = vadd.f32 %v4433_v48, %v2649_v1  ;;  %v2923_v14 = vand.u32 127, %v2920_v27  ;;  %v2925_v1 = vadd.s32 15, %v2924_v45 }
 0x53e   : > { %v2668_v36 = vmax.f32 %v2650_v35, 0.0  ;;  %vm2926_vm7 = vcmp.eq.s32.totalorder %v2923_v14, %v2925_v1 }
 0x540   : > { %v2692_v32 = vmul.f32 %v2677_v23, %v2668_v36  ;;  %v2817_v20 = vmul.f32 %v2802_v13, %v2668_v36  ;;  %v3407_v36 = vld [vmem:[%s4551_s16] ss:$0 sm:$0xff] }
 0x543   : > { %v2651_v61 = vpop.f32.mrf.mxu0 }
 0x544   : > { %v2652_v21 = vadd.f32 %v4433_v48, %v2651_v61 }
 0x546   : > { %v2669_v62 = vmax.f32 %v2652_v21, 0.0 }
 0x548   : > { %v2693_v44 = vmul.f32 %v2677_v23, %v2669_v62  ;;  %v2818_v18 = vmul.f32 %v2802_v13, %v2669_v62  ;;  %v3485_v62 = vmov 1.0  }
 0x54a   : > { %v2705_v47 = vpack.c.bf16 %v2693_v44, %v2692_v32  ;;  %v2830_v41 = vpack.c.bf16 %v2818_v18, %v2817_v20 }
 0x54c   : > { %3330 = vmatmul.msk.bf16.gmra.mxu1 %vm1132_vm10, %v2705_v47  ;;  %3346 = vmatmul.msk.bf16.gmra.mxu2 %vm1132_vm10, %v2830_v41 }
 0x559   : > { %v4483_v50 = vpop.f32.mrf.mxu1 }
 0x55a   : > { %v2756_v23 = vadd.f32 %v3406_v40, %v4483_v50 }
 0x55f   : > { %v4485_v0 = vpop.f32.mrf.mxu2 }
 0x561   : > { %v2757_v26 = vpop.f32.mrf.mxu1 }
 0x562   : > { %v2758_v35 = vadd.f32 %v3406_v40, %v2757_v26 }
 0x567   : > { %v4487_v37 = vpop.f32.mrf.mxu2 }
 0x569   : > { %v2760_v38 = vpop.f32.mrf.mxu1 }
 0x56a   : > { %v2761_v43 = vadd.f32 %v3406_v40, %v2760_v38 }
 0x56f   : > { %v4489_v48 = vpop.f32.mrf.mxu2 }
 0x571   : > { %v2762_v4 = vpop.f32.mrf.mxu1 }
 0x572   : > { %v2763_v59 = vadd.f32 %v3406_v40, %v2762_v4 }
 0x577   : > { %v4491_v60 = vpop.f32.mrf.mxu2 }
 0x579   : > { %v2765_v53 = vpop.f32.mrf.mxu1 }
 0x57a   : > { %v2766_v5 = vadd.f32 %v3406_v40, %v2765_v53  ;;  %v2888_v53 = vadd.f32 %v3407_v36, %v4491_v60 }
 0x57f   : > { %v4493_v24 = vpop.f32.mrf.mxu2 }
 0x580   : > { %v2891_v4 = vadd.f32 %v3407_v36, %v4493_v24 }
 0x581   : > { %v2767_v49 = vpop.f32.mrf.mxu1 }
 0x582   : > { %v2768_v12 = vadd.f32 %v3406_v40, %v2767_v49  ;;  %v2886_v49 = vadd.f32 %v3407_v36, %v4489_v48 }
 0x587   : > { %v4495_v17 = vpop.f32.mrf.mxu2 }
 0x588   : > { %v2893_v38 = vadd.f32 %v3407_v36, %v4495_v17 }
 0x589   : > { %v2770_v34 = vpop.f32.mrf.mxu1 }
 0x58a   : > { %v2771_v29 = vadd.f32 %v3406_v40, %v2770_v34  ;;  %v2883_v34 = vadd.f32 %v3407_v36, %v4487_v37 }
 0x58f   : > { %v4497_v31 = vpop.f32.mrf.mxu2 }
 0x590   : > { %v2896_v26 = vadd.f32 %v3407_v36, %v4497_v31 }
 0x591   : > { %v2772_v42 = vpop.f32.mrf.mxu1 }
 0x592   : > { %v2773_v6 = vadd.f32 %v3406_v40, %v2772_v42  ;;  %v2881_v42 = vadd.f32 %v3407_v36, %v4485_v0 }
 0x597   : > { %v4499_v33 = vpop.f32.mrf.mxu2 }
 0x598   : > { %v2898_v50 = vadd.f32 %v3407_v36, %v4499_v33 }
 0x599   : > { %v2775_v7 = vpop.f32.mrf.mxu1 }
 0x59a   : > { %v2776_v58 = vadd.f32 %v3406_v40, %v2775_v7 }
 0x59f   : > { %v4501_v15 = vpop.f32.mrf.mxu2 }
 0x5a0   : > { %v2901_v41 = vadd.f32 %v3407_v36, %v4501_v15 }
 0x5a1   : > { %v2777_v9 = vpop.f32.mrf.mxu1 }
 0x5a2   : > { %v2778_v51 = vadd.f32 %v3406_v40, %v2777_v9 }
 0x5a7   : > { %v4503_v63 = vpop.f32.mrf.mxu2 }
 0x5a8   : > { %v2903_v47 = vadd.f32 %v3407_v36, %v4503_v63 }
 0x5a9   : > { %v2780_v52 = vpop.f32.mrf.mxu1 }
 0x5aa   : > { %v2781_v39 = vadd.f32 %v3406_v40, %v2780_v52 }
 0x5af   : > { %v2905_v2 = vpop.f32.mrf.mxu2 }
 0x5b0   : > { %v2906_v18 = vadd.f32 %v3407_v36, %v2905_v2 }
 0x5b1   : > { %v2782_v10 = vpop.f32.mrf.mxu1 }
 0x5b2   : > { %v2783_v56 = vadd.f32 %v3406_v40, %v2782_v10 }
 0x5b7   : > { %v2907_v25 = vpop.f32.mrf.mxu2 }
 0x5b8   : > { %v2908_v44 = vadd.f32 %v3407_v36, %v2907_v25 }
 0x5b9   : > { %v2785_v3 = vpop.f32.mrf.mxu1 }
 0x5ba   : > { %v2786_v28 = vadd.f32 %v3406_v40, %v2785_v3 }
 0x5bf   : > { %v2910_v8 = vpop.f32.mrf.mxu2 }
 0x5c0   : > { %v2911_v20 = vadd.f32 %v3407_v36, %v2910_v8 }
 0x5c1   : > { %v2787_v30 = vpop.f32.mrf.mxu1 }
 0x5c2   : > { %v2788_v22 = vadd.f32 %v3406_v40, %v2787_v30 }
 0x5c7   : > { %v2912_v11 = vpop.f32.mrf.mxu2 }
 0x5c8   : > { %v2913_v32 = vadd.f32 %v3407_v36, %v2912_v11 }
 0x5c9   : > { %v2790_v54 = vpop.f32.mrf.mxu1 }
 0x5ca   : > { %v2791_v19 = vadd.f32 %v3406_v40, %v2790_v54 }
 0x5cf   : > { %v2915_v55 = vpop.f32.mrf.mxu2 }
 0x5d0   : > { %v2916_v21 = vadd.f32 %v3407_v36, %v2915_v55 }
 0x5d1   : > { %v2792_v57 = vpop.f32.mrf.mxu1 }
 0x5d2   : > { %v2793_v46 = vadd.f32 %v3406_v40, %v2792_v57 }
 0x5d4   : > { %2929 = vmatpush.msra.mxu3 %v2793_v46 }
 0x5d6   : > { %2930 = vmatpush.msra.mxu3 %v2791_v19 }
 0x5d7   : > { %v2917_v61 = vpop.f32.mrf.mxu2 }
 0x5d8   : > { %2931 = vmatpush.msra.mxu3 %v2788_v22  ;;  %v2918_v13 = vadd.f32 %v3407_v36, %v2917_v61 }
 0x5da   : > { %2932 = vmatpush.msra.mxu3 %v2786_v28 }
 0x5dc   : > { %2933 = vmatpush.msra.mxu3 %v2783_v56 }
 0x5de   : > { %2934 = vmatpush.msra.mxu3 %v2781_v39 }
 0x5e0   : > { %2935 = vmatpush.msra.mxu3 %v2778_v51 }
 0x5e2   : > { %2936 = vmatpush.msra.mxu3 %v2776_v58 }
 0x5e4   : > { %2937 = vmatpush.msra.mxu3 %v2773_v6 }
 0x5e6   : > { %2938 = vmatpush.msra.mxu3 %v2771_v29 }
 0x5e8   : > { %2939 = vmatpush.msra.mxu3 %v2768_v12 }
 0x5ea   : > { %2940 = vmatpush.msra.mxu3 %v2766_v5 }
 0x5ec   : > { %2941 = vmatpush.msra.mxu3 %v2763_v59 }
 0x5ee   : > { %2942 = vmatpush.msra.mxu3 %v2761_v43 }
 0x5f0   : > { %2943 = vmatpush.msra.mxu3 %v2758_v35 }
 0x5f2   : > { %2944 = vmatpush.msra.mxu3 %v2756_v23 }
 0x5f3   : > { %3348 = vmatmul.msk.f32.vlgmr.msra.gmra.mxu3 %vm2926_vm7, %v3485_v62 }
 0x5f4   : > { %2951 = vmatpush.msrb.mxu3 %v2918_v13 }
 0x5f6   : > { %2952 = vmatpush.msrb.mxu3 %v2916_v21 }
 0x5f8   : > { %2953 = vmatpush.msrb.mxu3 %v2913_v32 }
 0x5fa   : > { %2954 = vmatpush.msrb.mxu3 %v2911_v20 }
 0x5fc   : > { %2955 = vmatpush.msrb.mxu3 %v2908_v44 }
 0x5fe   : > { %2956 = vmatpush.msrb.mxu3 %v2906_v18 }
 0x600   : > { %2957 = vmatpush.msrb.mxu3 %v2903_v47 }
 0x602   : > { %2958 = vmatpush.msrb.mxu3 %v2901_v41 }
 0x604   : > { %2959 = vmatpush.msrb.mxu3 %v2898_v50 }
 0x606   : > { %2960 = vmatpush.msrb.mxu3 %v2896_v26 }
 0x608   : > { %2961 = vmatpush.msrb.mxu3 %v2893_v38 }
 0x60a   : > { %2962 = vmatpush.msrb.mxu3 %v2891_v4 }
 0x60c   : > { %2963 = vmatpush.msrb.mxu3 %v2888_v53 }
 0x60e   : > { %2964 = vmatpush.msrb.mxu3 %v2886_v49 }
 0x610   : > { %2965 = vmatpush.msrb.mxu3 %v2883_v34 }
 0x612   : > { %2966 = vmatpush.msrb.mxu3 %v2881_v42 }
 0x613   : > { %3349 = vmatmul.msk.f32.vlgmr.msrb.gmra.mxu3 %vm2926_vm7, %v3485_v62 }
 0x676   : > { %v2946_v60 = vpop.f32.mrf.mxu3 }
 0x677   : > { %2950 = vst.msk [vmem:[%s607_s21] sm:$0xff] %vm2949_vm8, %v2946_v60 }
 0x696   : > { %v2968_v48 = vpop.f32.mrf.mxu3 }
 0x697   : > { %v2971_v24 = vmul.f32 1.442695, %v2968_v48 }
 0x699   : > { %3474 = vpow2.f32 %v2971_v24 }
 0x69f   : > { %v3475_v0 = vpop.eup %3474 }
 0x6a0   : > { %2973 = vst.msk [vmem:[%s611_s23] sm:$0xff] %vm2949_vm8, %v3475_v0 }
 0x6a1 PF: > { %s29_s27 = sadd.s32 1, %s3482_s27  }
 0x6a2   : > { %p26_p5 = scmp.ge.s32.totalorder %s29_s27, 4  }
 0x6a4   :  { %28 = sbr.rel (!%p26_p5) target bundleno = 4 (0x4), region = 145 }

</bundles_post_ra>
